<compile_context>
chip_gen: v5e
topology: v5e:2x2
jax: 0.10.0
libtpu: 0.0.40
codegen_flags: <defaults>
</compile_context>

<pallas_src>
import jax
import jax.numpy as jnp
import numpy as np
from jax import lax
from jax.experimental import pallas as pl
from jax.experimental.pallas import tpu as pltpu  # noqa: F401  (TPU backend assumed)

LEAKY_SLOPE = 0.01
BN_EPS = 1e-5
OUT_COLS = 128          # lane-dense padded output width (mu | logvar | zeros)


# ------------------------------ Pallas kernel ------------------------------ #

def _encoder_kernel(x_ref,
                    w1_ref, r1_ref, sb1_ref,
                    w2_ref, r2_ref, sb2_ref,
                    w3_ref, r3_ref, sb3_ref,
                    w4_ref, r4_ref, sb4_ref,
                    w1gb_ref, w2b_ref,
                    o_ref):
    n = x_ref.shape[0]
    inv_n = 1.0 / n

    def conv_bn_lrelu(a, w_ref, r_ref, sb_ref):
        # a: [N, Hin*Win*Cin]  ->  [N, OH*OW*Cout]   (lanes ordered (oh, ow, c))
        y = jnp.dot(a, w_ref[...], preferred_element_type=jnp.float32)
        # Fused one-pass BN stats: [sum_y ; sum_y2] -> one R matmul -> mean, E[y^2].
        s = jnp.concatenate([jnp.sum(y, axis=0, keepdims=True),
                             jnp.sum(y * y, axis=0, keepdims=True)], axis=0) * inv_n
        sc = jnp.dot(s, r_ref[...], preferred_element_type=jnp.float32)   # [2, C]
        mean_c = sc[0:1]
        # Single-pass (E[y^2]-mean^2) biased variance; fine at this scale (see review).
        var_c = sc[1:2] - mean_c * mean_c
        inv_c = lax.rsqrt(var_c + BN_EPS)
        # Broadcast fused scale/shift back to lanes with gamma folded into B (sb rows 0..C-1),
        # beta is the extra last row of sb.
        m2 = jnp.concatenate([inv_c, -mean_c * inv_c], axis=0)            # [2, C]
        c = sb_ref.shape[0] - 1
        ss = jnp.dot(m2, sb_ref[0:c, :], preferred_element_type=jnp.float32)  # [2, L]
        y = y * ss[0:1] + (ss[1:2] + sb_ref[c:c + 1, :])
        return jnp.where(y >= 0.0, y, LEAKY_SLOPE * y)

    a = x_ref[...]                                   # [N, ic*28*28] (raw NCHW flatten)
    a = conv_bn_lrelu(a, w1_ref, r1_ref, sb1_ref)    # [N, 14*14*nef]
    a = conv_bn_lrelu(a, w2_ref, r2_ref, sb2_ref)    # [N, 7*7*2nef]
    a = conv_bn_lrelu(a, w3_ref, r3_ref, sb3_ref)    # [N, 4*4*4nef]
    a = conv_bn_lrelu(a, w4_ref, r4_ref, sb4_ref)    # [N, 2*2*8nef] = [N, nef*32]

    # Fused mu/logvar heads.  w1gb rows: [W1cat (perm-folded) | gamma_cat | beta_cat].
    nin = w1gb_ref.shape[0] - 2
    h = jnp.dot(a, w1gb_ref[0:nin, :], preferred_element_type=jnp.float32)   # [N, 2*hidden]
    m = jnp.sum(h, axis=0, keepdims=True) * inv_n
    v = jnp.sum(h * h, axis=0, keepdims=True) * inv_n - m * m
    scale = w1gb_ref[nin:nin + 1, :] * lax.rsqrt(v + BN_EPS)
    shift = w1gb_ref[nin + 1:nin + 2, :] - m * scale
    h = h * scale + shift
    h = jnp.where(h >= 0.0, h, LEAKY_SLOPE * h)

    # Block-diagonal final Linears, padded to 128 lane-dense output columns.
    th = w2b_ref.shape[0] - 1
    o_ref[...] = (jnp.dot(h, w2b_ref[0:th, :], preferred_element_type=jnp.float32)
                  + w2b_ref[th:th + 1, :])


# ------------------------------ host-side prep ----------------------------- #

def _conv_out(s):
    # Conv2d(kernel=3, stride=2, padding=1)
    return (s + 2 - 3) // 2 + 1


def prepare_operands(params, ic, spatial=28):
    """Precompute (once, on host) the dense per-layer conv matrices and the fused
    BN / head operands consumed by the kernel.  Everything is batch-independent.
    Conv `b` and head `b1` biases are intentionally NOT consumed (cancelled by
    training-mode BN)."""
    H = W = int(spatial)
    cin = int(ic)
    chw_input = True          # layer-1 input rows come from the raw NCHW flatten
    conv_arrays = []

    for layer in params["conv"]:
        w_pt = np.asarray(layer["w"], np.float32)             # [Cout, Cin, 3, 3]
        gamma = np.asarray(layer["gamma"], np.float32)
        beta = np.asarray(layer["beta"], np.float32)
        cout = int(w_pt.shape[0])
        oh, ow = _conv_out(H), _conv_out(W)
        lin, lout = cin * H * W, oh * ow * cout

        # Dense conv-as-matmul weight: stride-2 + padding + im2col baked in.
        wfull = np.zeros((lin, lout), np.float32)
        for r in range(oh):
            for q in range(ow):
                col = (r * ow + q) * cout
                for kh in range(3):
                    h_in = 2 * r + kh - 1
                    if not (0 <= h_in < H):
                        continue
                    for kw in range(3):
                        w_in = 2 * q + kw - 1
                        if not (0 <= w_in < W):
                            continue
                        for ci in range(cin):
                            row = (ci * H * W + h_in * W + w_in) if chw_input \
                                else ((h_in * W + w_in) * cin + ci)
                            wfull[row, col:col + cout] = w_pt[:, ci, kh, kw]

        # R: per-channel average over the (oh*ow) lane groups (channel-fastest layout).
        r_mat = np.kron(np.full((oh * ow, 1), 1.0 / (oh * ow), np.float32),
                        np.eye(cout, dtype=np.float32))                    # [lout, cout]
        # B with gamma folded (rows 0..C-1) + beta broadcast row (row C).
        bg = np.kron(np.ones((1, oh * ow), np.float32),
                     np.diag(gamma).astype(np.float32))                    # [cout, lout]
        beta_row = np.kron(np.ones((1, oh * ow), np.float32), beta[None, :])
        sb = np.concatenate([bg, beta_row], axis=0)                        # [cout+1, lout]

        conv_arrays += [jnp.asarray(wfull), jnp.asarray(r_mat), jnp.asarray(sb)]
        H, W, cin, chw_input = oh, ow, cout, False

    fh, fw, fc = H, W, cin                          # conv4 output: 2 x 2 x nef*8
    mu, lv = params["mu"], params["logvar"]
    hidden = int(np.asarray(mu["w1"]).shape[0])
    zdim = int(np.asarray(mu["w2"]).shape[0])
    assert int(np.asarray(mu["w1"]).shape[1]) == fc * fh * fw
    assert 2 * zdim <= OUT_COLS

    # Concatenate mu/logvar first Linears along the output axis and fold the
    # PyTorch NCHW-flatten permutation into the weight rows.
    w1cat = np.concatenate([np.asarray(mu["w1"], np.float32),
                            np.asarray(lv["w1"], np.float32)], axis=0)     # [2*hidden, fc*fh*fw]
    w1 = np.zeros((fh * fw * fc, 2 * hidden), np.float32)
    for r in range(fh):
        for q in range(fw):
            for c in range(fc):
                lane = (r * fw + q) * fc + c                   # our (oh, ow, c) lane order
                w1[lane, :] = w1cat[:, c * fh * fw + r * fw + q]  # PyTorch NCHW flatten
    gamma_cat = np.concatenate([np.asarray(mu["gamma"], np.float32),
                                np.asarray(lv["gamma"], np.float32)])[None, :]
    beta_cat = np.concatenate([np.asarray(mu["beta"], np.float32),
                               np.asarray(lv["beta"], np.float32)])[None, :]
    w1gb = np.concatenate([w1, gamma_cat, beta_cat], axis=0)               # [fc*fh*fw + 2, 2*hidden]

    # Block-diagonal final Linears + biases, padded to 128 lane-dense columns.
    w2 = np.zeros((2 * hidden, OUT_COLS), np.float32)
    w2[:hidden, :zdim] = np.asarray(mu["w2"], np.float32).T
    w2[hidden:, zdim:2 * zdim] = np.asarray(lv["w2"], np.float32).T
    b2 = np.zeros((1, OUT_COLS), np.float32)
    b2[0, :zdim] = np.asarray(mu["b2"], np.float32)
    b2[0, zdim:2 * zdim] = np.asarray(lv["b2"], np.float32)
    w2b = np.concatenate([w2, b2], axis=0)                                 # [2*hidden + 1, 128]

    arrays = tuple(conv_arrays) + (jnp.asarray(w1gb), jnp.asarray(w2b))
    return {"arrays": arrays, "zdim": zdim, "in_features": int(ic) * int(spatial) * int(spatial)}


# --------------------------------- forward --------------------------------- #

@jax.jit
def _forward_padded(img_nchw, arrays):
    n = img_nchw.shape[0]
    x = img_nchw.astype(jnp.float32).reshape(n, -1)            # raw NCHW flatten (free)
    assert x.shape[1] == arrays[0].shape[0], "image shape inconsistent with prepared operands"
    out_cols = arrays[-1].shape[1]

    flops = 2 * n * sum(int(np.prod(a.shape)) for a in arrays)
    bytes_accessed = int(x.size * 4 + sum(int(a.size) * 4 for a in arrays) + n * out_cols * 4)

    return pl.pallas_call(
        _encoder_kernel,
        out_shape=jax.ShapeDtypeStruct((n, out_cols), jnp.float32),
        cost_estimate=pl.CostEstimate(flops=flops, transcendentals=256,
                                      bytes_accessed=bytes_accessed),
    )(x, *arrays)


def conv_encoder_forward(img_nchw, ops):
    """img_nchw: [N, ic, 28, 28] (PyTorch layout). ops: prepare_operands(...)."""
    out = _forward_padded(img_nchw, ops["arrays"])             # [N, 128] lane-dense
    zdim = ops["zdim"]
    return out[:, :zdim], out[:, zdim:2 * zdim]


# ------------------------------ parameter init ----------------------------- #

def init_params(key, ic, nef, hidden, zdim):
    ks = iter(jax.random.split(key, 32))
    f32 = jnp.float32

    def conv_layer(oc, icn):
        return {
            "w": 0.1 * jax.random.normal(next(ks), (oc, icn, 3, 3), f32),
            "b": 0.1 * jax.random.normal(next(ks), (oc,), f32),   # cancelled by train-mode BN
            "gamma": jnp.ones((oc,), f32),
            "beta": jnp.zeros((oc,), f32),
        }

    def head(in_f):
        return {
            "w1": 0.1 * jax.random.normal(next(ks), (hidden, in_f), f32),  # [out, in]
            "b1": 0.1 * jax.random.normal(next(ks), (hidden,), f32),       # cancelled by BN
            "gamma": jnp.ones((hidden,), f32),
            "beta": jnp.zeros((hidden,), f32),
            "w2": 0.1 * jax.random.normal(next(ks), (zdim, hidden), f32),
            "b2": 0.1 * jax.random.normal(next(ks), (zdim,), f32),
        }

    chans = [ic, nef, nef * 2, nef * 4, nef * 8]
    return {
        "conv": [conv_layer(chans[i + 1], chans[i]) for i in range(4)],
        "mu": head(nef * 32),
        "logvar": head(nef * 32),
    }


if __name__ == "__main__":
    ic, nef, hidden, zdim = 1, 4, 32, 8   # 28x28 spatial is required by the module
    batch = 2
    key = jax.random.PRNGKey(0)
    k_img, k_params = jax.random.split(key)
    params = init_params(k_params, ic, nef, hidden, zdim)
    img = jax.random.normal(k_img, (batch, ic, 28, 28), jnp.float32)

    ops = prepare_operands(params, ic, spatial=28)
    mu, logvar = conv_encoder_forward(img, ops)
    jax.block_until_ready((mu, logvar))

    assert mu.shape == (batch, zdim) and logvar.shape == (batch, zdim)
    assert bool(jnp.all(jnp.isfinite(mu))) and bool(jnp.all(jnp.isfinite(logvar)))
    print("KERNEL_OK")
</pallas_src>

<mosaic_0001>
module attributes {stable_mosaic.version = 11 : i64} {
  func.func @_encoder_kernel(%arg0: memref<2x784xf32, #tpu.memory_space<vmem>>, %arg1: memref<784x784xf32, #tpu.memory_space<vmem>>, %arg2: memref<784x4xf32, #tpu.memory_space<vmem>>, %arg3: memref<5x784xf32, #tpu.memory_space<vmem>>, %arg4: memref<784x392xf32, #tpu.memory_space<vmem>>, %arg5: memref<392x8xf32, #tpu.memory_space<vmem>>, %arg6: memref<9x392xf32, #tpu.memory_space<vmem>>, %arg7: memref<392x256xf32, #tpu.memory_space<vmem>>, %arg8: memref<256x16xf32, #tpu.memory_space<vmem>>, %arg9: memref<17x256xf32, #tpu.memory_space<vmem>>, %arg10: memref<256x128xf32, #tpu.memory_space<vmem>>, %arg11: memref<128x32xf32, #tpu.memory_space<vmem>>, %arg12: memref<33x128xf32, #tpu.memory_space<vmem>>, %arg13: memref<130x64xf32, #tpu.memory_space<vmem>>, %arg14: memref<65x128xf32, #tpu.memory_space<vmem>>, %arg15: memref<2x128xf32, #tpu.memory_space<vmem>>) attributes {dimension_semantics = [], scalar_prefetch = 0 : i64, scratch_operands = 0 : i64, tpu.core_type = #tpu.core_type<tc>} {
    %c0 = arith.constant 0 : index
    %c0_0 = arith.constant 0 : index
    %0 = vector.load %arg0[%c0, %c0_0] : memref<2x784xf32, #tpu.memory_space<vmem>>, vector<2x784xf32>
    %c0_1 = arith.constant 0 : index
    %c0_2 = arith.constant 0 : index
    %1 = vector.load %arg1[%c0_1, %c0_2] : memref<784x784xf32, #tpu.memory_space<vmem>>, vector<784x784xf32>
    %cst = arith.constant dense<0.000000e+00> : vector<2x784xf32>
    %2 = tpu.matmul %0, %1, %cst {dimension_numbers = #tpu.dot_dimension_numbers<[1], [0], [0], [1], [0, 0, 1, 1], [], []>} : vector<2x784xf32>, vector<784x784xf32>, vector<2x784xf32> -> vector<2x784xf32>
    %cst_3 = arith.constant dense<0.000000e+00> : vector<784xf32>
    %3 = vector.multi_reduction <add>, %2, %cst_3 [0] : vector<2x784xf32> to vector<784xf32>
    %4 = vector.shape_cast %3 : vector<784xf32> to vector<1x784xf32>
    %5 = arith.mulf %2, %2 : vector<2x784xf32>
    %cst_4 = arith.constant dense<0.000000e+00> : vector<784xf32>
    %6 = vector.multi_reduction <add>, %5, %cst_4 [0] : vector<2x784xf32> to vector<784xf32>
    %7 = vector.shape_cast %6 : vector<784xf32> to vector<1x784xf32>
    %8 = tpu.concatenate %4, %7 in 0 : vector<1x784xf32>, vector<1x784xf32> -> vector<2x784xf32>
    %cst_5 = arith.constant 5.000000e-01 : f32
    %9 = vector.broadcast %cst_5 : f32 to vector<2x784xf32>
    %10 = arith.mulf %8, %9 : vector<2x784xf32>
    %c0_6 = arith.constant 0 : index
    %c0_7 = arith.constant 0 : index
    %11 = vector.load %arg2[%c0_6, %c0_7] : memref<784x4xf32, #tpu.memory_space<vmem>>, vector<784x4xf32>
    %cst_8 = arith.constant dense<0.000000e+00> : vector<2x4xf32>
    %12 = tpu.matmul %10, %11, %cst_8 {dimension_numbers = #tpu.dot_dimension_numbers<[1], [0], [0], [1], [0, 0, 1, 1], [], []>} : vector<2x784xf32>, vector<784x4xf32>, vector<2x4xf32> -> vector<2x4xf32>
    %13 = vector.extract_strided_slice %12 {offsets = [0, 0], sizes = [1, 4], strides = [1, 1]} : vector<2x4xf32> to vector<1x4xf32>
    %14 = vector.extract_strided_slice %12 {offsets = [1, 0], sizes = [1, 4], strides = [1, 1]} : vector<2x4xf32> to vector<1x4xf32>
    %15 = arith.mulf %13, %13 : vector<1x4xf32>
    %16 = arith.subf %14, %15 : vector<1x4xf32>
    %cst_9 = arith.constant 9.99999974E-6 : f32
    %17 = vector.broadcast %cst_9 : f32 to vector<1x4xf32>
    %18 = arith.addf %16, %17 : vector<1x4xf32>
    %19 = math.rsqrt %18 : vector<1x4xf32>
    %cst_10 = arith.constant 0.000000e+00 : f32
    %20 = vector.broadcast %cst_10 : f32 to vector<1x4xf32>
    %21 = arith.subf %20, %13 : vector<1x4xf32>
    %22 = arith.mulf %21, %19 : vector<1x4xf32>
    %23 = tpu.concatenate %19, %22 in 0 : vector<1x4xf32>, vector<1x4xf32> -> vector<2x4xf32>
    %c0_11 = arith.constant 0 : index
    %c0_12 = arith.constant 0 : index
    %24 = vector.load %arg3[%c0_11, %c0_12] : memref<5x784xf32, #tpu.memory_space<vmem>>, vector<4x784xf32>
    %cst_13 = arith.constant dense<0.000000e+00> : vector<2x784xf32>
    %25 = tpu.matmul %23, %24, %cst_13 {dimension_numbers = #tpu.dot_dimension_numbers<[1], [0], [0], [1], [0, 0, 1, 1], [], []>} : vector<2x4xf32>, vector<4x784xf32>, vector<2x784xf32> -> vector<2x784xf32>
    %26 = vector.extract_strided_slice %25 {offsets = [0, 0], sizes = [1, 784], strides = [1, 1]} : vector<2x784xf32> to vector<1x784xf32>
    %27 = vector.broadcast %26 : vector<1x784xf32> to vector<2x784xf32>
    %28 = arith.mulf %2, %27 : vector<2x784xf32>
    %29 = vector.extract_strided_slice %25 {offsets = [1, 0], sizes = [1, 784], strides = [1, 1]} : vector<2x784xf32> to vector<1x784xf32>
    %c4 = arith.constant 4 : index
    %c0_14 = arith.constant 0 : index
    %30 = vector.load %arg3[%c4, %c0_14] : memref<5x784xf32, #tpu.memory_space<vmem>>, vector<1x784xf32>
    %31 = arith.addf %29, %30 : vector<1x784xf32>
    %32 = vector.broadcast %31 : vector<1x784xf32> to vector<2x784xf32>
    %33 = arith.addf %28, %32 : vector<2x784xf32>
    %cst_15 = arith.constant 0.000000e+00 : f32
    %34 = vector.broadcast %cst_15 : f32 to vector<2x784xf32>
    %35 = arith.cmpf oge, %33, %34 : vector<2x784xf32>
    %cst_16 = arith.constant 0.00999999977 : f32
    %36 = vector.broadcast %cst_16 : f32 to vector<2x784xf32>
    %37 = arith.mulf %36, %33 : vector<2x784xf32>
    %38 = arith.select %35, %33, %37 : vector<2x784xi1>, vector<2x784xf32>
    %c0_17 = arith.constant 0 : index
    %c0_18 = arith.constant 0 : index
    %39 = vector.load %arg4[%c0_17, %c0_18] : memref<784x392xf32, #tpu.memory_space<vmem>>, vector<784x392xf32>
    %cst_19 = arith.constant dense<0.000000e+00> : vector<2x392xf32>
    %40 = tpu.matmul %38, %39, %cst_19 {dimension_numbers = #tpu.dot_dimension_numbers<[1], [0], [0], [1], [0, 0, 1, 1], [], []>} : vector<2x784xf32>, vector<784x392xf32>, vector<2x392xf32> -> vector<2x392xf32>
    %cst_20 = arith.constant dense<0.000000e+00> : vector<392xf32>
    %41 = vector.multi_reduction <add>, %40, %cst_20 [0] : vector<2x392xf32> to vector<392xf32>
    %42 = vector.shape_cast %41 : vector<392xf32> to vector<1x392xf32>
    %43 = arith.mulf %40, %40 : vector<2x392xf32>
    %cst_21 = arith.constant dense<0.000000e+00> : vector<392xf32>
    %44 = vector.multi_reduction <add>, %43, %cst_21 [0] : vector<2x392xf32> to vector<392xf32>
    %45 = vector.shape_cast %44 : vector<392xf32> to vector<1x392xf32>
    %46 = tpu.concatenate %42, %45 in 0 : vector<1x392xf32>, vector<1x392xf32> -> vector<2x392xf32>
    %cst_22 = arith.constant 5.000000e-01 : f32
    %47 = vector.broadcast %cst_22 : f32 to vector<2x392xf32>
    %48 = arith.mulf %46, %47 : vector<2x392xf32>
    %c0_23 = arith.constant 0 : index
    %c0_24 = arith.constant 0 : index
    %49 = vector.load %arg5[%c0_23, %c0_24] : memref<392x8xf32, #tpu.memory_space<vmem>>, vector<392x8xf32>
    %cst_25 = arith.constant dense<0.000000e+00> : vector<2x8xf32>
    %50 = tpu.matmul %48, %49, %cst_25 {dimension_numbers = #tpu.dot_dimension_numbers<[1], [0], [0], [1], [0, 0, 1, 1], [], []>} : vector<2x392xf32>, vector<392x8xf32>, vector<2x8xf32> -> vector<2x8xf32>
    %51 = vector.extract_strided_slice %50 {offsets = [0, 0], sizes = [1, 8], strides = [1, 1]} : vector<2x8xf32> to vector<1x8xf32>
    %52 = vector.extract_strided_slice %50 {offsets = [1, 0], sizes = [1, 8], strides = [1, 1]} : vector<2x8xf32> to vector<1x8xf32>
    %53 = arith.mulf %51, %51 : vector<1x8xf32>
    %54 = arith.subf %52, %53 : vector<1x8xf32>
    %cst_26 = arith.constant 9.99999974E-6 : f32
    %55 = vector.broadcast %cst_26 : f32 to vector<1x8xf32>
    %56 = arith.addf %54, %55 : vector<1x8xf32>
    %57 = math.rsqrt %56 : vector<1x8xf32>
    %cst_27 = arith.constant 0.000000e+00 : f32
    %58 = vector.broadcast %cst_27 : f32 to vector<1x8xf32>
    %59 = arith.subf %58, %51 : vector<1x8xf32>
    %60 = arith.mulf %59, %57 : vector<1x8xf32>
    %61 = tpu.concatenate %57, %60 in 0 : vector<1x8xf32>, vector<1x8xf32> -> vector<2x8xf32>
    %c0_28 = arith.constant 0 : index
    %c0_29 = arith.constant 0 : index
    %62 = vector.load %arg6[%c0_28, %c0_29] : memref<9x392xf32, #tpu.memory_space<vmem>>, vector<8x392xf32>
    %cst_30 = arith.constant dense<0.000000e+00> : vector<2x392xf32>
    %63 = tpu.matmul %61, %62, %cst_30 {dimension_numbers = #tpu.dot_dimension_numbers<[1], [0], [0], [1], [0, 0, 1, 1], [], []>} : vector<2x8xf32>, vector<8x392xf32>, vector<2x392xf32> -> vector<2x392xf32>
    %64 = vector.extract_strided_slice %63 {offsets = [0, 0], sizes = [1, 392], strides = [1, 1]} : vector<2x392xf32> to vector<1x392xf32>
    %65 = vector.broadcast %64 : vector<1x392xf32> to vector<2x392xf32>
    %66 = arith.mulf %40, %65 : vector<2x392xf32>
    %67 = vector.extract_strided_slice %63 {offsets = [1, 0], sizes = [1, 392], strides = [1, 1]} : vector<2x392xf32> to vector<1x392xf32>
    %c8 = arith.constant 8 : index
    %c0_31 = arith.constant 0 : index
    %68 = vector.load %arg6[%c8, %c0_31] : memref<9x392xf32, #tpu.memory_space<vmem>>, vector<1x392xf32>
    %69 = arith.addf %67, %68 : vector<1x392xf32>
    %70 = vector.broadcast %69 : vector<1x392xf32> to vector<2x392xf32>
    %71 = arith.addf %66, %70 : vector<2x392xf32>
    %cst_32 = arith.constant 0.000000e+00 : f32
    %72 = vector.broadcast %cst_32 : f32 to vector<2x392xf32>
    %73 = arith.cmpf oge, %71, %72 : vector<2x392xf32>
    %cst_33 = arith.constant 0.00999999977 : f32
    %74 = vector.broadcast %cst_33 : f32 to vector<2x392xf32>
    %75 = arith.mulf %74, %71 : vector<2x392xf32>
    %76 = arith.select %73, %71, %75 : vector<2x392xi1>, vector<2x392xf32>
    %c0_34 = arith.constant 0 : index
    %c0_35 = arith.constant 0 : index
    %77 = vector.load %arg7[%c0_34, %c0_35] : memref<392x256xf32, #tpu.memory_space<vmem>>, vector<392x256xf32>
    %cst_36 = arith.constant dense<0.000000e+00> : vector<2x256xf32>
    %78 = tpu.matmul %76, %77, %cst_36 {dimension_numbers = #tpu.dot_dimension_numbers<[1], [0], [0], [1], [0, 0, 1, 1], [], []>} : vector<2x392xf32>, vector<392x256xf32>, vector<2x256xf32> -> vector<2x256xf32>
    %cst_37 = arith.constant dense<0.000000e+00> : vector<256xf32>
    %79 = vector.multi_reduction <add>, %78, %cst_37 [0] : vector<2x256xf32> to vector<256xf32>
    %80 = vector.shape_cast %79 : vector<256xf32> to vector<1x256xf32>
    %81 = arith.mulf %78, %78 : vector<2x256xf32>
    %cst_38 = arith.constant dense<0.000000e+00> : vector<256xf32>
    %82 = vector.multi_reduction <add>, %81, %cst_38 [0] : vector<2x256xf32> to vector<256xf32>
    %83 = vector.shape_cast %82 : vector<256xf32> to vector<1x256xf32>
    %84 = tpu.concatenate %80, %83 in 0 : vector<1x256xf32>, vector<1x256xf32> -> vector<2x256xf32>
    %cst_39 = arith.constant 5.000000e-01 : f32
    %85 = vector.broadcast %cst_39 : f32 to vector<2x256xf32>
    %86 = arith.mulf %84, %85 : vector<2x256xf32>
    %c0_40 = arith.constant 0 : index
    %c0_41 = arith.constant 0 : index
    %87 = vector.load %arg8[%c0_40, %c0_41] : memref<256x16xf32, #tpu.memory_space<vmem>>, vector<256x16xf32>
    %cst_42 = arith.constant dense<0.000000e+00> : vector<2x16xf32>
    %88 = tpu.matmul %86, %87, %cst_42 {dimension_numbers = #tpu.dot_dimension_numbers<[1], [0], [0], [1], [0, 0, 1, 1], [], []>} : vector<2x256xf32>, vector<256x16xf32>, vector<2x16xf32> -> vector<2x16xf32>
    %89 = vector.extract_strided_slice %88 {offsets = [0, 0], sizes = [1, 16], strides = [1, 1]} : vector<2x16xf32> to vector<1x16xf32>
    %90 = vector.extract_strided_slice %88 {offsets = [1, 0], sizes = [1, 16], strides = [1, 1]} : vector<2x16xf32> to vector<1x16xf32>
    %91 = arith.mulf %89, %89 : vector<1x16xf32>
    %92 = arith.subf %90, %91 : vector<1x16xf32>
    %cst_43 = arith.constant 9.99999974E-6 : f32
    %93 = vector.broadcast %cst_43 : f32 to vector<1x16xf32>
    %94 = arith.addf %92, %93 : vector<1x16xf32>
    %95 = math.rsqrt %94 : vector<1x16xf32>
    %cst_44 = arith.constant 0.000000e+00 : f32
    %96 = vector.broadcast %cst_44 : f32 to vector<1x16xf32>
    %97 = arith.subf %96, %89 : vector<1x16xf32>
    %98 = arith.mulf %97, %95 : vector<1x16xf32>
    %99 = tpu.concatenate %95, %98 in 0 : vector<1x16xf32>, vector<1x16xf32> -> vector<2x16xf32>
    %c0_45 = arith.constant 0 : index
    %c0_46 = arith.constant 0 : index
    %100 = vector.load %arg9[%c0_45, %c0_46] : memref<17x256xf32, #tpu.memory_space<vmem>>, vector<16x256xf32>
    %cst_47 = arith.constant dense<0.000000e+00> : vector<2x256xf32>
    %101 = tpu.matmul %99, %100, %cst_47 {dimension_numbers = #tpu.dot_dimension_numbers<[1], [0], [0], [1], [0, 0, 1, 1], [], []>} : vector<2x16xf32>, vector<16x256xf32>, vector<2x256xf32> -> vector<2x256xf32>
    %102 = vector.extract_strided_slice %101 {offsets = [0, 0], sizes = [1, 256], strides = [1, 1]} : vector<2x256xf32> to vector<1x256xf32>
    %103 = vector.broadcast %102 : vector<1x256xf32> to vector<2x256xf32>
    %104 = arith.mulf %78, %103 : vector<2x256xf32>
    %105 = vector.extract_strided_slice %101 {offsets = [1, 0], sizes = [1, 256], strides = [1, 1]} : vector<2x256xf32> to vector<1x256xf32>
    %c16 = arith.constant 16 : index
    %c0_48 = arith.constant 0 : index
    %106 = vector.load %arg9[%c16, %c0_48] : memref<17x256xf32, #tpu.memory_space<vmem>>, vector<1x256xf32>
    %107 = arith.addf %105, %106 : vector<1x256xf32>
    %108 = vector.broadcast %107 : vector<1x256xf32> to vector<2x256xf32>
    %109 = arith.addf %104, %108 : vector<2x256xf32>
    %cst_49 = arith.constant 0.000000e+00 : f32
    %110 = vector.broadcast %cst_49 : f32 to vector<2x256xf32>
    %111 = arith.cmpf oge, %109, %110 : vector<2x256xf32>
    %cst_50 = arith.constant 0.00999999977 : f32
    %112 = vector.broadcast %cst_50 : f32 to vector<2x256xf32>
    %113 = arith.mulf %112, %109 : vector<2x256xf32>
    %114 = arith.select %111, %109, %113 : vector<2x256xi1>, vector<2x256xf32>
    %c0_51 = arith.constant 0 : index
    %c0_52 = arith.constant 0 : index
    %115 = vector.load %arg10[%c0_51, %c0_52] : memref<256x128xf32, #tpu.memory_space<vmem>>, vector<256x128xf32>
    %cst_53 = arith.constant dense<0.000000e+00> : vector<2x128xf32>
    %116 = tpu.matmul %114, %115, %cst_53 {dimension_numbers = #tpu.dot_dimension_numbers<[1], [0], [0], [1], [0, 0, 1, 1], [], []>} : vector<2x256xf32>, vector<256x128xf32>, vector<2x128xf32> -> vector<2x128xf32>
    %cst_54 = arith.constant dense<0.000000e+00> : vector<128xf32>
    %117 = vector.multi_reduction <add>, %116, %cst_54 [0] : vector<2x128xf32> to vector<128xf32>
    %118 = vector.shape_cast %117 : vector<128xf32> to vector<1x128xf32>
    %119 = arith.mulf %116, %116 : vector<2x128xf32>
    %cst_55 = arith.constant dense<0.000000e+00> : vector<128xf32>
    %120 = vector.multi_reduction <add>, %119, %cst_55 [0] : vector<2x128xf32> to vector<128xf32>
    %121 = vector.shape_cast %120 : vector<128xf32> to vector<1x128xf32>
    %122 = tpu.concatenate %118, %121 in 0 : vector<1x128xf32>, vector<1x128xf32> -> vector<2x128xf32>
    %cst_56 = arith.constant 5.000000e-01 : f32
    %123 = vector.broadcast %cst_56 : f32 to vector<2x128xf32>
    %124 = arith.mulf %122, %123 : vector<2x128xf32>
    %c0_57 = arith.constant 0 : index
    %c0_58 = arith.constant 0 : index
    %125 = vector.load %arg11[%c0_57, %c0_58] : memref<128x32xf32, #tpu.memory_space<vmem>>, vector<128x32xf32>
    %cst_59 = arith.constant dense<0.000000e+00> : vector<2x32xf32>
    %126 = tpu.matmul %124, %125, %cst_59 {dimension_numbers = #tpu.dot_dimension_numbers<[1], [0], [0], [1], [0, 0, 1, 1], [], []>} : vector<2x128xf32>, vector<128x32xf32>, vector<2x32xf32> -> vector<2x32xf32>
    %127 = vector.extract_strided_slice %126 {offsets = [0, 0], sizes = [1, 32], strides = [1, 1]} : vector<2x32xf32> to vector<1x32xf32>
    %128 = vector.extract_strided_slice %126 {offsets = [1, 0], sizes = [1, 32], strides = [1, 1]} : vector<2x32xf32> to vector<1x32xf32>
    %129 = arith.mulf %127, %127 : vector<1x32xf32>
    %130 = arith.subf %128, %129 : vector<1x32xf32>
    %cst_60 = arith.constant 9.99999974E-6 : f32
    %131 = vector.broadcast %cst_60 : f32 to vector<1x32xf32>
    %132 = arith.addf %130, %131 : vector<1x32xf32>
    %133 = math.rsqrt %132 : vector<1x32xf32>
    %cst_61 = arith.constant 0.000000e+00 : f32
    %134 = vector.broadcast %cst_61 : f32 to vector<1x32xf32>
    %135 = arith.subf %134, %127 : vector<1x32xf32>
    %136 = arith.mulf %135, %133 : vector<1x32xf32>
    %137 = tpu.concatenate %133, %136 in 0 : vector<1x32xf32>, vector<1x32xf32> -> vector<2x32xf32>
    %c0_62 = arith.constant 0 : index
    %c0_63 = arith.constant 0 : index
    %138 = vector.load %arg12[%c0_62, %c0_63] : memref<33x128xf32, #tpu.memory_space<vmem>>, vector<32x128xf32>
    %cst_64 = arith.constant dense<0.000000e+00> : vector<2x128xf32>
    %139 = tpu.matmul %137, %138, %cst_64 {dimension_numbers = #tpu.dot_dimension_numbers<[1], [0], [0], [1], [0, 0, 1, 1], [], []>} : vector<2x32xf32>, vector<32x128xf32>, vector<2x128xf32> -> vector<2x128xf32>
    %140 = vector.extract_strided_slice %139 {offsets = [0, 0], sizes = [1, 128], strides = [1, 1]} : vector<2x128xf32> to vector<1x128xf32>
    %141 = vector.broadcast %140 : vector<1x128xf32> to vector<2x128xf32>
    %142 = arith.mulf %116, %141 : vector<2x128xf32>
    %143 = vector.extract_strided_slice %139 {offsets = [1, 0], sizes = [1, 128], strides = [1, 1]} : vector<2x128xf32> to vector<1x128xf32>
    %c32 = arith.constant 32 : index
    %c0_65 = arith.constant 0 : index
    %144 = vector.load %arg12[%c32, %c0_65] : memref<33x128xf32, #tpu.memory_space<vmem>>, vector<1x128xf32>
    %145 = arith.addf %143, %144 : vector<1x128xf32>
    %146 = vector.broadcast %145 : vector<1x128xf32> to vector<2x128xf32>
    %147 = arith.addf %142, %146 : vector<2x128xf32>
    %cst_66 = arith.constant 0.000000e+00 : f32
    %148 = vector.broadcast %cst_66 : f32 to vector<2x128xf32>
    %149 = arith.cmpf oge, %147, %148 : vector<2x128xf32>
    %cst_67 = arith.constant 0.00999999977 : f32
    %150 = vector.broadcast %cst_67 : f32 to vector<2x128xf32>
    %151 = arith.mulf %150, %147 : vector<2x128xf32>
    %152 = arith.select %149, %147, %151 : vector<2x128xi1>, vector<2x128xf32>
    %c0_68 = arith.constant 0 : index
    %c0_69 = arith.constant 0 : index
    %153 = vector.load %arg13[%c0_68, %c0_69] : memref<130x64xf32, #tpu.memory_space<vmem>>, vector<128x64xf32>
    %cst_70 = arith.constant dense<0.000000e+00> : vector<2x64xf32>
    %154 = tpu.matmul %152, %153, %cst_70 {dimension_numbers = #tpu.dot_dimension_numbers<[1], [0], [0], [1], [0, 0, 1, 1], [], []>} : vector<2x128xf32>, vector<128x64xf32>, vector<2x64xf32> -> vector<2x64xf32>
    %cst_71 = arith.constant dense<0.000000e+00> : vector<64xf32>
    %155 = vector.multi_reduction <add>, %154, %cst_71 [0] : vector<2x64xf32> to vector<64xf32>
    %156 = vector.shape_cast %155 : vector<64xf32> to vector<1x64xf32>
    %cst_72 = arith.constant 5.000000e-01 : f32
    %157 = vector.broadcast %cst_72 : f32 to vector<1x64xf32>
    %158 = arith.mulf %156, %157 : vector<1x64xf32>
    %159 = arith.mulf %154, %154 : vector<2x64xf32>
    %cst_73 = arith.constant dense<0.000000e+00> : vector<64xf32>
    %160 = vector.multi_reduction <add>, %159, %cst_73 [0] : vector<2x64xf32> to vector<64xf32>
    %161 = vector.shape_cast %160 : vector<64xf32> to vector<1x64xf32>
    %cst_74 = arith.constant 5.000000e-01 : f32
    %162 = vector.broadcast %cst_74 : f32 to vector<1x64xf32>
    %163 = arith.mulf %161, %162 : vector<1x64xf32>
    %164 = arith.mulf %158, %158 : vector<1x64xf32>
    %165 = arith.subf %163, %164 : vector<1x64xf32>
    %c128 = arith.constant 128 : index
    %c0_75 = arith.constant 0 : index
    %166 = vector.load %arg13[%c128, %c0_75] : memref<130x64xf32, #tpu.memory_space<vmem>>, vector<1x64xf32>
    %cst_76 = arith.constant 9.99999974E-6 : f32
    %167 = vector.broadcast %cst_76 : f32 to vector<1x64xf32>
    %168 = arith.addf %165, %167 : vector<1x64xf32>
    %169 = math.rsqrt %168 : vector<1x64xf32>
    %170 = arith.mulf %166, %169 : vector<1x64xf32>
    %c129 = arith.constant 129 : index
    %c0_77 = arith.constant 0 : index
    %171 = vector.load %arg13[%c129, %c0_77] : memref<130x64xf32, #tpu.memory_space<vmem>>, vector<1x64xf32>
    %172 = arith.mulf %158, %170 : vector<1x64xf32>
    %173 = arith.subf %171, %172 : vector<1x64xf32>
    %174 = vector.broadcast %170 : vector<1x64xf32> to vector<2x64xf32>
    %175 = arith.mulf %154, %174 : vector<2x64xf32>
    %176 = vector.broadcast %173 : vector<1x64xf32> to vector<2x64xf32>
    %177 = arith.addf %175, %176 : vector<2x64xf32>
    %cst_78 = arith.constant 0.000000e+00 : f32
    %178 = vector.broadcast %cst_78 : f32 to vector<2x64xf32>
    %179 = arith.cmpf oge, %177, %178 : vector<2x64xf32>
    %cst_79 = arith.constant 0.00999999977 : f32
    %180 = vector.broadcast %cst_79 : f32 to vector<2x64xf32>
    %181 = arith.mulf %180, %177 : vector<2x64xf32>
    %182 = arith.select %179, %177, %181 : vector<2x64xi1>, vector<2x64xf32>
    %c0_80 = arith.constant 0 : index
    %c0_81 = arith.constant 0 : index
    %183 = vector.load %arg14[%c0_80, %c0_81] : memref<65x128xf32, #tpu.memory_space<vmem>>, vector<64x128xf32>
    %cst_82 = arith.constant dense<0.000000e+00> : vector<2x128xf32>
    %184 = tpu.matmul %182, %183, %cst_82 {dimension_numbers = #tpu.dot_dimension_numbers<[1], [0], [0], [1], [0, 0, 1, 1], [], []>} : vector<2x64xf32>, vector<64x128xf32>, vector<2x128xf32> -> vector<2x128xf32>
    %c64 = arith.constant 64 : index
    %c0_83 = arith.constant 0 : index
    %185 = vector.load %arg14[%c64, %c0_83] : memref<65x128xf32, #tpu.memory_space<vmem>>, vector<1x128xf32>
    %186 = vector.broadcast %185 : vector<1x128xf32> to vector<2x128xf32>
    %187 = arith.addf %184, %186 : vector<2x128xf32>
    %c0_84 = arith.constant 0 : index
    %c0_85 = arith.constant 0 : index
    %188 = vector.load %arg15[%c0_84, %c0_85] : memref<2x128xf32, #tpu.memory_space<vmem>>, vector<2x128xf32>
    tpu.vector_store %arg15[%c0_84, %c0_85], %187 {strides = array<i32>} : memref<2x128xf32, #tpu.memory_space<vmem>>, vector<2x128xf32>,
    return
  }
}

</mosaic_0001>

<bundles_post_ra>
// kernel: _forward_padded.1
= control target key start
LH: loop header
LB: loop body
LE: loop exit
PB: predicated region body
PF: predicated region fallthrough
CT: control target
= control target key end

     0   :  { %vm757_vm0 = vcmask 130048   ;;  %s9352_s0 = inlined_call_operand.vmem [shape: f32[2,784], index: 0, kind: input, shape index: {}]   ;;  %s9353_s1 = inlined_call_operand.vmem [shape: f32[784,784], index: 1, kind: input, shape index: {}]   ;;  %s9354_s2 = inlined_call_operand.vmem [shape: f32[784,4], index: 2, kind: input, shape index: {}]   ;;  %s9355_s3 = inlined_call_operand.vmem [shape: f32[5,784], index: 3, kind: input, shape index: {}]   ;;  %s9356_s4 = inlined_call_operand.vmem [shape: f32[784,392], index: 4, kind: input, shape index: {}]   ;;  %s9357_s5 = inlined_call_operand.vmem [shape: f32[392,8], index: 5, kind: input, shape index: {}]   ;;  %s9358_s6 = inlined_call_operand.vmem [shape: f32[9,392], index: 6, kind: input, shape index: {}]   ;;  %s9359_s7 = inlined_call_operand.vmem [shape: f32[392,256], index: 7, kind: input, shape index: {}]   ;;  %s9360_s8 = inlined_call_operand.vmem [shape: f32[256,16], index: 8, kind: input, shape index: {}]   ;;  %s9361_s9 = inlined_call_operand.vmem [shape: f32[17,256], index: 9, kind: input, shape index: {}]   ;;  %s9362_s10 = inlined_call_operand.vmem [shape: f32[256,128], index: 10, kind: input, shape index: {}]   ;;  %s9363_s11 = inlined_call_operand.vmem [shape: f32[128,32], index: 11, kind: input, shape index: {}]   ;;  %s9364_s12 = inlined_call_operand.vmem [shape: f32[33,128], index: 12, kind: input, shape index: {}]   ;;  %s9365_s13 = inlined_call_operand.vmem [shape: f32[130,64], index: 13, kind: input, shape index: {}]   ;;  %s9366_s14 = inlined_call_operand.vmem [shape: f32[65,128], index: 14, kind: input, shape index: {}]   ;;  %s9367_s15 = inlined_call_operand.hbm [shape: f32[2,128], index: 15, kind: output, shape index: {}]  }
   0x1   :  { %v158_v0 = vld [vmem:[%s9353_s1 + $0x348] sm:$0xff]  ;;  %v151_v4 = vld [vmem:[%s9353_s1 + $0x310] sm:$0xff]  ;;  %v144_v8 = vld [vmem:[%s9353_s1 + $0x2d8] sm:$0xff] }
   0x2   :  { %v270_v1 = vld [vmem:[%s9353_s1 + $0x6c8] sm:$0xff]  ;;  %760 = vmatpush.msra.mxu0 %v158_v0  ;;  %v263_v5 = vld [vmem:[%s9353_s1 + $0x690] sm:$0xff]  ;;  %v256_v9 = vld [vmem:[%s9353_s1 + $0x658] sm:$0xff] }
   0x3   :  { %v382_v2 = vld [vmem:[%s9353_s1 + $0xa48] sm:$0xff]  ;;  %780 = vmatpush.msra.mxu1 %v270_v1  ;;  %v375_v6 = vld [vmem:[%s9353_s1 + $0xa10] sm:$0xff]  ;;  %v368_v10 = vld [vmem:[%s9353_s1 + $0x9d8] sm:$0xff] }
   0x4   :  { %v494_v3 = vld [vmem:[%s9353_s1 + $0xdc8] sm:$0xff]  ;;  %800 = vmatpush.msra.mxu2 %v382_v2  ;;  %v487_v7 = vld [vmem:[%s9353_s1 + $0xd90] sm:$0xff]  ;;  %761 = vmatpush.msra.mxu0 %v151_v4  ;;  %v480_v11 = vld [vmem:[%s9353_s1 + $0xd58] sm:$0xff] }
   0x5   :  { %820 = vmatpush.msra.mxu3 %v494_v3  ;;  %781 = vmatpush.msra.mxu1 %v263_v5  ;;  %v137_v12 = vld [vmem:[%s9353_s1 + $0x2a0] sm:$0xff]  ;;  %v130_v16 = vld [vmem:[%s9353_s1 + $0x268] sm:$0xff]  ;;  %v123_v20 = vld [vmem:[%s9353_s1 + $0x230] sm:$0xff] }
   0x6   :  { %801 = vmatpush.msra.mxu2 %v375_v6  ;;  %v249_v13 = vld [vmem:[%s9353_s1 + $0x620] sm:$0xff]  ;;  %762 = vmatpush.msra.mxu0 %v144_v8  ;;  %v242_v17 = vld [vmem:[%s9353_s1 + $0x5e8] sm:$0xff]  ;;  %v235_v21 = vld [vmem:[%s9353_s1 + $0x5b0] sm:$0xff] }
   0x7   :  { %821 = vmatpush.msra.mxu3 %v487_v7  ;;  %782 = vmatpush.msra.mxu1 %v256_v9  ;;  %v361_v14 = vld [vmem:[%s9353_s1 + $0x9a0] sm:$0xff]  ;;  %v354_v18 = vld [vmem:[%s9353_s1 + $0x968] sm:$0xff]  ;;  %v347_v22 = vld [vmem:[%s9353_s1 + $0x930] sm:$0xff] }
   0x8   :  { %v473_v15 = vld [vmem:[%s9353_s1 + $0xd20] sm:$0xff]  ;;  %802 = vmatpush.msra.mxu2 %v368_v10  ;;  %763 = vmatpush.msra.mxu0 %v137_v12  ;;  %v466_v19 = vld [vmem:[%s9353_s1 + $0xce8] sm:$0xff]  ;;  %v459_v23 = vld [vmem:[%s9353_s1 + $0xcb0] sm:$0xff] }
   0x9   :  { %822 = vmatpush.msra.mxu3 %v480_v11  ;;  %783 = vmatpush.msra.mxu1 %v249_v13  ;;  %v116_v24 = vld [vmem:[%s9353_s1 + $0x1f8] sm:$0xff]  ;;  %v109_v28 = vld [vmem:[%s9353_s1 + $0x1c0] sm:$0xff]  ;;  %v102_v32 = vld [vmem:[%s9353_s1 + $0x188] sm:$0xff] }
   0xa   :  { %803 = vmatpush.msra.mxu2 %v361_v14  ;;  %764 = vmatpush.msra.mxu0 %v130_v16  ;;  %v228_v25 = vld [vmem:[%s9353_s1 + $0x578] sm:$0xff]  ;;  %v221_v29 = vld [vmem:[%s9353_s1 + $0x540] sm:$0xff]  ;;  %v214_v33 = vld [vmem:[%s9353_s1 + $0x508] sm:$0xff] }
   0xb   :  { %823 = vmatpush.msra.mxu3 %v473_v15  ;;  %784 = vmatpush.msra.mxu1 %v242_v17  ;;  %v340_v26 = vld [vmem:[%s9353_s1 + $0x8f8] sm:$0xff]  ;;  %v333_v30 = vld [vmem:[%s9353_s1 + $0x8c0] sm:$0xff]  ;;  %v326_v34 = vld [vmem:[%s9353_s1 + $0x888] sm:$0xff] }
   0xc   :  { %804 = vmatpush.msra.mxu2 %v354_v18  ;;  %765 = vmatpush.msra.mxu0 %v123_v20  ;;  %v452_v27 = vld [vmem:[%s9353_s1 + $0xc78] sm:$0xff]  ;;  %v445_v31 = vld [vmem:[%s9353_s1 + $0xc40] sm:$0xff]  ;;  %v438_v35 = vld [vmem:[%s9353_s1 + $0xc08] sm:$0xff] }
   0xd   :  { %824 = vmatpush.msra.mxu3 %v466_v19  ;;  %785 = vmatpush.msra.mxu1 %v235_v21  ;;  %v95_v36 = vld [vmem:[%s9353_s1 + $0x150] sm:$0xff]  ;;  %v88_v40 = vld [vmem:[%s9353_s1 + $0x118] sm:$0xff]  ;;  %v81_v44 = vld [vmem:[%s9353_s1 + $0xe0] sm:$0xff] }
   0xe   :  { %805 = vmatpush.msra.mxu2 %v347_v22  ;;  %766 = vmatpush.msra.mxu0 %v116_v24  ;;  %v207_v37 = vld [vmem:[%s9353_s1 + $0x4d0] sm:$0xff]  ;;  %v200_v41 = vld [vmem:[%s9353_s1 + $0x498] sm:$0xff]  ;;  %v193_v45 = vld [vmem:[%s9353_s1 + $0x460] sm:$0xff] }
   0xf   :  { %825 = vmatpush.msra.mxu3 %v459_v23  ;;  %786 = vmatpush.msra.mxu1 %v228_v25  ;;  %v319_v38 = vld [vmem:[%s9353_s1 + $0x850] sm:$0xff]  ;;  %v312_v42 = vld [vmem:[%s9353_s1 + $0x818] sm:$0xff]  ;;  %v305_v46 = vld [vmem:[%s9353_s1 + $0x7e0] sm:$0xff] }
  0x10   :  { %806 = vmatpush.msra.mxu2 %v340_v26  ;;  %767 = vmatpush.msra.mxu0 %v109_v28  ;;  %v431_v39 = vld [vmem:[%s9353_s1 + $0xbd0] sm:$0xff]  ;;  %v424_v43 = vld [vmem:[%s9353_s1 + $0xb98] sm:$0xff]  ;;  %v417_v47 = vld [vmem:[%s9353_s1 + $0xb60] sm:$0xff] }
  0x11   :  { %826 = vmatpush.msra.mxu3 %v452_v27  ;;  %787 = vmatpush.msra.mxu1 %v221_v29  ;;  %v74_v48 = vld [vmem:[%s9353_s1 + $0xa8] sm:$0xff]  ;;  %v67_v52 = vld [vmem:[%s9353_s1 + $0x70] sm:$0xff]  ;;  %v51_v54 = vld [vmem:[%s9352_s0] sm:$0xff] }
  0x12   :  { %807 = vmatpush.msra.mxu2 %v333_v30  ;;  %768 = vmatpush.msra.mxu0 %v102_v32  ;;  %v186_v49 = vld [vmem:[%s9353_s1 + $0x428] sm:$0xff]  ;;  %v179_v53 = vld [vmem:[%s9353_s1 + $0x3f0] sm:$0xff]  ;;  %741 = vst [vmem:[#allocation1] ss:$4 sm:$0xff] %v51_v54  ;;  %v60_v57 = vld [vmem:[%s9353_s1 + $0x38] sm:$0xff] }
  0x13   :  { %827 = vmatpush.msra.mxu3 %v445_v31  ;;  %788 = vmatpush.msra.mxu1 %v214_v33  ;;  %v298_v50 = vld [vmem:[%s9353_s1 + $0x7a8] sm:$0xff]  ;;  %v291_v55 = vld [vmem:[%s9353_s1 + $0x770] sm:$0xff]  ;;  %v172_v58 = vld [vmem:[%s9353_s1 + $0x3b8] sm:$0xff] }
  0x14   :  { %808 = vmatpush.msra.mxu2 %v326_v34  ;;  %769 = vmatpush.msra.mxu0 %v95_v36  ;;  %v410_v51 = vld [vmem:[%s9353_s1 + $0xb28] sm:$0xff]  ;;  %v403_v56 = vld [vmem:[%s9353_s1 + $0xaf0] sm:$0xff]  ;;  %v284_v59 = vld [vmem:[%s9353_s1 + $0x738] sm:$0xff] }
  0x15   :  { %828 = vmatpush.msra.mxu3 %v438_v35  ;;  %789 = vmatpush.msra.mxu1 %v207_v37  ;;  %v396_v60 = vld [vmem:[%s9353_s1 + $0xab8] sm:$0xff]  ;;  %v53_v61 = vld [vmem:[%s9353_s1] sm:$0xff]  ;;  %v606_v1 = vld [vmem:[%s9353_s1 + $0x1148] sm:$0xff] }
  0x16   :  { %809 = vmatpush.msra.mxu2 %v319_v38  ;;  %770 = vmatpush.msra.mxu0 %v88_v40  ;;  %v165_v62 = vld [vmem:[%s9353_s1 + $0x380] sm:$0xff]  ;;  %v718_v2 = vld [vmem:[%s9353_s1 + $0x14c8] sm:$0xff]  ;;  %v732_v3 = vld [vmem:[%s9353_s1 + $0x1538] sm:$0xff] }
  0x17   :  { %829 = vmatpush.msra.mxu3 %v431_v39  ;;  %790 = vmatpush.msra.mxu1 %v200_v41  ;;  %v277_v63 = vld [vmem:[%s9353_s1 + $0x700] sm:$0xff]  ;;  %v159_v4 = vld [vmem:[%s9353_s1 + $0x350] sm:$0xff]  ;;  %v152_v8 = vld [vmem:[%s9353_s1 + $0x318] sm:$0xff] }
  0x18   :  { %810 = vmatpush.msra.mxu2 %v312_v42  ;;  %771 = vmatpush.msra.mxu0 %v81_v44  ;;  %v389_v0 = vld [vmem:[%s9353_s1 + $0xa80] sm:$0xff]  ;;  %v599_v5 = vld [vmem:[%s9353_s1 + $0x1110] sm:$0xff]  ;;  %v592_v10 = vld [vmem:[%s9353_s1 + $0x10d8] sm:$0xff] }
  0x19   :  { %830 = vmatpush.msra.mxu3 %v424_v43  ;;  %791 = vmatpush.msra.mxu1 %v193_v45  ;;  %v711_v6 = vld [vmem:[%s9353_s1 + $0x1490] sm:$0xff]  ;;  %v725_v7 = vld [vmem:[%s9353_s1 + $0x1500] sm:$0xff]  ;;  %v704_v12 = vld [vmem:[%s9353_s1 + $0x1458] sm:$0xff] }
  0x1a   :  { %811 = vmatpush.msra.mxu2 %v305_v46  ;;  %772 = vmatpush.msra.mxu0 %v74_v48  ;;  %v4863_v9 = vld.sshfl [vmem:[#allocation1 + $0x10] sm:$0xff pattern:$0x73625140]  ;;  %v145_v13 = vld [vmem:[%s9353_s1 + $0x2e0] sm:$0xff]  ;;  %v264_v15 = vld [vmem:[%s9353_s1 + $0x698] sm:$0xff] }
  0x1b   :  { %831 = vmatpush.msra.mxu3 %v417_v47  ;;  %792 = vmatpush.msra.mxu1 %v186_v49  ;;  %v271_v11 = vld [vmem:[%s9353_s1 + $0x6d0] sm:$0xff]  ;;  %v585_v14 = vld [vmem:[%s9353_s1 + $0x10a0] sm:$0xff]  ;;  %v138_v17 = vld [vmem:[%s9353_s1 + $0x2a8] sm:$0xff] }
  0x1c   :  { %812 = vmatpush.msra.mxu2 %v298_v50  ;;  %773 = vmatpush.msra.mxu0 %v67_v52  ;;  %v697_v16 = vld [vmem:[%s9353_s1 + $0x1420] sm:$0xff]  ;;  %v578_v18 = vld [vmem:[%s9353_s1 + $0x1068] sm:$0xff]  ;;  %v131_v21 = vld [vmem:[%s9353_s1 + $0x270] sm:$0xff] }
  0x1d   :  { %832 = vmatpush.msra.mxu3 %v410_v51  ;;  %793 = vmatpush.msra.mxu1 %v179_v53  ;;  %v257_v19 = vld [vmem:[%s9353_s1 + $0x660] sm:$0xff]  ;;  %v690_v20 = vld [vmem:[%s9353_s1 + $0x13e8] sm:$0xff]  ;;  %v571_v22 = vld [vmem:[%s9353_s1 + $0x1030] sm:$0xff] }
  0x1e   :  { %813 = vmatpush.msra.mxu2 %v291_v55  ;;  %774 = vmatpush.msra.mxu0 %v60_v57  ;;  %v250_v23 = vld [vmem:[%s9353_s1 + $0x628] sm:$0xff]  ;;  %v683_v24 = vld [vmem:[%s9353_s1 + $0x13b0] sm:$0xff]  ;;  %v124_v25 = vld [vmem:[%s9353_s1 + $0x238] sm:$0xff] }
  0x1f   :  { %833 = vmatpush.msra.mxu3 %v403_v56  ;;  %794 = vmatpush.msra.mxu1 %v172_v58  ;;  %v564_v26 = vld [vmem:[%s9353_s1 + $0xff8] sm:$0xff]  ;;  %v243_v27 = vld [vmem:[%s9353_s1 + $0x5f0] sm:$0xff]  ;;  %v52_v29 = vld [vmem:[%s9352_s0 + $0x8] sm:$0x3f] }
  0x20   :  { %814 = vmatpush.msra.mxu2 %v284_v59  ;;  %775 = vmatpush.msra.mxu0 %v53_v61  ;;  %v676_v28 = vld [vmem:[%s9353_s1 + $0x1378] sm:$0xff]  ;;  %v117_v30 = vld [vmem:[%s9353_s1 + $0x200] sm:$0xff]  ;;  %743 = vst [vmem:[#allocation1 + $0x20] ss:$4 sm:$0xff] %v52_v29  ;;  %v110_v34 = vld [vmem:[%s9353_s1 + $0x1c8] sm:$0xff] }
  0x21   :  { %834 = vmatpush.msra.mxu3 %v396_v60  ;;  %795 = vmatpush.msra.mxu1 %v165_v62  ;;  %v557_v31 = vld [vmem:[%s9353_s1 + $0xfc0] sm:$0xff]  ;;  %v236_v32 = vld [vmem:[%s9353_s1 + $0x5b8] sm:$0xff]  ;;  %v550_v35 = vld [vmem:[%s9353_s1 + $0xf88] sm:$0xff] }
  0x22   :  { %815 = vmatpush.msra.mxu2 %v277_v63  ;;  %840 = vmatpush.msrb.mxu0 %v606_v1  ;;  %v669_v33 = vld [vmem:[%s9353_s1 + $0x1340] sm:$0xff]  ;;  %v662_v37 = vld [vmem:[%s9353_s1 + $0x1308] sm:$0xff]  ;;  %v103_v38 = vld [vmem:[%s9353_s1 + $0x190] sm:$0xff] }
  0x23   :  { %835 = vmatpush.msra.mxu3 %v389_v0  ;;  %860 = vmatpush.msrb.mxu1 %v718_v2  ;;  %v229_v36 = vld [vmem:[%s9353_s1 + $0x580] sm:$0xff]  ;;  %v543_v39 = vld [vmem:[%s9353_s1 + $0xf50] sm:$0xff]  ;;  %v222_v40 = vld [vmem:[%s9353_s1 + $0x548] sm:$0xff] }
  0x24   :  { %894 = vmatpush.msrb.mxu2 %v732_v3  ;;  %841 = vmatpush.msrb.mxu0 %v599_v5  ;;  %v655_v41 = vld [vmem:[%s9353_s1 + $0x12d0] sm:$0xff]  ;;  %v96_v42 = vld [vmem:[%s9353_s1 + $0x158] sm:$0xff]  ;;  %v89_v46 = vld [vmem:[%s9353_s1 + $0x120] sm:$0xff] }
  0x25   :  { %900 = vmatpush.msrb.mxu3 %v159_v4  ;;  %861 = vmatpush.msrb.mxu1 %v711_v6  ;;  %v536_v43 = vld [vmem:[%s9353_s1 + $0xf18] sm:$0xff]  ;;  %v215_v44 = vld [vmem:[%s9353_s1 + $0x510] sm:$0xff]  ;;  %v529_v47 = vld [vmem:[%s9353_s1 + $0xee0] sm:$0xff] }
  0x26   :  { %895 = vmatpush.msrb.mxu2 %v725_v7  ;;  %842 = vmatpush.msrb.mxu0 %v592_v10  ;;  %v648_v45 = vld [vmem:[%s9353_s1 + $0x1298] sm:$0xff]  ;;  %v641_v49 = vld [vmem:[%s9353_s1 + $0x1260] sm:$0xff]  ;;  %v82_v50 = vld [vmem:[%s9353_s1 + $0xe8] sm:$0xff] }
  0x27   :  { %901 = vmatpush.msrb.mxu3 %v152_v8  ;;  %816 = vmatmul.f32.vlgmr.msra.gmra.mxu2 %v4863_v9  ;;  %v208_v48 = vld [vmem:[%s9353_s1 + $0x4d8] sm:$0xff]  ;;  %v4989_v51 = vld.sshfl [vmem:[#allocation1] sm:$0xff pattern:$0x73625140]  ;;  %v522_v54 = vld [vmem:[%s9353_s1 + $0xea8] sm:$0xff] }
  0x28   :  { %920 = vmatpush.msra.mxu2 %v271_v11  ;;  %862 = vmatpush.msrb.mxu1 %v704_v12  ;;  %v4991_v52 = vld.sshfl [vmem:[#allocation1 + $0x18] sm:$0xff pattern:$0x73625140]  ;;  %v201_v53 = vld [vmem:[%s9353_s1 + $0x4a0] sm:$0xff]  ;;  %v634_v55 = vld [vmem:[%s9353_s1 + $0x1228] sm:$0xff] }
  0x29   :  { %902 = vmatpush.msrb.mxu3 %v145_v13  ;;  %843 = vmatpush.msrb.mxu0 %v585_v14  ;;  %v75_v56 = vld [vmem:[%s9353_s1 + $0xb0] sm:$0xff]  ;;  %v5006_v57 = vld.sshfl [vmem:[#allocation1 + $0x8] sm:$0xff pattern:$0x73625140]  ;;  %v68_v61 = vld [vmem:[%s9353_s1 + $0x78] sm:$0xff] }
  0x2a   :  { %921 = vmatpush.msra.mxu2 %v264_v15  ;;  %863 = vmatpush.msrb.mxu1 %v697_v16  ;;  %v194_v58 = vld [vmem:[%s9353_s1 + $0x468] sm:$0xff]  ;;  %v515_v59 = vld [vmem:[%s9353_s1 + $0xe70] sm:$0xff]  ;;  %v508_v63 = vld [vmem:[%s9353_s1 + $0xe38] sm:$0xff] }
  0x2b   :  { %903 = vmatpush.msrb.mxu3 %v138_v17  ;;  %844 = vmatpush.msrb.mxu0 %v578_v18  ;;  %v627_v60 = vld [vmem:[%s9353_s1 + $0x11f0] sm:$0xff]  ;;  %v620_v0 = vld [vmem:[%s9353_s1 + $0x11b8] sm:$0xff]  ;;  %v61_v1 = vld [vmem:[%s9353_s1 + $0x40] sm:$0xff] }
  0x2c   :  { %922 = vmatpush.msra.mxu2 %v257_v19  ;;  %864 = vmatpush.msrb.mxu1 %v690_v20  ;;  %v187_v62 = vld [vmem:[%s9353_s1 + $0x430] sm:$0xff]  ;;  %v501_v3 = vld [vmem:[%s9353_s1 + $0xe00] sm:$0xff]  ;;  %v180_v4 = vld [vmem:[%s9353_s1 + $0x3f8] sm:$0xff] }
  0x2d   :  { %904 = vmatpush.msrb.mxu3 %v131_v21  ;;  %845 = vmatpush.msrb.mxu0 %v571_v22  ;;  %v5034_v2 = vld.sshfl [vmem:[#allocation1 + $0x30] sm:$0xff pattern:$0x73625140]  ;;  %v613_v5 = vld [vmem:[%s9353_s1 + $0x1180] sm:$0xff]  ;;  %v54_v6 = vld [vmem:[%s9353_s1 + $0x8] sm:$0xff] }
  0x2e   :  { %923 = vmatpush.msra.mxu2 %v250_v23  ;;  %865 = vmatpush.msrb.mxu1 %v683_v24  ;;  %v5048_v7 = vld.sshfl [vmem:[#allocation1 + $0x20] sm:$0xff pattern:$0x73625140]  ;;  %v383_v10 = vld [vmem:[%s9353_s1 + $0xa50] sm:$0xff] }
  0x2f   :  { %905 = vmatpush.msrb.mxu3 %v124_v25  ;;  %846 = vmatpush.msrb.mxu0 %v564_v26  ;;  %v173_v8 = vld [vmem:[%s9353_s1 + $0x3c0] sm:$0xff] }
  0x30   :  { %924 = vmatpush.msra.mxu2 %v243_v27  ;;  %866 = vmatpush.msrb.mxu1 %v676_v28 }
  0x31   :  { %906 = vmatpush.msrb.mxu3 %v117_v30  ;;  %847 = vmatpush.msrb.mxu0 %v557_v31 }
  0x32   :  { %925 = vmatpush.msra.mxu2 %v236_v32  ;;  %867 = vmatpush.msrb.mxu1 %v669_v33 }
  0x33   :  { %907 = vmatpush.msrb.mxu3 %v110_v34  ;;  %848 = vmatpush.msrb.mxu0 %v550_v35 }
  0x34   :  { %926 = vmatpush.msra.mxu2 %v229_v36  ;;  %868 = vmatpush.msrb.mxu1 %v662_v37 }
  0x35   :  { %908 = vmatpush.msrb.mxu3 %v103_v38  ;;  %849 = vmatpush.msrb.mxu0 %v543_v39 }
  0x36   :  { %927 = vmatpush.msra.mxu2 %v222_v40  ;;  %869 = vmatpush.msrb.mxu1 %v655_v41 }
  0x37   :  { %909 = vmatpush.msrb.mxu3 %v96_v42  ;;  %850 = vmatpush.msrb.mxu0 %v536_v43 }
  0x38   :  { %928 = vmatpush.msra.mxu2 %v215_v44  ;;  %870 = vmatpush.msrb.mxu1 %v648_v45 }
  0x39   :  { %910 = vmatpush.msrb.mxu3 %v89_v46  ;;  %851 = vmatpush.msrb.mxu0 %v529_v47 }
  0x3a   :  { %929 = vmatpush.msra.mxu2 %v208_v48  ;;  %871 = vmatpush.msrb.mxu1 %v641_v49 }
  0x3b   :  { %911 = vmatpush.msrb.mxu3 %v82_v50  ;;  %776 = vmatmul.f32.vlgmr.msra.gmra.mxu0 %v4989_v51 }
  0x3c   :  { %836 = vmatmul.f32.vlgmr.msra.gmra.mxu3 %v4991_v52  ;;  %930 = vmatpush.msra.mxu2 %v201_v53 }
  0x3d   :  { %852 = vmatpush.msrb.mxu0 %v522_v54  ;;  %872 = vmatpush.msrb.mxu1 %v634_v55 }
  0x3e   :  { %912 = vmatpush.msrb.mxu3 %v75_v56  ;;  %796 = vmatmul.f32.vlgmr.msra.gmra.mxu1 %v5006_v57 }
  0x3f   :  { %931 = vmatpush.msra.mxu2 %v194_v58  ;;  %853 = vmatpush.msrb.mxu0 %v515_v59 }
  0x40   :  { %873 = vmatpush.msrb.mxu1 %v627_v60  ;;  %913 = vmatpush.msrb.mxu3 %v68_v61 }
  0x41   :  { %932 = vmatpush.msra.mxu2 %v187_v62  ;;  %854 = vmatpush.msrb.mxu0 %v508_v63 }
  0x42   :  { %874 = vmatpush.msrb.mxu1 %v620_v0  ;;  %914 = vmatpush.msrb.mxu3 %v61_v1 }
  0x43   :  { %4470 = vmatmul.msk.f32.vlgmr.msrb.gmra.mxu2 %vm757_vm0, %v5034_v2  ;;  %855 = vmatpush.msrb.mxu0 %v501_v3 }
  0x44   :  { %20 = vsyncpa [#allocation3], 0  ;;  %933 = vmatpush.msra.mxu2 %v180_v4  ;;  %875 = vmatpush.msrb.mxu1 %v613_v5  ;;  %v495_v11 = vld [vmem:[%s9353_s1 + $0xdd0] sm:$0xff]  ;;  %v5065_v13 = vld.sshfl [vmem:[#allocation1 + $0x28] sm:$0xff pattern:$0x73625140] }
  0x45   :  { %v607_v12 = vld [vmem:[%s9353_s1 + $0x1150] sm:$0xff]  ;;  %915 = vmatpush.msrb.mxu3 %v54_v6  ;;  %856 = vmatmul.f32.vlgmr.msrb.gmra.mxu0 %v5048_v7  ;;  %v166_v14 = vld [vmem:[%s9353_s1 + $0x388] sm:$0xff]  ;;  %v376_v15 = vld [vmem:[%s9353_s1 + $0xa18] sm:$0xff]  ;;  %vm1740_vm1 = vcmask 1041408   ;;  %vm1847_vm2 = vcmask 1040384   ;;  %vm1783_vm3 = vcmask 123904  }
  0x46   :  { %934 = vmatpush.msra.mxu2 %v173_v8  ;;  %940 = vmatpush.msra.mxu0 %v383_v10  ;;  %v488_v16 = vld [vmem:[%s9353_s1 + $0xd98] sm:$0xff]  ;;  %v719_v18 = vld [vmem:[%s9353_s1 + $0x14d0] sm:$0xff]  ;;  %v369_v19 = vld [vmem:[%s9353_s1 + $0x9e0] sm:$0xff]  ;;  %vm2139_vm4 = vcmask 1043456   ;;  %vm2135_vm8 = vcmask 31744   ;;  %s4563_s24 = smov [#allocation2]  }
  0x47   :  { %960 = vmatpush.msra.mxu1 %v495_v11  ;;  %980 = vmatpush.msra.mxu3 %v607_v12  ;;  %v600_v17 = vld [vmem:[%s9353_s1 + $0x1118] sm:$0xff]  ;;  %v481_v20 = vld [vmem:[%s9353_s1 + $0xd60] sm:$0xff]  ;;  %v362_v23 = vld [vmem:[%s9353_s1 + $0x9a8] sm:$0xff]  ;;  %s4459_s25 = sshll.u32 %s4563_s24, 4  ;;  %s4460_s25 = int_to_ptr.vmem [resolvable:$true] %s4459_s25 }
  0x48   :  { %876 = vmatmul.f32.vlgmr.msrb.gmra.mxu1 %v5065_v13  ;;  %935 = vmatpush.msra.mxu2 %v166_v14  ;;  %v593_v21 = vld [vmem:[%s9353_s1 + $0x10e0] sm:$0xff]  ;;  %v712_v22 = vld [vmem:[%s9353_s1 + $0x1498] sm:$0xff]  ;;  %v474_v24 = vld [vmem:[%s9353_s1 + $0xd28] sm:$0xff] }
  0x49   :  { %941 = vmatpush.msra.mxu0 %v376_v15  ;;  %961 = vmatpush.msra.mxu1 %v488_v16  ;;  %v586_v25 = vld [vmem:[%s9353_s1 + $0x10a8] sm:$0xff]  ;;  %v705_v26 = vld [vmem:[%s9353_s1 + $0x1460] sm:$0xff]  ;;  %v355_v27 = vld [vmem:[%s9353_s1 + $0x970] sm:$0xff] }
  0x4a   :  { %981 = vmatpush.msra.mxu3 %v600_v17  ;;  %1000 = vmatpush.msrb.mxu2 %v719_v18  ;;  %v467_v28 = vld [vmem:[%s9353_s1 + $0xcf0] sm:$0xff]  ;;  %v698_v30 = vld [vmem:[%s9353_s1 + $0x1428] sm:$0xff]  ;;  %v348_v31 = vld [vmem:[%s9353_s1 + $0x938] sm:$0xff] }
  0x4b   :  { %942 = vmatpush.msra.mxu0 %v369_v19  ;;  %962 = vmatpush.msra.mxu1 %v481_v20  ;;  %v579_v29 = vld [vmem:[%s9353_s1 + $0x1070] sm:$0xff]  ;;  %v460_v32 = vld [vmem:[%s9353_s1 + $0xcb8] sm:$0xff]  ;;  %v341_v35 = vld [vmem:[%s9353_s1 + $0x900] sm:$0xff] }
  0x4c   :  { %982 = vmatpush.msra.mxu3 %v593_v21  ;;  %1001 = vmatpush.msrb.mxu2 %v712_v22  ;;  %v572_v33 = vld [vmem:[%s9353_s1 + $0x1038] sm:$0xff]  ;;  %v691_v34 = vld [vmem:[%s9353_s1 + $0x13f0] sm:$0xff]  ;;  %v453_v36 = vld [vmem:[%s9353_s1 + $0xc80] sm:$0xff] }
  0x4d   :  { %943 = vmatpush.msra.mxu0 %v362_v23  ;;  %963 = vmatpush.msra.mxu1 %v474_v24  ;;  %v565_v37 = vld [vmem:[%s9353_s1 + $0x1000] sm:$0xff]  ;;  %v684_v38 = vld [vmem:[%s9353_s1 + $0x13b8] sm:$0xff]  ;;  %v334_v39 = vld [vmem:[%s9353_s1 + $0x8c8] sm:$0xff] }
  0x4e   :  { %983 = vmatpush.msra.mxu3 %v586_v25  ;;  %1002 = vmatpush.msrb.mxu2 %v705_v26  ;;  %v446_v40 = vld [vmem:[%s9353_s1 + $0xc48] sm:$0xff]  ;;  %v677_v42 = vld [vmem:[%s9353_s1 + $0x1380] sm:$0xff]  ;;  %v327_v43 = vld [vmem:[%s9353_s1 + $0x890] sm:$0xff] }
  0x4f   :  { %944 = vmatpush.msra.mxu0 %v355_v27  ;;  %964 = vmatpush.msra.mxu1 %v467_v28  ;;  %v558_v41 = vld [vmem:[%s9353_s1 + $0xfc8] sm:$0xff]  ;;  %v439_v44 = vld [vmem:[%s9353_s1 + $0xc10] sm:$0xff]  ;;  %v320_v47 = vld [vmem:[%s9353_s1 + $0x858] sm:$0xff] }
  0x50   :  { %984 = vmatpush.msra.mxu3 %v579_v29  ;;  %1003 = vmatpush.msrb.mxu2 %v698_v30  ;;  %v551_v45 = vld [vmem:[%s9353_s1 + $0xf90] sm:$0xff]  ;;  %v670_v46 = vld [vmem:[%s9353_s1 + $0x1348] sm:$0xff]  ;;  %v432_v48 = vld [vmem:[%s9353_s1 + $0xbd8] sm:$0xff] }
  0x51   :  { %945 = vmatpush.msra.mxu0 %v348_v31  ;;  %965 = vmatpush.msra.mxu1 %v460_v32  ;;  %v544_v49 = vld [vmem:[%s9353_s1 + $0xf58] sm:$0xff]  ;;  %v663_v50 = vld [vmem:[%s9353_s1 + $0x1310] sm:$0xff]  ;;  %v313_v53 = vld [vmem:[%s9353_s1 + $0x820] sm:$0xff] }
  0x52   :  { %985 = vmatpush.msra.mxu3 %v572_v33  ;;  %1004 = vmatpush.msrb.mxu2 %v691_v34  ;;  %v425_v54 = vld [vmem:[%s9353_s1 + $0xba0] sm:$0xff]  ;;  %v656_v56 = vld [vmem:[%s9353_s1 + $0x12d8] sm:$0xff]  ;;  %v306_v58 = vld [vmem:[%s9353_s1 + $0x7e8] sm:$0xff] }
  0x53   :  { %946 = vmatpush.msra.mxu0 %v341_v35  ;;  %966 = vmatpush.msra.mxu1 %v453_v36  ;;  %v537_v55 = vld [vmem:[%s9353_s1 + $0xf20] sm:$0xff]  ;;  %v418_v59 = vld [vmem:[%s9353_s1 + $0xb68] sm:$0xff]  ;;  %v299_v62 = vld [vmem:[%s9353_s1 + $0x7b0] sm:$0xff] }
  0x54   :  { %986 = vmatpush.msra.mxu3 %v565_v37  ;;  %1005 = vmatpush.msrb.mxu2 %v684_v38  ;;  %v530_v60 = vld [vmem:[%s9353_s1 + $0xee8] sm:$0xff]  ;;  %v649_v61 = vld [vmem:[%s9353_s1 + $0x12a0] sm:$0xff]  ;;  %v411_v63 = vld [vmem:[%s9353_s1 + $0xb30] sm:$0xff] }
  0x55   :  { %947 = vmatpush.msra.mxu0 %v334_v39  ;;  %967 = vmatpush.msra.mxu1 %v446_v40  ;;  %v523_v0 = vld [vmem:[%s9353_s1 + $0xeb0] sm:$0xff]  ;;  %v292_v1 = vld [vmem:[%s9353_s1 + $0x778] sm:$0xff]  ;;  %v642_v3 = vld [vmem:[%s9353_s1 + $0x1268] sm:$0xff] }
  0x56   :  { %987 = vmatpush.msra.mxu3 %v558_v41  ;;  %1006 = vmatpush.msrb.mxu2 %v677_v42  ;;  %v404_v4 = vld [vmem:[%s9353_s1 + $0xaf8] sm:$0xff]  ;;  %v285_v6 = vld [vmem:[%s9353_s1 + $0x740] sm:$0xff]  ;;  %v635_v8 = vld [vmem:[%s9353_s1 + $0x1230] sm:$0xff] }
  0x57   :  { %948 = vmatpush.msra.mxu0 %v327_v43  ;;  %968 = vmatpush.msra.mxu1 %v439_v44  ;;  %v516_v5 = vld [vmem:[%s9353_s1 + $0xe78] sm:$0xff]  ;;  %v397_v10 = vld [vmem:[%s9353_s1 + $0xac0] sm:$0xff]  ;;  %v278_v12 = vld [vmem:[%s9353_s1 + $0x708] sm:$0xff] }
  0x58   :  { %988 = vmatpush.msra.mxu3 %v551_v45  ;;  %1007 = vmatpush.msrb.mxu2 %v670_v46  ;;  %v509_v11 = vld [vmem:[%s9353_s1 + $0xe40] sm:$0xff]  ;;  %v628_v14 = vld [vmem:[%s9353_s1 + $0x11f8] sm:$0xff]  ;;  %v390_v15 = vld [vmem:[%s9353_s1 + $0xa88] sm:$0xff] }
  0x59   :  { %949 = vmatpush.msra.mxu0 %v320_v47  ;;  %969 = vmatpush.msra.mxu1 %v432_v48  ;;  %v502_v16 = vld [vmem:[%s9353_s1 + $0xe08] sm:$0xff]  ;;  %v733_v17 = vld [vmem:[%s9353_s1 + $0x1540] sm:$0xff]  ;;  %v272_v19 = vld [vmem:[%s9353_s1 + $0x6d8] sm:$0xff] }
  0x5a   :  { %989 = vmatpush.msra.mxu3 %v544_v49  ;;  %1008 = vmatpush.msrb.mxu2 %v663_v50  ;;  %v621_v18 = vld [vmem:[%s9353_s1 + $0x11c0] sm:$0xff]  ;;  %v384_v20 = vld [vmem:[%s9353_s1 + $0xa58] sm:$0xff]  ;;  %v614_v21 = vld [vmem:[%s9353_s1 + $0x1188] sm:$0xff] }
  0x5b   :  { %950 = vmatpush.msra.mxu0 %v313_v53  ;;  %970 = vmatpush.msra.mxu1 %v425_v54  ;;  %v726_v22 = vld [vmem:[%s9353_s1 + $0x1508] sm:$0xff]  ;;  %v265_v23 = vld [vmem:[%s9353_s1 + $0x6a0] sm:$0xff]  ;;  %v160_v25 = vld [vmem:[%s9353_s1 + $0x358] sm:$0xff] }
  0x5c   :  { %990 = vmatpush.msra.mxu3 %v537_v55  ;;  %1009 = vmatpush.msrb.mxu2 %v656_v56  ;;  %v377_v24 = vld [vmem:[%s9353_s1 + $0xa20] sm:$0xff]  ;;  %v496_v26 = vld [vmem:[%s9353_s1 + $0xdd8] sm:$0xff]  ;;  %v258_v27 = vld [vmem:[%s9353_s1 + $0x668] sm:$0xff] }
  0x5d   :  { %951 = vmatpush.msra.mxu0 %v306_v58  ;;  %971 = vmatpush.msra.mxu1 %v418_v59  ;;  %v370_v28 = vld [vmem:[%s9353_s1 + $0x9e8] sm:$0xff]  ;;  %v153_v29 = vld [vmem:[%s9353_s1 + $0x320] sm:$0xff]  ;;  %v251_v31 = vld [vmem:[%s9353_s1 + $0x630] sm:$0xff] }
  0x5e   :  { %991 = vmatpush.msra.mxu3 %v530_v60  ;;  %1010 = vmatpush.msrb.mxu2 %v649_v61  ;;  %v489_v30 = vld [vmem:[%s9353_s1 + $0xda0] sm:$0xff]  ;;  %v363_v32 = vld [vmem:[%s9353_s1 + $0x9b0] sm:$0xff]  ;;  %v146_v33 = vld [vmem:[%s9353_s1 + $0x2e8] sm:$0xff] }
  0x5f   :  { %916 = vmatmul.f32.vlgmr.msrb.gmra.mxu3 %v4989_v51  ;;  %952 = vmatpush.msra.mxu0 %v299_v62  ;;  %v482_v34 = vld [vmem:[%s9353_s1 + $0xd68] sm:$0xff]  ;;  %v244_v35 = vld [vmem:[%s9353_s1 + $0x5f8] sm:$0xff]  ;;  %v139_v37 = vld [vmem:[%s9353_s1 + $0x2b0] sm:$0xff] }
  0x60   :  { %972 = vmatpush.msra.mxu1 %v411_v63  ;;  %992 = vmatpush.msra.mxu3 %v523_v0  ;;  %v356_v36 = vld [vmem:[%s9353_s1 + $0x978] sm:$0xff]  ;;  %v475_v38 = vld [vmem:[%s9353_s1 + $0xd30] sm:$0xff]  ;;  %v237_v39 = vld [vmem:[%s9353_s1 + $0x5c0] sm:$0xff] }
  0x61   :  { %936 = vmatmul.f32.vlgmr.msra.gmra.mxu2 %v5006_v57  ;;  %953 = vmatpush.msra.mxu0 %v292_v1  ;;  %v349_v40 = vld [vmem:[%s9353_s1 + $0x940] sm:$0xff]  ;;  %v132_v41 = vld [vmem:[%s9353_s1 + $0x278] sm:$0xff]  ;;  %v230_v43 = vld [vmem:[%s9353_s1 + $0x588] sm:$0xff] }
  0x62   :  { %1011 = vmatpush.msrb.mxu2 %v642_v3  ;;  %973 = vmatpush.msra.mxu1 %v404_v4  ;;  %v468_v42 = vld [vmem:[%s9353_s1 + $0xcf8] sm:$0xff]  ;;  %v342_v44 = vld [vmem:[%s9353_s1 + $0x908] sm:$0xff]  ;;  %v125_v45 = vld [vmem:[%s9353_s1 + $0x240] sm:$0xff] }
  0x63   :  { %993 = vmatpush.msra.mxu3 %v516_v5  ;;  %954 = vmatpush.msra.mxu0 %v285_v6  ;;  %v461_v46 = vld [vmem:[%s9353_s1 + $0xcc0] sm:$0xff]  ;;  %v223_v47 = vld [vmem:[%s9353_s1 + $0x550] sm:$0xff]  ;;  %v118_v49 = vld [vmem:[%s9353_s1 + $0x208] sm:$0xff] }
  0x64   :  { %1012 = vmatpush.msrb.mxu2 %v635_v8  ;;  %974 = vmatpush.msra.mxu1 %v397_v10  ;;  %v335_v48 = vld [vmem:[%s9353_s1 + $0x8d0] sm:$0xff]  ;;  %v454_v50 = vld [vmem:[%s9353_s1 + $0xc88] sm:$0xff]  ;;  %v216_v53 = vld [vmem:[%s9353_s1 + $0x518] sm:$0xff] }
  0x65   :  { %994 = vmatpush.msra.mxu3 %v509_v11  ;;  %955 = vmatpush.msra.mxu0 %v278_v12  ;;  %v328_v54 = vld [vmem:[%s9353_s1 + $0x898] sm:$0xff]  ;;  %v111_v55 = vld [vmem:[%s9353_s1 + $0x1d0] sm:$0xff]  ;;  %v209_v58 = vld [vmem:[%s9353_s1 + $0x4e0] sm:$0xff] }
  0x66   :  { %1013 = vmatpush.msrb.mxu2 %v628_v14  ;;  %975 = vmatpush.msra.mxu1 %v390_v15  ;;  %v447_v56 = vld [vmem:[%s9353_s1 + $0xc50] sm:$0xff]  ;;  %v321_v59 = vld [vmem:[%s9353_s1 + $0x860] sm:$0xff]  ;;  %v104_v60 = vld [vmem:[%s9353_s1 + $0x198] sm:$0xff] }
  0x67   :  { %995 = vmatpush.msra.mxu3 %v502_v16  ;;  %1080 = vmatpush.msrb.mxu0 %v384_v20  ;;  %v440_v61 = vld [vmem:[%s9353_s1 + $0xc18] sm:$0xff]  ;;  %v202_v62 = vld [vmem:[%s9353_s1 + $0x4a8] sm:$0xff]  ;;  %v97_v0 = vld [vmem:[%s9353_s1 + $0x160] sm:$0xff] }
  0x68   :  { %1034 = vmatpush.msrb.mxu1 %v733_v17  ;;  %996 = vmatmul.f32.vlgmr.msra.gmra.mxu3 %v5048_v7  ;;  %v314_v63 = vld [vmem:[%s9353_s1 + $0x828] sm:$0xff]  ;;  %v433_v1 = vld [vmem:[%s9353_s1 + $0xbe0] sm:$0xff]  ;;  %v195_v3 = vld [vmem:[%s9353_s1 + $0x470] sm:$0xff] }
  0x69   :  { %1014 = vmatpush.msrb.mxu2 %v621_v18  ;;  %1060 = vmatpush.msrb.mxu3 %v272_v19  ;;  %v307_v4 = vld [vmem:[%s9353_s1 + $0x7f0] sm:$0xff]  ;;  %v90_v5 = vld [vmem:[%s9353_s1 + $0x128] sm:$0xff]  ;;  %v188_v8 = vld [vmem:[%s9353_s1 + $0x438] sm:$0xff] }
  0x6a   :  { %956 = vmatmul.f32.vlgmr.msra.gmra.mxu0 %v4863_v9  ;;  %1035 = vmatpush.msrb.mxu1 %v726_v22  ;;  %v426_v6 = vld [vmem:[%s9353_s1 + $0xba8] sm:$0xff]  ;;  %v300_v10 = vld [vmem:[%s9353_s1 + $0x7b8] sm:$0xff]  ;;  %v83_v11 = vld [vmem:[%s9353_s1 + $0xf0] sm:$0xff] }
  0x6b   :  { %1015 = vmatpush.msrb.mxu2 %v614_v21  ;;  %1061 = vmatpush.msrb.mxu3 %v265_v23  ;;  %v419_v12 = vld [vmem:[%s9353_s1 + $0xb70] sm:$0xff]  ;;  %v181_v14 = vld [vmem:[%s9353_s1 + $0x400] sm:$0xff]  ;;  %v76_v16 = vld [vmem:[%s9353_s1 + $0xb8] sm:$0xff] }
  0x6c   :  { %1081 = vmatpush.msrb.mxu0 %v377_v24  ;;  %976 = vmatmul.f32.vlgmr.msra.gmra.mxu1 %v4991_v52  ;;  %v293_v15 = vld [vmem:[%s9353_s1 + $0x780] sm:$0xff]  ;;  %v412_v17 = vld [vmem:[%s9353_s1 + $0xb38] sm:$0xff]  ;;  %v174_v18 = vld [vmem:[%s9353_s1 + $0x3c8] sm:$0xff] }
  0x6d   :  { %1016 = vmatmul.f32.vlgmr.msrb.gmra.mxu2 %v5065_v13  ;;  %1040 = vmatpush.msra.mxu1 %v160_v25  ;;  %v286_v19 = vld [vmem:[%s9353_s1 + $0x748] sm:$0xff]  ;;  %v69_v20 = vld [vmem:[%s9353_s1 + $0x80] sm:$0xff]  ;;  %v167_v22 = vld [vmem:[%s9353_s1 + $0x390] sm:$0xff] }
  0x6e   :  { %1100 = vmatpush.msra.mxu2 %v496_v26  ;;  %1062 = vmatpush.msrb.mxu3 %v258_v27  ;;  %v405_v21 = vld [vmem:[%s9353_s1 + $0xb00] sm:$0xff]  ;;  %v279_v23 = vld [vmem:[%s9353_s1 + $0x710] sm:$0xff]  ;;  %v62_v24 = vld [vmem:[%s9353_s1 + $0x48] sm:$0xff] }
  0x6f   :  { %1082 = vmatpush.msrb.mxu0 %v370_v28  ;;  %1041 = vmatpush.msra.mxu1 %v153_v29  ;;  %v398_v25 = vld [vmem:[%s9353_s1 + $0xac8] sm:$0xff]  ;;  %v720_v26 = vld [vmem:[%s9353_s1 + $0x14d8] sm:$0xff]  ;;  %v55_v28 = vld [vmem:[%s9353_s1 + $0x10] sm:$0xff] }
  0x70   :  { %1101 = vmatpush.msra.mxu2 %v489_v30  ;;  %1063 = vmatpush.msrb.mxu3 %v251_v31  ;;  %v734_v27 = vld [vmem:[%s9353_s1 + $0x1548] sm:$0xff]  ;;  %v391_v29 = vld [vmem:[%s9353_s1 + $0xa90] sm:$0xff]  ;;  %v713_v30 = vld [vmem:[%s9353_s1 + $0x14a0] sm:$0xff] }
  0x71   :  { %1083 = vmatpush.msrb.mxu0 %v363_v32  ;;  %1042 = vmatpush.msra.mxu1 %v146_v33  ;;  %v727_v31 = vld [vmem:[%s9353_s1 + $0x1510] sm:$0xff]  ;;  %v608_v32 = vld [vmem:[%s9353_s1 + $0x1158] sm:$0xff]  ;;  %v161_v33 = vld [vmem:[%s9353_s1 + $0x360] sm:$0xff] }
  0x72   :  { %1102 = vmatpush.msra.mxu2 %v482_v34  ;;  %1064 = vmatpush.msrb.mxu3 %v244_v35  ;;  %v273_v34 = vld [vmem:[%s9353_s1 + $0x6e0] sm:$0xff]  ;;  %v706_v35 = vld [vmem:[%s9353_s1 + $0x1468] sm:$0xff] }
  0x73   :  { %1084 = vmatpush.msrb.mxu0 %v356_v36  ;;  %1043 = vmatpush.msra.mxu1 %v139_v37  ;;  %v601_v36 = vld [vmem:[%s9353_s1 + $0x1120] sm:$0xff]  ;;  %v154_v37 = vld [vmem:[%s9353_s1 + $0x328] sm:$0xff] }
  0x74   :  { %1103 = vmatpush.msra.mxu2 %v475_v38  ;;  %1065 = vmatpush.msrb.mxu3 %v237_v39  ;;  %v266_v38 = vld [vmem:[%s9353_s1 + $0x6a8] sm:$0xff]  ;;  %v699_v39 = vld [vmem:[%s9353_s1 + $0x1430] sm:$0xff] }
  0x75   :  { %1085 = vmatpush.msrb.mxu0 %v349_v40  ;;  %4471 = vmatmul.msk.f32.vlgmr.msrb.gmra.mxu1 %vm757_vm0, %v5034_v2  ;;  %v594_v40 = vld [vmem:[%s9353_s1 + $0x10e8] sm:$0xff] }
  0x76   :  { %1044 = vmatpush.msra.mxu1 %v132_v41  ;;  %1104 = vmatpush.msra.mxu2 %v468_v42  ;;  %v259_v41 = vld [vmem:[%s9353_s1 + $0x670] sm:$0xff]  ;;  %v692_v42 = vld [vmem:[%s9353_s1 + $0x13f8] sm:$0xff] }
  0x77   :  { %1066 = vmatpush.msrb.mxu3 %v230_v43  ;;  %1086 = vmatpush.msrb.mxu0 %v342_v44  ;;  %v587_v43 = vld [vmem:[%s9353_s1 + $0x10b0] sm:$0xff]  ;;  %v140_v44 = vld [vmem:[%s9353_s1 + $0x2b8] sm:$0xff] }
  0x78   :  { %1045 = vmatpush.msra.mxu1 %v125_v45  ;;  %1105 = vmatpush.msra.mxu2 %v461_v46  ;;  %v252_v45 = vld [vmem:[%s9353_s1 + $0x638] sm:$0xff]  ;;  %v685_v46 = vld [vmem:[%s9353_s1 + $0x13c0] sm:$0xff] }
  0x79   :  { %1067 = vmatpush.msrb.mxu3 %v223_v47  ;;  %1087 = vmatpush.msrb.mxu0 %v335_v48  ;;  %v580_v47 = vld [vmem:[%s9353_s1 + $0x1078] sm:$0xff]  ;;  %v133_v48 = vld [vmem:[%s9353_s1 + $0x280] sm:$0xff] }
  0x7a   :  { %1046 = vmatpush.msra.mxu1 %v118_v49  ;;  %1106 = vmatpush.msra.mxu2 %v454_v50  ;;  %v245_v49 = vld [vmem:[%s9353_s1 + $0x600] sm:$0xff]  ;;  %v678_v50 = vld [vmem:[%s9353_s1 + $0x1388] sm:$0xff] }
  0x7b   :  { %1068 = vmatpush.msrb.mxu3 %v216_v53  ;;  %1088 = vmatpush.msrb.mxu0 %v328_v54  ;;  %v573_v53 = vld [vmem:[%s9353_s1 + $0x1040] sm:$0xff]  ;;  %v126_v54 = vld [vmem:[%s9353_s1 + $0x248] sm:$0xff] }
  0x7c   :  { %1047 = vmatpush.msra.mxu1 %v111_v55  ;;  %1107 = vmatpush.msra.mxu2 %v447_v56  ;;  %v238_v55 = vld [vmem:[%s9353_s1 + $0x5c8] sm:$0xff]  ;;  %v671_v56 = vld [vmem:[%s9353_s1 + $0x1350] sm:$0xff] }
  0x7d   :  { %1069 = vmatpush.msrb.mxu3 %v209_v58  ;;  %1089 = vmatpush.msrb.mxu0 %v321_v59  ;;  %v566_v58 = vld [vmem:[%s9353_s1 + $0x1008] sm:$0xff]  ;;  %v119_v59 = vld [vmem:[%s9353_s1 + $0x210] sm:$0xff] }
  0x7e   :  { %1048 = vmatpush.msra.mxu1 %v104_v60  ;;  %1108 = vmatpush.msra.mxu2 %v440_v61  ;;  %v231_v60 = vld [vmem:[%s9353_s1 + $0x590] sm:$0xff]  ;;  %v664_v61 = vld [vmem:[%s9353_s1 + $0x1318] sm:$0xff] }
  0x7f   :  { %1070 = vmatpush.msrb.mxu3 %v202_v62  ;;  %1090 = vmatpush.msrb.mxu0 %v314_v63  ;;  %v559_v62 = vld [vmem:[%s9353_s1 + $0xfd0] sm:$0xff]  ;;  %v112_v63 = vld [vmem:[%s9353_s1 + $0x1d8] sm:$0xff] }
  0x80   :  { %1049 = vmatpush.msra.mxu1 %v97_v0  ;;  %1109 = vmatpush.msra.mxu2 %v433_v1  ;;  %v224_v0 = vld [vmem:[%s9353_s1 + $0x558] sm:$0xff]  ;;  %v657_v1 = vld [vmem:[%s9353_s1 + $0x12e0] sm:$0xff] }
  0x81   :  { %1071 = vmatpush.msrb.mxu3 %v195_v3  ;;  %1091 = vmatpush.msrb.mxu0 %v307_v4  ;;  %v552_v3 = vld [vmem:[%s9353_s1 + $0xf98] sm:$0xff]  ;;  %v105_v4 = vld [vmem:[%s9353_s1 + $0x1a0] sm:$0xff] }
  0x82   :  { %1050 = vmatpush.msra.mxu1 %v90_v5  ;;  %1110 = vmatpush.msra.mxu2 %v426_v6  ;;  %v217_v5 = vld [vmem:[%s9353_s1 + $0x520] sm:$0xff]  ;;  %v650_v6 = vld [vmem:[%s9353_s1 + $0x12a8] sm:$0xff] }
  0x83   :  { %1072 = vmatpush.msrb.mxu3 %v188_v8  ;;  %1092 = vmatpush.msrb.mxu0 %v300_v10  ;;  %v545_v8 = vld [vmem:[%s9353_s1 + $0xf60] sm:$0xff]  ;;  %v98_v10 = vld [vmem:[%s9353_s1 + $0x168] sm:$0xff] }
  0x84   :  { %1051 = vmatpush.msra.mxu1 %v83_v11  ;;  %1111 = vmatpush.msra.mxu2 %v419_v12  ;;  %v210_v11 = vld [vmem:[%s9353_s1 + $0x4e8] sm:$0xff]  ;;  %v643_v12 = vld [vmem:[%s9353_s1 + $0x1270] sm:$0xff] }
  0x85   :  { %1073 = vmatpush.msrb.mxu3 %v181_v14  ;;  %1093 = vmatpush.msrb.mxu0 %v293_v15  ;;  %v538_v14 = vld [vmem:[%s9353_s1 + $0xf28] sm:$0xff]  ;;  %v91_v15 = vld [vmem:[%s9353_s1 + $0x130] sm:$0xff] }
  0x86   :  { %1052 = vmatpush.msra.mxu1 %v76_v16  ;;  %1112 = vmatpush.msra.mxu2 %v412_v17  ;;  %v203_v16 = vld [vmem:[%s9353_s1 + $0x4b0] sm:$0xff]  ;;  %v636_v17 = vld [vmem:[%s9353_s1 + $0x1238] sm:$0xff] }
  0x87   :  { %1074 = vmatpush.msrb.mxu3 %v174_v18  ;;  %1094 = vmatpush.msrb.mxu0 %v286_v19  ;;  %v531_v18 = vld [vmem:[%s9353_s1 + $0xef0] sm:$0xff]  ;;  %v84_v19 = vld [vmem:[%s9353_s1 + $0xf8] sm:$0xff] }
  0x88   :  { %1053 = vmatpush.msra.mxu1 %v69_v20  ;;  %1113 = vmatpush.msra.mxu2 %v405_v21  ;;  %v196_v20 = vld [vmem:[%s9353_s1 + $0x478] sm:$0xff]  ;;  %v629_v21 = vld [vmem:[%s9353_s1 + $0x1200] sm:$0xff] }
  0x89   :  { %1075 = vmatpush.msrb.mxu3 %v167_v22  ;;  %1095 = vmatpush.msrb.mxu0 %v279_v23  ;;  %v524_v22 = vld [vmem:[%s9353_s1 + $0xeb8] sm:$0xff]  ;;  %v189_v23 = vld [vmem:[%s9353_s1 + $0x440] sm:$0xff] }
  0x8a   :  { %1054 = vmatpush.msra.mxu1 %v62_v24  ;;  %1114 = vmatpush.msra.mxu2 %v398_v25  ;;  %v622_v24 = vld [vmem:[%s9353_s1 + $0x11c8] sm:$0xff]  ;;  %v517_v25 = vld [vmem:[%s9353_s1 + $0xe80] sm:$0xff] }
  0x8b   :  { %1140 = vmatpush.msra.mxu3 %v720_v26  ;;  %1174 = vmatpush.msra.mxu0 %v734_v27  ;;  %v70_v26 = vld [vmem:[%s9353_s1 + $0x88] sm:$0xff] }
  0x8c   :  { %1055 = vmatpush.msra.mxu1 %v55_v28  ;;  %1115 = vmatpush.msra.mxu2 %v391_v29  ;;  %v182_v27 = vld [vmem:[%s9353_s1 + $0x408] sm:$0xff]  ;;  %v63_v28 = vld [vmem:[%s9353_s1 + $0x50] sm:$0xff] }
  0x8d   :  { %1141 = vmatpush.msra.mxu3 %v713_v30  ;;  %1175 = vmatpush.msra.mxu0 %v727_v31  ;;  %v175_v29 = vld [vmem:[%s9353_s1 + $0x3d0] sm:$0xff]  ;;  %v497_v30 = vld [vmem:[%s9353_s1 + $0xde0] sm:$0xff] }
  0x8e   :  { %1096 = vmatmul.f32.vlgmr.msrb.gmra.mxu0 %v4863_v9  ;;  %1120 = vmatpush.msrb.mxu1 %v608_v32  ;;  %v147_v9 = vld [vmem:[%s9353_s1 + $0x2f0] sm:$0xff]  ;;  %v56_v32 = vld [vmem:[%s9353_s1 + $0x18] sm:$0xff] }
  0x8f   :  { %1180 = vmatpush.msrb.mxu2 %v161_v33  ;;  %1200 = vmatpush.msrb.mxu0 %v273_v34  ;;  %v503_v31 = vld [vmem:[%s9353_s1 + $0xe10] sm:$0xff]  ;;  %v168_v33 = vld [vmem:[%s9353_s1 + $0x398] sm:$0xff]  ;;  %v490_v34 = vld [vmem:[%s9353_s1 + $0xda8] sm:$0xff] }
  0x90   :  { %1142 = vmatpush.msra.mxu3 %v706_v35  ;;  %1121 = vmatpush.msrb.mxu1 %v601_v36  ;;  %v609_v35 = vld [vmem:[%s9353_s1 + $0x1160] sm:$0xff] }
  0x91   :  { %1181 = vmatpush.msrb.mxu2 %v154_v37  ;;  %1201 = vmatpush.msrb.mxu0 %v266_v38  ;;  %v721_v36 = vld [vmem:[%s9353_s1 + $0x14e0] sm:$0xff]  ;;  %v483_v37 = vld [vmem:[%s9353_s1 + $0xd70] sm:$0xff]  ;;  %v378_v38 = vld [vmem:[%s9353_s1 + $0xa28] sm:$0xff] }
  0x92   :  { %1143 = vmatpush.msra.mxu3 %v699_v39  ;;  %1122 = vmatpush.msrb.mxu1 %v594_v40  ;;  %v602_v39 = vld [vmem:[%s9353_s1 + $0x1128] sm:$0xff] }
  0x93   :  { %1182 = vmatpush.msrb.mxu2 %v147_v9  ;;  %1202 = vmatpush.msrb.mxu0 %v259_v41  ;;  %v714_v40 = vld [vmem:[%s9353_s1 + $0x14a8] sm:$0xff]  ;;  %v371_v9 = vld [vmem:[%s9353_s1 + $0x9f0] sm:$0xff] }
  0x94   :  { %1144 = vmatpush.msra.mxu3 %v692_v42  ;;  %1123 = vmatpush.msrb.mxu1 %v587_v43  ;;  %v595_v41 = vld [vmem:[%s9353_s1 + $0x10f0] sm:$0xff]  ;;  %v364_v43 = vld [vmem:[%s9353_s1 + $0x9b8] sm:$0xff] }
  0x95   :  { %1183 = vmatpush.msrb.mxu2 %v140_v44  ;;  %1203 = vmatpush.msrb.mxu0 %v252_v45  ;;  %v707_v42 = vld [vmem:[%s9353_s1 + $0x1470] sm:$0xff]  ;;  %v588_v44 = vld [vmem:[%s9353_s1 + $0x10b8] sm:$0xff] }
  0x96   :  { %1145 = vmatpush.msra.mxu3 %v685_v46  ;;  %1124 = vmatpush.msrb.mxu1 %v580_v47  ;;  %v700_v45 = vld [vmem:[%s9353_s1 + $0x1438] sm:$0xff]  ;;  %v462_v46 = vld [vmem:[%s9353_s1 + $0xcc8] sm:$0xff]  ;;  %v357_v47 = vld [vmem:[%s9353_s1 + $0x980] sm:$0xff] }
  0x97   :  { %1184 = vmatpush.msrb.mxu2 %v133_v48  ;;  %1204 = vmatpush.msrb.mxu0 %v245_v49  ;;  %v581_v48 = vld [vmem:[%s9353_s1 + $0x1080] sm:$0xff] }
  0x98   :  { %1146 = vmatpush.msra.mxu3 %v678_v50  ;;  %1125 = vmatpush.msrb.mxu1 %v573_v53  ;;  %v693_v49 = vld [vmem:[%s9353_s1 + $0x1400] sm:$0xff]  ;;  %v455_v50 = vld [vmem:[%s9353_s1 + $0xc90] sm:$0xff]  ;;  %v350_v53 = vld [vmem:[%s9353_s1 + $0x948] sm:$0xff] }
  0x99   :  { %1185 = vmatpush.msrb.mxu2 %v126_v54  ;;  %1205 = vmatpush.msrb.mxu0 %v238_v55  ;;  %v574_v54 = vld [vmem:[%s9353_s1 + $0x1048] sm:$0xff] }
  0x9a   :  { %1147 = vmatpush.msra.mxu3 %v671_v56  ;;  %1126 = vmatpush.msrb.mxu1 %v566_v58  ;;  %v686_v55 = vld [vmem:[%s9353_s1 + $0x13c8] sm:$0xff]  ;;  %v448_v56 = vld [vmem:[%s9353_s1 + $0xc58] sm:$0xff]  ;;  %v343_v58 = vld [vmem:[%s9353_s1 + $0x910] sm:$0xff] }
  0x9b   :  { %1186 = vmatpush.msrb.mxu2 %v119_v59  ;;  %1206 = vmatpush.msrb.mxu0 %v231_v60  ;;  %v567_v59 = vld [vmem:[%s9353_s1 + $0x1010] sm:$0xff] }
  0x9c   :  { %1148 = vmatpush.msra.mxu3 %v664_v61  ;;  %1127 = vmatpush.msrb.mxu1 %v559_v62  ;;  %v679_v60 = vld [vmem:[%s9353_s1 + $0x1390] sm:$0xff]  ;;  %v441_v61 = vld [vmem:[%s9353_s1 + $0xc20] sm:$0xff]  ;;  %v336_v62 = vld [vmem:[%s9353_s1 + $0x8d8] sm:$0xff] }
  0x9d   :  { %1187 = vmatpush.msrb.mxu2 %v112_v63  ;;  %1207 = vmatpush.msrb.mxu0 %v224_v0  ;;  %v560_v63 = vld [vmem:[%s9353_s1 + $0xfd8] sm:$0xff] }
  0x9e   :  { %1149 = vmatpush.msra.mxu3 %v657_v1  ;;  %1128 = vmatpush.msrb.mxu1 %v552_v3  ;;  %v672_v0 = vld [vmem:[%s9353_s1 + $0x1358] sm:$0xff]  ;;  %v434_v1 = vld [vmem:[%s9353_s1 + $0xbe8] sm:$0xff]  ;;  %v329_v3 = vld [vmem:[%s9353_s1 + $0x8a0] sm:$0xff] }
  0x9f   :  { %1188 = vmatpush.msrb.mxu2 %v105_v4  ;;  %1208 = vmatpush.msrb.mxu0 %v217_v5  ;;  %v553_v4 = vld [vmem:[%s9353_s1 + $0xfa0] sm:$0xff] }
  0xa0   :  { %1150 = vmatpush.msra.mxu3 %v650_v6  ;;  %1129 = vmatpush.msrb.mxu1 %v545_v8  ;;  %v665_v5 = vld [vmem:[%s9353_s1 + $0x1320] sm:$0xff]  ;;  %v427_v6 = vld [vmem:[%s9353_s1 + $0xbb0] sm:$0xff]  ;;  %v322_v8 = vld [vmem:[%s9353_s1 + $0x868] sm:$0xff] }
  0xa1   :  { %1189 = vmatpush.msrb.mxu2 %v98_v10  ;;  %1209 = vmatpush.msrb.mxu0 %v210_v11  ;;  %v546_v10 = vld [vmem:[%s9353_s1 + $0xf68] sm:$0xff] }
  0xa2   :  { %1151 = vmatpush.msra.mxu3 %v643_v12  ;;  %1130 = vmatpush.msrb.mxu1 %v538_v14  ;;  %v658_v11 = vld [vmem:[%s9353_s1 + $0x12e8] sm:$0xff]  ;;  %v420_v12 = vld [vmem:[%s9353_s1 + $0xb78] sm:$0xff]  ;;  %v315_v14 = vld [vmem:[%s9353_s1 + $0x830] sm:$0xff] }
  0xa3   :  { %1076 = vmatmul.f32.vlgmr.msrb.gmra.mxu3 %v5006_v57  ;;  %1190 = vmatpush.msrb.mxu2 %v91_v15  ;;  %v77_v57 = vld [vmem:[%s9353_s1 + $0xc0] sm:$0xff]  ;;  %v539_v15 = vld [vmem:[%s9353_s1 + $0xf30] sm:$0xff] }
  0xa4   :  { %1210 = vmatpush.msrb.mxu0 %v203_v16  ;;  %1152 = vmatpush.msra.mxu3 %v636_v17  ;;  %v651_v16 = vld [vmem:[%s9353_s1 + $0x12b0] sm:$0xff]  ;;  %v413_v17 = vld [vmem:[%s9353_s1 + $0xb40] sm:$0xff] }
  0xa5   :  { %1131 = vmatpush.msrb.mxu1 %v531_v18  ;;  %1191 = vmatpush.msrb.mxu2 %v84_v19  ;;  %v308_v18 = vld [vmem:[%s9353_s1 + $0x7f8] sm:$0xff] }
  0xa6   :  { %1211 = vmatpush.msrb.mxu0 %v196_v20  ;;  %1153 = vmatpush.msra.mxu3 %v629_v21  ;;  %v532_v19 = vld [vmem:[%s9353_s1 + $0xef8] sm:$0xff]  ;;  %v406_v21 = vld [vmem:[%s9353_s1 + $0xb08] sm:$0xff] }
  0xa7   :  { %1056 = vmatmul.f32.vlgmr.msra.gmra.mxu1 %v4989_v51  ;;  %1116 = vmatmul.f32.vlgmr.msra.gmra.mxu2 %v4991_v52  ;;  %v615_v51 = vld [vmem:[%s9353_s1 + $0x1190] sm:$0xff]  ;;  %v510_v52 = vld [vmem:[%s9353_s1 + $0xe48] sm:$0xff]  ;;  %v644_v20 = vld [vmem:[%s9353_s1 + $0x1278] sm:$0xff] }
  0xa8   :  { %1132 = vmatpush.msrb.mxu1 %v524_v22  ;;  %1192 = vmatpush.msrb.mxu2 %v77_v57  ;;  %v301_v22 = vld [vmem:[%s9353_s1 + $0x7c0] sm:$0xff] }
  0xa9   :  { %1212 = vmatpush.msrb.mxu0 %v189_v23  ;;  %1154 = vmatpush.msra.mxu3 %v622_v24  ;;  %v525_v57 = vld [vmem:[%s9353_s1 + $0xec0] sm:$0xff]  ;;  %v399_v24 = vld [vmem:[%s9353_s1 + $0xad0] sm:$0xff] }
  0xaa   :  { %1133 = vmatpush.msrb.mxu1 %v517_v25  ;;  %1193 = vmatpush.msrb.mxu2 %v70_v26  ;;  %v637_v23 = vld [vmem:[%s9353_s1 + $0x1240] sm:$0xff]  ;;  %v294_v26 = vld [vmem:[%s9353_s1 + $0x788] sm:$0xff] }
  0xab   :  { %1213 = vmatpush.msrb.mxu0 %v182_v27  ;;  %1155 = vmatpush.msra.mxu3 %v615_v51  ;;  %v5828_v25 = vld.sshfl [vmem:[#allocation1] sm:$0xff pattern:$0x73625140]  ;;  %v518_v27 = vld [vmem:[%s9353_s1 + $0xe88] sm:$0xff] }
  0xac   :  { %1134 = vmatpush.msrb.mxu1 %v510_v52  ;;  %1156 = vmatmul.f32.vlgmr.msra.gmra.mxu3 %v5065_v13  ;;  %v385_v13 = vld [vmem:[%s9353_s1 + $0xa60] sm:$0xff]  ;;  %v630_v51 = vld [vmem:[%s9353_s1 + $0x1208] sm:$0xff]  ;;  %v392_v52 = vld [vmem:[%s9353_s1 + $0xa98] sm:$0xff] }
  0xad   :  { %1194 = vmatpush.msrb.mxu2 %v63_v28  ;;  %1214 = vmatpush.msrb.mxu0 %v175_v29  ;;  %v287_v28 = vld [vmem:[%s9353_s1 + $0x750] sm:$0xff] }
  0xae   :  { %1240 = vmatpush.msrb.mxu3 %v497_v30  ;;  %1135 = vmatpush.msrb.mxu1 %v503_v31  ;;  %v511_v29 = vld [vmem:[%s9353_s1 + $0xe50] sm:$0xff]  ;;  %v162_v31 = vld [vmem:[%s9353_s1 + $0x368] sm:$0xff] }
  0xaf   :  { %1195 = vmatpush.msrb.mxu2 %v56_v32  ;;  %1215 = vmatpush.msrb.mxu0 %v168_v33  ;;  %v623_v30 = vld [vmem:[%s9353_s1 + $0x11d0] sm:$0xff]  ;;  %v280_v32 = vld [vmem:[%s9353_s1 + $0x718] sm:$0xff] }
  0xb0   :  { %1241 = vmatpush.msrb.mxu3 %v490_v34  ;;  %4472 = vmatmul.msk.f32.vlgmr.msra.gmra.mxu0 %vm757_vm0, %v5034_v2  ;;  %v476_v2 = vld [vmem:[%s9353_s1 + $0xd38] sm:$0xff] }
  0xb1   :  { %1220 = vmatpush.msra.mxu1 %v385_v13  ;;  %1260 = vmatpush.msra.mxu2 %v609_v35  ;;  %v504_v33 = vld [vmem:[%s9353_s1 + $0xe18] sm:$0xff]  ;;  %v155_v13 = vld [vmem:[%s9353_s1 + $0x330] sm:$0xff] }
  0xb2   :  { %1280 = vmatpush.msra.mxu0 %v721_v36  ;;  %1136 = vmatmul.f32.vlgmr.msrb.gmra.mxu1 %v5048_v7  ;;  %v469_v7 = vld [vmem:[%s9353_s1 + $0xd00] sm:$0xff]  ;;  %v616_v34 = vld [vmem:[%s9353_s1 + $0x1198] sm:$0xff]  ;;  %v735_v36 = vld [vmem:[%s9353_s1 + $0x1550] sm:$0xff] }
  0xb3   :  { %1242 = vmatpush.msrb.mxu3 %v483_v37  ;;  %1221 = vmatpush.msra.mxu1 %v378_v38  ;;  %v5867_v35 = vld.sshfl [vmem:[#allocation1 + $0x18] sm:$0xff pattern:$0x73625140]  ;;  %v386_v37 = vld [vmem:[%s9353_s1 + $0xa68] sm:$0xff] }
  0xb4   :  { %1261 = vmatpush.msra.mxu2 %v602_v39  ;;  %1281 = vmatpush.msra.mxu0 %v714_v40  ;;  %v498_v38 = vld [vmem:[%s9353_s1 + $0xde8] sm:$0xff]  ;;  %v148_v40 = vld [vmem:[%s9353_s1 + $0x2f8] sm:$0xff] }
  0xb5   :  { %1243 = vmatpush.msrb.mxu3 %v476_v2  ;;  %1222 = vmatpush.msra.mxu1 %v371_v9  ;;  %v5879_v39 = vld.sshfl [vmem:[#allocation1 + $0x8] sm:$0xff pattern:$0x73625140]  ;;  %v5885_v2 = vld.sshfl [vmem:[#allocation1 + $0x20] sm:$0xff pattern:$0x73625140] }
  0xb6   :  { %1262 = vmatpush.msra.mxu2 %v595_v41  ;;  %1282 = vmatpush.msra.mxu0 %v707_v42  ;;  %v728_v9 = vld [vmem:[%s9353_s1 + $0x1518] sm:$0xff]  ;;  %v379_v41 = vld [vmem:[%s9353_s1 + $0xa30] sm:$0xff] }
  0xb7   :  { %1244 = vmatpush.msrb.mxu3 %v469_v7  ;;  %1223 = vmatpush.msra.mxu1 %v364_v43  ;;  %v491_v42 = vld [vmem:[%s9353_s1 + $0xdb0] sm:$0xff]  ;;  %v141_v7 = vld [vmem:[%s9353_s1 + $0x2c0] sm:$0xff] }
  0xb8   :  { %1263 = vmatpush.msra.mxu2 %v588_v44  ;;  %1283 = vmatpush.msra.mxu0 %v700_v45  ;;  %v5900_v43 = vld.sshfl [vmem:[#allocation1 + $0x10] sm:$0xff pattern:$0x73625140]  ;;  %v274_v44 = vld [vmem:[%s9353_s1 + $0x6e8] sm:$0xff]  ;;  %v372_v45 = vld [vmem:[%s9353_s1 + $0x9f8] sm:$0xff] }
  0xb9   :  { %1245 = vmatpush.msrb.mxu3 %v462_v46  ;;  %1224 = vmatpush.msra.mxu1 %v357_v47  ;;  %v484_v46 = vld [vmem:[%s9353_s1 + $0xd78] sm:$0xff]  ;;  %v134_v47 = vld [vmem:[%s9353_s1 + $0x288] sm:$0xff] }
  0xba   :  { %1264 = vmatpush.msra.mxu2 %v581_v48  ;;  %1284 = vmatpush.msra.mxu0 %v693_v49  ;;  %v267_v48 = vld [vmem:[%s9353_s1 + $0x6b0] sm:$0xff]  ;;  %v365_v49 = vld [vmem:[%s9353_s1 + $0x9c0] sm:$0xff] }
  0xbb   :  { %1246 = vmatpush.msrb.mxu3 %v455_v50  ;;  %1225 = vmatpush.msra.mxu1 %v350_v53  ;;  %v477_v50 = vld [vmem:[%s9353_s1 + $0xd40] sm:$0xff]  ;;  %v127_v53 = vld [vmem:[%s9353_s1 + $0x250] sm:$0xff] }
  0xbc   :  { %1265 = vmatpush.msra.mxu2 %v574_v54  ;;  %1285 = vmatpush.msra.mxu0 %v686_v55  ;;  %v260_v54 = vld [vmem:[%s9353_s1 + $0x678] sm:$0xff]  ;;  %v358_v55 = vld [vmem:[%s9353_s1 + $0x988] sm:$0xff] }
  0xbd   :  { %1247 = vmatpush.msrb.mxu3 %v448_v56  ;;  %1226 = vmatpush.msra.mxu1 %v343_v58  ;;  %v470_v56 = vld [vmem:[%s9353_s1 + $0xd08] sm:$0xff]  ;;  %v120_v58 = vld [vmem:[%s9353_s1 + $0x218] sm:$0xff] }
  0xbe   :  { %1266 = vmatpush.msra.mxu2 %v567_v59  ;;  %1286 = vmatpush.msra.mxu0 %v679_v60  ;;  %v253_v59 = vld [vmem:[%s9353_s1 + $0x640] sm:$0xff]  ;;  %v5942_v60 = vld.sshfl [vmem:[#allocation1 + $0x28] sm:$0xff pattern:$0x73625140] }
  0xbf   :  { %1248 = vmatpush.msrb.mxu3 %v441_v61  ;;  %1227 = vmatpush.msra.mxu1 %v336_v62  ;;  %v351_v61 = vld [vmem:[%s9353_s1 + $0x950] sm:$0xff] }
  0xc0   :  { %1267 = vmatpush.msra.mxu2 %v560_v63  ;;  %1287 = vmatpush.msra.mxu0 %v672_v0  ;;  %v463_v62 = vld [vmem:[%s9353_s1 + $0xcd0] sm:$0xff]  ;;  %v113_v63 = vld [vmem:[%s9353_s1 + $0x1e0] sm:$0xff]  ;;  %v246_v0 = vld [vmem:[%s9353_s1 + $0x608] sm:$0xff] }
  0xc1   :  { %1249 = vmatpush.msrb.mxu3 %v434_v1  ;;  %1228 = vmatpush.msra.mxu1 %v329_v3  ;;  %v344_v1 = vld [vmem:[%s9353_s1 + $0x918] sm:$0xff]  ;;  %v5960_v3 = vld.sshfl [vmem:[#allocation1 + $0x30] sm:$0xff pattern:$0x73625140] }
  0xc2   :  { %1268 = vmatpush.msra.mxu2 %v553_v4  ;;  %1288 = vmatpush.msra.mxu0 %v665_v5  ;;  %v456_v4 = vld [vmem:[%s9353_s1 + $0xc98] sm:$0xff]  ;;  %v106_v5 = vld [vmem:[%s9353_s1 + $0x1a8] sm:$0xff] }
  0xc3   :  { %1250 = vmatpush.msrb.mxu3 %v427_v6  ;;  %1229 = vmatpush.msra.mxu1 %v322_v8  ;;  %v239_v6 = vld [vmem:[%s9353_s1 + $0x5d0] sm:$0xff]  ;;  %v337_v8 = vld [vmem:[%s9353_s1 + $0x8e0] sm:$0xff] }
  0xc4   :  { %1269 = vmatpush.msra.mxu2 %v546_v10  ;;  %1289 = vmatpush.msra.mxu0 %v658_v11  ;;  %v449_v10 = vld [vmem:[%s9353_s1 + $0xc60] sm:$0xff]  ;;  %v99_v11 = vld [vmem:[%s9353_s1 + $0x170] sm:$0xff] }
  0xc5   :  { %1251 = vmatpush.msrb.mxu3 %v420_v12  ;;  %1230 = vmatpush.msra.mxu1 %v315_v14  ;;  %v232_v12 = vld [vmem:[%s9353_s1 + $0x598] sm:$0xff]  ;;  %v330_v14 = vld [vmem:[%s9353_s1 + $0x8a8] sm:$0xff] }
  0xc6   :  { %1270 = vmatpush.msra.mxu2 %v539_v15  ;;  %1290 = vmatpush.msra.mxu0 %v651_v16  ;;  %v442_v15 = vld [vmem:[%s9353_s1 + $0xc28] sm:$0xff]  ;;  %v92_v16 = vld [vmem:[%s9353_s1 + $0x138] sm:$0xff] }
  0xc7   :  { %1252 = vmatpush.msrb.mxu3 %v413_v17  ;;  %1231 = vmatpush.msra.mxu1 %v308_v18  ;;  %v225_v17 = vld [vmem:[%s9353_s1 + $0x560] sm:$0xff]  ;;  %v323_v18 = vld [vmem:[%s9353_s1 + $0x870] sm:$0xff] }
  0xc8   :  { %1271 = vmatpush.msra.mxu2 %v532_v19  ;;  %1291 = vmatpush.msra.mxu0 %v644_v20  ;;  %v435_v19 = vld [vmem:[%s9353_s1 + $0xbf0] sm:$0xff]  ;;  %v85_v20 = vld [vmem:[%s9353_s1 + $0x100] sm:$0xff] }
  0xc9   :  { %1196 = vmatmul.f32.vlgmr.msrb.gmra.mxu2 %v5828_v25  ;;  %1253 = vmatpush.msrb.mxu3 %v406_v21  ;;  %v218_v21 = vld [vmem:[%s9353_s1 + $0x528] sm:$0xff] }
  0xca   :  { %1232 = vmatpush.msra.mxu1 %v301_v22  ;;  %1272 = vmatpush.msra.mxu2 %v525_v57  ;;  %v316_v22 = vld [vmem:[%s9353_s1 + $0x838] sm:$0xff] }
  0xcb   :  { %1292 = vmatpush.msra.mxu0 %v637_v23  ;;  %1254 = vmatpush.msrb.mxu3 %v399_v24  ;;  %v428_v57 = vld [vmem:[%s9353_s1 + $0xbb8] sm:$0xff]  ;;  %v78_v23 = vld [vmem:[%s9353_s1 + $0xc8] sm:$0xff]  ;;  %v211_v24 = vld [vmem:[%s9353_s1 + $0x4f0] sm:$0xff] }
  0xcc   :  { %1233 = vmatpush.msra.mxu1 %v294_v26  ;;  %1273 = vmatpush.msra.mxu2 %v518_v27  ;;  %v309_v26 = vld [vmem:[%s9353_s1 + $0x800] sm:$0xff] }
  0xcd   :  { %1293 = vmatpush.msra.mxu0 %v630_v51  ;;  %1255 = vmatpush.msrb.mxu3 %v392_v52  ;;  %v421_v27 = vld [vmem:[%s9353_s1 + $0xb80] sm:$0xff]  ;;  %v71_v51 = vld [vmem:[%s9353_s1 + $0x90] sm:$0xff]  ;;  %v204_v52 = vld [vmem:[%s9353_s1 + $0x4b8] sm:$0xff] }
  0xce   :  { %1234 = vmatpush.msra.mxu1 %v287_v28  ;;  %1274 = vmatpush.msra.mxu2 %v511_v29  ;;  %v302_v28 = vld [vmem:[%s9353_s1 + $0x7c8] sm:$0xff] }
  0xcf   :  { %1294 = vmatpush.msra.mxu0 %v623_v30  ;;  %1320 = vmatpush.msra.mxu3 %v162_v31  ;;  %v414_v29 = vld [vmem:[%s9353_s1 + $0xb48] sm:$0xff]  ;;  %v64_v30 = vld [vmem:[%s9353_s1 + $0x58] sm:$0xff]  ;;  %v197_v31 = vld [vmem:[%s9353_s1 + $0x480] sm:$0xff] }
  0xd0   :  { %1256 = vmatmul.f32.vlgmr.msrb.gmra.mxu3 %v5867_v35  ;;  %1235 = vmatpush.msra.mxu1 %v280_v32  ;;  %v295_v32 = vld [vmem:[%s9353_s1 + $0x790] sm:$0xff] }
  0xd1   :  { %1275 = vmatpush.msra.mxu2 %v504_v33  ;;  %1295 = vmatpush.msra.mxu0 %v616_v34  ;;  %v407_v33 = vld [vmem:[%s9353_s1 + $0xb10] sm:$0xff]  ;;  %v57_v34 = vld [vmem:[%s9353_s1 + $0x20] sm:$0xff] }
  0xd2   :  { %1321 = vmatpush.msra.mxu3 %v155_v13  ;;  %1216 = vmatmul.f32.vlgmr.msrb.gmra.mxu0 %v5879_v39  ;;  %v190_v13 = vld [vmem:[%s9353_s1 + $0x448] sm:$0xff] }
  0xd3   :  { %1276 = vmatmul.f32.vlgmr.msra.gmra.mxu2 %v5885_v2  ;;  %1314 = vmatpush.msrb.mxu1 %v735_v36  ;;  %v288_v36 = vld [vmem:[%s9353_s1 + $0x758] sm:$0xff] }
  0xd4   :  { %1360 = vmatpush.msrb.mxu2 %v386_v37  ;;  %1380 = vmatpush.msrb.mxu0 %v498_v38  ;;  %v400_v37 = vld [vmem:[%s9353_s1 + $0xad8] sm:$0xff]  ;;  %v610_v38 = vld [vmem:[%s9353_s1 + $0x1168] sm:$0xff] }
  0xd5   :  { %1322 = vmatpush.msra.mxu3 %v148_v40  ;;  %1236 = vmatmul.f32.vlgmr.msra.gmra.mxu1 %v5900_v43  ;;  %v183_v40 = vld [vmem:[%s9353_s1 + $0x410] sm:$0xff] }
  0xd6   :  { %1315 = vmatpush.msrb.mxu1 %v728_v9  ;;  %1361 = vmatpush.msrb.mxu2 %v379_v41  ;;  %v281_v9 = vld [vmem:[%s9353_s1 + $0x720] sm:$0xff] }
  0xd7   :  { %1381 = vmatpush.msrb.mxu0 %v491_v42  ;;  %1323 = vmatpush.msra.mxu3 %v141_v7  ;;  %v393_v41 = vld [vmem:[%s9353_s1 + $0xaa0] sm:$0xff]  ;;  %v603_v42 = vld [vmem:[%s9353_s1 + $0x1130] sm:$0xff]  ;;  %v176_v7 = vld [vmem:[%s9353_s1 + $0x3d8] sm:$0xff] }
  0xd8   :  { %1340 = vmatpush.msra.mxu1 %v274_v44  ;;  %1362 = vmatpush.msrb.mxu2 %v372_v45  ;;  %v736_v44 = vld [vmem:[%s9353_s1 + $0x1558] sm:$0xff]  ;;  %v163_v45 = vld [vmem:[%s9353_s1 + $0x370] sm:$0xff] }
  0xd9   :  { %1382 = vmatpush.msrb.mxu0 %v484_v46  ;;  %1324 = vmatpush.msra.mxu3 %v134_v47  ;;  %v596_v46 = vld [vmem:[%s9353_s1 + $0x10f8] sm:$0xff]  ;;  %v169_v47 = vld [vmem:[%s9353_s1 + $0x3a0] sm:$0xff] }
  0xda   :  { %1341 = vmatpush.msra.mxu1 %v267_v48  ;;  %1363 = vmatpush.msrb.mxu2 %v365_v49  ;;  %v729_v48 = vld [vmem:[%s9353_s1 + $0x1520] sm:$0xff]  ;;  %v156_v49 = vld [vmem:[%s9353_s1 + $0x338] sm:$0xff] }
  0xdb   :  { %1383 = vmatpush.msrb.mxu0 %v477_v50  ;;  %1325 = vmatpush.msra.mxu3 %v127_v53  ;;  %v589_v50 = vld [vmem:[%s9353_s1 + $0x10c0] sm:$0xff]  ;;  %v722_v53 = vld [vmem:[%s9353_s1 + $0x14e8] sm:$0xff] }
  0xdc   :  { %1342 = vmatpush.msra.mxu1 %v260_v54  ;;  %1296 = vmatmul.f32.vlgmr.msra.gmra.mxu0 %v5942_v60  ;;  %v275_v54 = vld [vmem:[%s9353_s1 + $0x6f0] sm:$0xff] }
  0xdd   :  { %1364 = vmatpush.msrb.mxu2 %v358_v55  ;;  %1384 = vmatpush.msrb.mxu0 %v470_v56  ;;  %v149_v55 = vld [vmem:[%s9353_s1 + $0x300] sm:$0xff]  ;;  %v582_v56 = vld [vmem:[%s9353_s1 + $0x1088] sm:$0xff] }
  0xde   :  { %1326 = vmatpush.msra.mxu3 %v120_v58  ;;  %1343 = vmatpush.msra.mxu1 %v253_v59  ;;  %v715_v58 = vld [vmem:[%s9353_s1 + $0x14b0] sm:$0xff]  ;;  %v268_v59 = vld [vmem:[%s9353_s1 + $0x6b8] sm:$0xff] }
  0xdf   :  { %4473 = vmatmul.msk.f32.vlgmr.msrb.gmra.mxu1 %vm757_vm0, %v5960_v3  ;;  %1365 = vmatpush.msrb.mxu2 %v351_v61  ;;  %v142_v61 = vld [vmem:[%s9353_s1 + $0x2c8] sm:$0xff] }
  0xe0   :  { %1385 = vmatpush.msrb.mxu0 %v463_v62  ;;  %1327 = vmatpush.msra.mxu3 %v113_v63  ;;  %v575_v62 = vld [vmem:[%s9353_s1 + $0x1050] sm:$0xff]  ;;  %v708_v63 = vld [vmem:[%s9353_s1 + $0x1478] sm:$0xff] }
  0xe1   :  { %1344 = vmatpush.msra.mxu1 %v246_v0  ;;  %1366 = vmatpush.msrb.mxu2 %v344_v1  ;;  %v261_v0 = vld [vmem:[%s9353_s1 + $0x680] sm:$0xff]  ;;  %v135_v1 = vld [vmem:[%s9353_s1 + $0x290] sm:$0xff] }
  0xe2   :  { %1386 = vmatpush.msrb.mxu0 %v456_v4  ;;  %1328 = vmatpush.msra.mxu3 %v106_v5  ;;  %v568_v4 = vld [vmem:[%s9353_s1 + $0x1018] sm:$0xff]  ;;  %v701_v5 = vld [vmem:[%s9353_s1 + $0x1440] sm:$0xff] }
  0xe3   :  { %1345 = vmatpush.msra.mxu1 %v239_v6  ;;  %1367 = vmatpush.msrb.mxu2 %v337_v8  ;;  %v254_v6 = vld [vmem:[%s9353_s1 + $0x648] sm:$0xff]  ;;  %v128_v8 = vld [vmem:[%s9353_s1 + $0x258] sm:$0xff] }
  0xe4   :  { %1387 = vmatpush.msrb.mxu0 %v449_v10  ;;  %1329 = vmatpush.msra.mxu3 %v99_v11  ;;  %v561_v10 = vld [vmem:[%s9353_s1 + $0xfe0] sm:$0xff]  ;;  %v694_v11 = vld [vmem:[%s9353_s1 + $0x1408] sm:$0xff] }
  0xe5   :  { %1346 = vmatpush.msra.mxu1 %v232_v12  ;;  %1368 = vmatpush.msrb.mxu2 %v330_v14  ;;  %v247_v12 = vld [vmem:[%s9353_s1 + $0x610] sm:$0xff]  ;;  %v121_v14 = vld [vmem:[%s9353_s1 + $0x220] sm:$0xff] }
  0xe6   :  { %1388 = vmatpush.msrb.mxu0 %v442_v15  ;;  %1330 = vmatpush.msra.mxu3 %v92_v16  ;;  %v554_v15 = vld [vmem:[%s9353_s1 + $0xfa8] sm:$0xff]  ;;  %v687_v16 = vld [vmem:[%s9353_s1 + $0x13d0] sm:$0xff] }
  0xe7   :  { %1347 = vmatpush.msra.mxu1 %v225_v17  ;;  %1369 = vmatpush.msrb.mxu2 %v323_v18  ;;  %v240_v17 = vld [vmem:[%s9353_s1 + $0x5d8] sm:$0xff]  ;;  %v114_v18 = vld [vmem:[%s9353_s1 + $0x1e8] sm:$0xff] }
  0xe8   :  { %1389 = vmatpush.msrb.mxu0 %v435_v19  ;;  %1331 = vmatpush.msra.mxu3 %v85_v20  ;;  %v547_v19 = vld [vmem:[%s9353_s1 + $0xf70] sm:$0xff]  ;;  %v680_v20 = vld [vmem:[%s9353_s1 + $0x1398] sm:$0xff] }
  0xe9   :  { %1348 = vmatpush.msra.mxu1 %v218_v21  ;;  %1370 = vmatpush.msrb.mxu2 %v316_v22  ;;  %v233_v21 = vld [vmem:[%s9353_s1 + $0x5a0] sm:$0xff]  ;;  %v107_v22 = vld [vmem:[%s9353_s1 + $0x1b0] sm:$0xff] }
  0xea   :  { %1390 = vmatpush.msrb.mxu0 %v428_v57  ;;  %1332 = vmatpush.msra.mxu3 %v78_v23  ;;  %v540_v57 = vld [vmem:[%s9353_s1 + $0xf38] sm:$0xff]  ;;  %v673_v23 = vld [vmem:[%s9353_s1 + $0x1360] sm:$0xff] }
  0xeb   :  { %1349 = vmatpush.msra.mxu1 %v211_v24  ;;  %1371 = vmatpush.msrb.mxu2 %v309_v26  ;;  %v226_v24 = vld [vmem:[%s9353_s1 + $0x568] sm:$0xff]  ;;  %v100_v26 = vld [vmem:[%s9353_s1 + $0x178] sm:$0xff] }
  0xec   :  { %1391 = vmatpush.msrb.mxu0 %v421_v27  ;;  %1333 = vmatpush.msra.mxu3 %v71_v51  ;;  %v533_v27 = vld [vmem:[%s9353_s1 + $0xf00] sm:$0xff]  ;;  %v666_v51 = vld [vmem:[%s9353_s1 + $0x1328] sm:$0xff] }
  0xed   :  { %1350 = vmatpush.msra.mxu1 %v204_v52  ;;  %1372 = vmatpush.msrb.mxu2 %v302_v28  ;;  %v219_v52 = vld [vmem:[%s9353_s1 + $0x530] sm:$0xff]  ;;  %v93_v28 = vld [vmem:[%s9353_s1 + $0x140] sm:$0xff] }
  0xee   :  { %1392 = vmatpush.msrb.mxu0 %v414_v29  ;;  %1334 = vmatpush.msra.mxu3 %v64_v30  ;;  %v526_v29 = vld [vmem:[%s9353_s1 + $0xec8] sm:$0xff]  ;;  %v659_v30 = vld [vmem:[%s9353_s1 + $0x12f0] sm:$0xff] }
  0xef   :  { %1351 = vmatpush.msra.mxu1 %v197_v31  ;;  %1373 = vmatpush.msrb.mxu2 %v295_v32  ;;  %v212_v31 = vld [vmem:[%s9353_s1 + $0x4f8] sm:$0xff]  ;;  %v86_v32 = vld [vmem:[%s9353_s1 + $0x108] sm:$0xff] }
  0xf0   :  { %1393 = vmatpush.msrb.mxu0 %v407_v33  ;;  %1335 = vmatpush.msra.mxu3 %v57_v34  ;;  %v519_v33 = vld [vmem:[%s9353_s1 + $0xe90] sm:$0xff]  ;;  %v652_v34 = vld [vmem:[%s9353_s1 + $0x12b8] sm:$0xff] }
  0xf1   :  { %1352 = vmatpush.msra.mxu1 %v190_v13  ;;  %1374 = vmatpush.msrb.mxu2 %v288_v36  ;;  %v205_v13 = vld [vmem:[%s9353_s1 + $0x4c0] sm:$0xff]  ;;  %v79_v36 = vld [vmem:[%s9353_s1 + $0xd0] sm:$0xff] }
  0xf2   :  { %1394 = vmatpush.msrb.mxu0 %v400_v37  ;;  %1400 = vmatpush.msrb.mxu3 %v610_v38  ;;  %v512_v37 = vld [vmem:[%s9353_s1 + $0xe58] sm:$0xff]  ;;  %v645_v38 = vld [vmem:[%s9353_s1 + $0x1280] sm:$0xff] }
  0xf3   :  { %1353 = vmatpush.msra.mxu1 %v183_v40  ;;  %1375 = vmatpush.msrb.mxu2 %v281_v9  ;;  %v198_v40 = vld [vmem:[%s9353_s1 + $0x488] sm:$0xff]  ;;  %v72_v9 = vld [vmem:[%s9353_s1 + $0x98] sm:$0xff] }
  0xf4   :  { %1395 = vmatpush.msrb.mxu0 %v393_v41  ;;  %1401 = vmatpush.msrb.mxu3 %v603_v42  ;;  %v505_v41 = vld [vmem:[%s9353_s1 + $0xe20] sm:$0xff]  ;;  %v638_v42 = vld [vmem:[%s9353_s1 + $0x1248] sm:$0xff] }
  0xf5   :  { %1354 = vmatpush.msra.mxu1 %v176_v7  ;;  %1454 = vmatpush.msra.mxu2 %v736_v44  ;;  %v191_v7 = vld [vmem:[%s9353_s1 + $0x450] sm:$0xff]  ;;  %v65_v44 = vld [vmem:[%s9353_s1 + $0x60] sm:$0xff] }
  0xf6   :  { %1460 = vmatpush.msra.mxu0 %v163_v45  ;;  %1402 = vmatpush.msrb.mxu3 %v596_v46  ;;  %v387_v45 = vld [vmem:[%s9353_s1 + $0xa70] sm:$0xff] }
  0xf7   :  { %1355 = vmatpush.msra.mxu1 %v169_v47  ;;  %1455 = vmatpush.msra.mxu2 %v729_v48  ;;  %v631_v46 = vld [vmem:[%s9353_s1 + $0x1210] sm:$0xff]  ;;  %v184_v47 = vld [vmem:[%s9353_s1 + $0x418] sm:$0xff]  ;;  %v58_v48 = vld [vmem:[%s9353_s1 + $0x28] sm:$0xff] }
  0xf8   :  { %1461 = vmatpush.msra.mxu0 %v156_v49  ;;  %1376 = vmatmul.f32.vlgmr.msrb.gmra.mxu2 %v5900_v43  ;;  %v380_v49 = vld [vmem:[%s9353_s1 + $0xa38] sm:$0xff] }
  0xf9   :  { %1403 = vmatpush.msrb.mxu3 %v589_v50  ;;  %1420 = vmatpush.msrb.mxu1 %v722_v53  ;;  %v624_v50 = vld [vmem:[%s9353_s1 + $0x11d8] sm:$0xff]  ;;  %v177_v53 = vld [vmem:[%s9353_s1 + $0x3e0] sm:$0xff] }
  0xfa   :  { %1480 = vmatpush.msrb.mxu2 %v275_v54  ;;  %1462 = vmatpush.msra.mxu0 %v149_v55  ;;  %v611_v54 = vld [vmem:[%s9353_s1 + $0x1170] sm:$0xff]  ;;  %v373_v55 = vld [vmem:[%s9353_s1 + $0xa00] sm:$0xff] }
  0xfb   :  { %1404 = vmatpush.msrb.mxu3 %v582_v56  ;;  %1421 = vmatpush.msrb.mxu1 %v715_v58  ;;  %v617_v56 = vld [vmem:[%s9353_s1 + $0x11a0] sm:$0xff]  ;;  %v170_v58 = vld [vmem:[%s9353_s1 + $0x3a8] sm:$0xff] }
  0xfc   :  { %1481 = vmatpush.msrb.mxu2 %v268_v59  ;;  %1463 = vmatpush.msra.mxu0 %v142_v61  ;;  %v604_v59 = vld [vmem:[%s9353_s1 + $0x1138] sm:$0xff]  ;;  %v366_v61 = vld [vmem:[%s9353_s1 + $0x9c8] sm:$0xff] }
  0xfd   :  { %1405 = vmatpush.msrb.mxu3 %v575_v62  ;;  %1422 = vmatpush.msrb.mxu1 %v708_v63  ;;  %v499_v62 = vld [vmem:[%s9353_s1 + $0xdf0] sm:$0xff] }
  0xfe   :  { %1482 = vmatpush.msrb.mxu2 %v261_v0  ;;  %1464 = vmatpush.msra.mxu0 %v135_v1  ;;  %v723_v63 = vld [vmem:[%s9353_s1 + $0x14f0] sm:$0xff]  ;;  %v597_v0 = vld [vmem:[%s9353_s1 + $0x1100] sm:$0xff] }
  0xff   :  { %1406 = vmatpush.msrb.mxu3 %v568_v4  ;;  %1423 = vmatpush.msrb.mxu1 %v701_v5  ;;  %v359_v1 = vld [vmem:[%s9353_s1 + $0x990] sm:$0xff]  ;;  %v492_v4 = vld [vmem:[%s9353_s1 + $0xdb8] sm:$0xff] }
 0x100   :  { %1483 = vmatpush.msrb.mxu2 %v254_v6  ;;  %1465 = vmatpush.msra.mxu0 %v128_v8  ;;  %v716_v5 = vld [vmem:[%s9353_s1 + $0x14b8] sm:$0xff]  ;;  %v590_v6 = vld [vmem:[%s9353_s1 + $0x10c8] sm:$0xff] }
 0x101   :  { %1407 = vmatpush.msrb.mxu3 %v561_v10  ;;  %1424 = vmatpush.msrb.mxu1 %v694_v11  ;;  %v352_v8 = vld [vmem:[%s9353_s1 + $0x958] sm:$0xff]  ;;  %v485_v10 = vld [vmem:[%s9353_s1 + $0xd80] sm:$0xff] }
 0x102   :  { %1484 = vmatpush.msrb.mxu2 %v247_v12  ;;  %1466 = vmatpush.msra.mxu0 %v121_v14  ;;  %v709_v11 = vld [vmem:[%s9353_s1 + $0x1480] sm:$0xff]  ;;  %v583_v12 = vld [vmem:[%s9353_s1 + $0x1090] sm:$0xff] }
 0x103   :  { %1408 = vmatpush.msrb.mxu3 %v554_v15  ;;  %1425 = vmatpush.msrb.mxu1 %v687_v16  ;;  %v345_v14 = vld [vmem:[%s9353_s1 + $0x920] sm:$0xff]  ;;  %v478_v15 = vld [vmem:[%s9353_s1 + $0xd48] sm:$0xff] }
 0x104   :  { %1485 = vmatpush.msrb.mxu2 %v240_v17  ;;  %1467 = vmatpush.msra.mxu0 %v114_v18  ;;  %v702_v16 = vld [vmem:[%s9353_s1 + $0x1448] sm:$0xff]  ;;  %v576_v17 = vld [vmem:[%s9353_s1 + $0x1058] sm:$0xff] }
 0x105   :  { %1409 = vmatpush.msrb.mxu3 %v547_v19  ;;  %1426 = vmatpush.msrb.mxu1 %v680_v20  ;;  %v338_v18 = vld [vmem:[%s9353_s1 + $0x8e8] sm:$0xff]  ;;  %v471_v19 = vld [vmem:[%s9353_s1 + $0xd10] sm:$0xff] }
 0x106   :  { %1486 = vmatpush.msrb.mxu2 %v233_v21  ;;  %1468 = vmatpush.msra.mxu0 %v107_v22  ;;  %v695_v20 = vld [vmem:[%s9353_s1 + $0x1410] sm:$0xff]  ;;  %v569_v21 = vld [vmem:[%s9353_s1 + $0x1020] sm:$0xff] }
 0x107   :  { %1410 = vmatpush.msrb.mxu3 %v540_v57  ;;  %1427 = vmatpush.msrb.mxu1 %v673_v23  ;;  %v331_v22 = vld [vmem:[%s9353_s1 + $0x8b0] sm:$0xff]  ;;  %v464_v57 = vld [vmem:[%s9353_s1 + $0xcd8] sm:$0xff] }
 0x108   :  { %1487 = vmatpush.msrb.mxu2 %v226_v24  ;;  %1469 = vmatpush.msra.mxu0 %v100_v26  ;;  %v688_v23 = vld [vmem:[%s9353_s1 + $0x13d8] sm:$0xff]  ;;  %v562_v24 = vld [vmem:[%s9353_s1 + $0xfe8] sm:$0xff] }
 0x109   :  { %1411 = vmatpush.msrb.mxu3 %v533_v27  ;;  %1428 = vmatpush.msrb.mxu1 %v666_v51  ;;  %v324_v26 = vld [vmem:[%s9353_s1 + $0x878] sm:$0xff]  ;;  %v457_v27 = vld [vmem:[%s9353_s1 + $0xca0] sm:$0xff] }
 0x10a   :  { %1488 = vmatpush.msrb.mxu2 %v219_v52  ;;  %1336 = vmatmul.f32.vlgmr.msra.gmra.mxu3 %v5828_v25  ;;  %v681_v51 = vld [vmem:[%s9353_s1 + $0x13a0] sm:$0xff]  ;;  %v555_v52 = vld [vmem:[%s9353_s1 + $0xfb0] sm:$0xff] }
 0x10b   :  { %1470 = vmatpush.msra.mxu0 %v93_v28  ;;  %1412 = vmatpush.msrb.mxu3 %v526_v29  ;;  %v317_v28 = vld [vmem:[%s9353_s1 + $0x840] sm:$0xff]  ;;  %v450_v29 = vld [vmem:[%s9353_s1 + $0xc68] sm:$0xff] }
 0x10c   :  { %1429 = vmatpush.msrb.mxu1 %v659_v30  ;;  %1489 = vmatpush.msrb.mxu2 %v212_v31  ;;  %v674_v30 = vld [vmem:[%s9353_s1 + $0x1368] sm:$0xff]  ;;  %v548_v31 = vld [vmem:[%s9353_s1 + $0xf78] sm:$0xff] }
 0x10d   :  { %1471 = vmatpush.msra.mxu0 %v86_v32  ;;  %1413 = vmatpush.msrb.mxu3 %v519_v33  ;;  %v310_v32 = vld [vmem:[%s9353_s1 + $0x808] sm:$0xff]  ;;  %v443_v33 = vld [vmem:[%s9353_s1 + $0xc30] sm:$0xff] }
 0x10e   :  { %1430 = vmatpush.msrb.mxu1 %v652_v34  ;;  %1490 = vmatpush.msrb.mxu2 %v205_v13  ;;  %v667_v34 = vld [vmem:[%s9353_s1 + $0x1330] sm:$0xff]  ;;  %v541_v13 = vld [vmem:[%s9353_s1 + $0xf40] sm:$0xff] }
 0x10f   :  { %1472 = vmatpush.msra.mxu0 %v79_v36  ;;  %1414 = vmatpush.msrb.mxu3 %v512_v37  ;;  %v303_v36 = vld [vmem:[%s9353_s1 + $0x7d0] sm:$0xff]  ;;  %v436_v37 = vld [vmem:[%s9353_s1 + $0xbf8] sm:$0xff] }
 0x110   :  { %1431 = vmatpush.msrb.mxu1 %v645_v38  ;;  %1491 = vmatpush.msrb.mxu2 %v198_v40  ;;  %v660_v38 = vld [vmem:[%s9353_s1 + $0x12f8] sm:$0xff]  ;;  %v534_v40 = vld [vmem:[%s9353_s1 + $0xf08] sm:$0xff] }
 0x111   :  { %1473 = vmatpush.msra.mxu0 %v72_v9  ;;  %1415 = vmatpush.msrb.mxu3 %v505_v41  ;;  %v296_v9 = vld [vmem:[%s9353_s1 + $0x798] sm:$0xff]  ;;  %v429_v41 = vld [vmem:[%s9353_s1 + $0xbc0] sm:$0xff] }
 0x112   :  { %1432 = vmatpush.msrb.mxu1 %v638_v42  ;;  %1492 = vmatpush.msrb.mxu2 %v191_v7  ;;  %v653_v42 = vld [vmem:[%s9353_s1 + $0x12c0] sm:$0xff]  ;;  %v527_v7 = vld [vmem:[%s9353_s1 + $0xed0] sm:$0xff] }
 0x113   :  { %1356 = vmatmul.f32.vlgmr.msra.gmra.mxu1 %v5879_v39  ;;  %1416 = vmatmul.f32.vlgmr.msrb.gmra.mxu3 %v5885_v2 }
 0x114   :  { %1474 = vmatpush.msra.mxu0 %v65_v44  ;;  %1500 = vmatpush.msra.mxu3 %v387_v45  ;;  %v6431_v44 = vpop.f32.mrf.mxu1  ;;  %v289_v45 = vld [vmem:[%s9353_s1 + $0x760] sm:$0xff] }
 0x115   :  { %1433 = vmatpush.msrb.mxu1 %v631_v46  ;;  %1493 = vmatpush.msrb.mxu2 %v184_v47  ;;  %v422_v46 = vld [vmem:[%s9353_s1 + $0xb88] sm:$0xff] }
 0x116   :  { %1475 = vmatpush.msra.mxu0 %v58_v48  ;;  %1501 = vmatpush.msra.mxu3 %v380_v49  ;;  %v646_v47 = vld [vmem:[%s9353_s1 + $0x1288] sm:$0xff]  ;;  %v520_v48 = vld [vmem:[%s9353_s1 + $0xe98] sm:$0xff] }
 0x117   :  { %1396 = vmatmul.f32.vlgmr.msrb.gmra.mxu0 %v5867_v35  ;;  %1434 = vmatpush.msrb.mxu1 %v624_v50  ;;  %v282_v49 = vld [vmem:[%s9353_s1 + $0x728] sm:$0xff]  ;;  %v415_v50 = vld [vmem:[%s9353_s1 + $0xb50] sm:$0xff] }
 0x118   :  { %1494 = vmatpush.msrb.mxu2 %v177_v53  ;;  %1540 = vmatpush.msrb.mxu0 %v611_v54  ;;  %v639_v53 = vld [vmem:[%s9353_s1 + $0x1250] sm:$0xff]  ;;  %v6454_v54 = vpop.f32.mrf.mxu2 }
 0x119   :  { %4474 = vmatmul.msk.f32.vlgmr.msra.gmra.mxu2 %vm757_vm0, %v5960_v3  ;;  %1502 = vmatpush.msra.mxu3 %v373_v55  ;;  %v513_v55 = vld [vmem:[%s9353_s1 + $0xe60] sm:$0xff] }
 0x11a   :  { %1435 = vmatpush.msrb.mxu1 %v617_v56  ;;  %1495 = vmatpush.msrb.mxu2 %v170_v58  ;;  %v737_v56 = vld [vmem:[%s9353_s1 + $0x1560] sm:$0xff]  ;;  %v408_v58 = vld [vmem:[%s9353_s1 + $0xb18] sm:$0xff] }
 0x11b   :  { %1541 = vmatpush.msrb.mxu0 %v604_v59  ;;  %1503 = vmatpush.msra.mxu3 %v366_v61  ;;  %v6466_v59 = vpop.f32.mrf.mxu0  ;;  %v632_v61 = vld [vmem:[%s9353_s1 + $0x1218] sm:$0xff] }
 0x11c   :  { %1520 = vmatpush.msra.mxu1 %v499_v62  ;;  %1560 = vmatpush.msra.mxu2 %v723_v63  ;;  %v730_v62 = vld [vmem:[%s9353_s1 + $0x1528] sm:$0xff]  ;;  %v401_v63 = vld [vmem:[%s9353_s1 + $0xae0] sm:$0xff] }
 0x11d   :  { %1542 = vmatpush.msrb.mxu0 %v597_v0  ;;  %1436 = vmatmul.f32.vlgmr.msrb.gmra.mxu1 %v5942_v60  ;;  %v625_v0 = vld [vmem:[%s9353_s1 + $0x11e0] sm:$0xff] }
 0x11e   :  { %1504 = vmatpush.msra.mxu3 %v359_v1  ;;  %1521 = vmatpush.msra.mxu1 %v492_v4  ;;  %v388_v1 = vld [vmem:[%s9353_s1 + $0xa78] sm:$0xff]  ;;  %v6491_v4 = vpop.f32.mrf.mxu1 }
 0x11f   :  { %1561 = vmatpush.msra.mxu2 %v716_v5  ;;  %1543 = vmatpush.msrb.mxu0 %v590_v6  ;;  %v394_v5 = vld [vmem:[%s9353_s1 + $0xaa8] sm:$0xff]  ;;  %v269_v6 = vld [vmem:[%s9353_s1 + $0x6c0] sm:$0xff] }
 0x120   :  { %1505 = vmatpush.msra.mxu3 %v352_v8  ;;  %1522 = vmatpush.msra.mxu1 %v485_v10  ;;  %v381_v8 = vld [vmem:[%s9353_s1 + $0xa40] sm:$0xff]  ;;  %v164_v10 = vld [vmem:[%s9353_s1 + $0x378] sm:$0xff] }
 0x121   :  { %1562 = vmatpush.msra.mxu2 %v709_v11  ;;  %1544 = vmatpush.msrb.mxu0 %v583_v12  ;;  %v500_v11 = vld [vmem:[%s9353_s1 + $0xdf8] sm:$0xff]  ;;  %v262_v12 = vld [vmem:[%s9353_s1 + $0x688] sm:$0xff] }
 0x122   :  { %1506 = vmatpush.msra.mxu3 %v345_v14  ;;  %1523 = vmatpush.msra.mxu1 %v478_v15  ;;  %v6514_v14 = vpop.f32.mrf.mxu3  ;;  %v6516_v15 = vpop.f32.mrf.mxu2 }
 0x123   :  { %1563 = vmatpush.msra.mxu2 %v702_v16  ;;  %1545 = vmatpush.msrb.mxu0 %v576_v17  ;;  %v374_v16 = vld [vmem:[%s9353_s1 + $0xa08] sm:$0xff]  ;;  %v157_v17 = vld [vmem:[%s9353_s1 + $0x340] sm:$0xff] }
 0x124   :  { %1507 = vmatpush.msra.mxu3 %v338_v18  ;;  %1524 = vmatpush.msra.mxu1 %v471_v19  ;;  %v6525_v18 = vpop.f32.mrf.mxu0  ;;  %v493_v19 = vld [vmem:[%s9353_s1 + $0xdc0] sm:$0xff] }
 0x125   :  { %1564 = vmatpush.msra.mxu2 %v695_v20  ;;  %1546 = vmatpush.msrb.mxu0 %v569_v21  ;;  %v255_v20 = vld [vmem:[%s9353_s1 + $0x650] sm:$0xff]  ;;  %v150_v21 = vld [vmem:[%s9353_s1 + $0x308] sm:$0xff] }
 0x126   :  { %1508 = vmatpush.msra.mxu3 %v331_v22  ;;  %1525 = vmatpush.msra.mxu1 %v464_v57  ;;  %v6540_v22 = vpop.f32.mrf.mxu1  ;;  %v486_v57 = vld [vmem:[%s9353_s1 + $0xd88] sm:$0xff] }
 0x127   :  { %1565 = vmatpush.msra.mxu2 %v688_v23  ;;  %1547 = vmatpush.msrb.mxu0 %v562_v24  ;;  %v360_v23 = vld [vmem:[%s9353_s1 + $0x998] sm:$0xff]  ;;  %v479_v24 = vld [vmem:[%s9353_s1 + $0xd50] sm:$0xff] }
 0x128   :  { %1509 = vmatpush.msra.mxu3 %v324_v26  ;;  %1526 = vmatpush.msra.mxu1 %v457_v27  ;;  %v241_v26 = vld [vmem:[%s9353_s1 + $0x5e0] sm:$0xff] }
 0x129   :  { %1566 = vmatpush.msra.mxu2 %v681_v51  ;;  %1548 = vmatpush.msrb.mxu0 %v555_v52  ;;  %v353_v27 = vld [vmem:[%s9353_s1 + $0x960] sm:$0xff] }
 0x12a   :  { %1510 = vmatpush.msra.mxu3 %v317_v28  ;;  %1527 = vmatpush.msra.mxu1 %v450_v29  ;;  %v917_v51 = vpop.f32.mrf.mxu3  ;;  %v937_v52 = vpop.f32.mrf.mxu2  ;;  %v136_v28 = vld [vmem:[%s9353_s1 + $0x298] sm:$0xff]  ;;  %v234_v29 = vld [vmem:[%s9353_s1 + $0x5a8] sm:$0xff] }
 0x12b   :  { %1567 = vmatpush.msra.mxu2 %v674_v30  ;;  %1549 = vmatpush.msrb.mxu0 %v548_v31  ;;  %v346_v30 = vld [vmem:[%s9353_s1 + $0x928] sm:$0xff]  ;;  %v798_v31 = vadd.f32 %v6431_v44, %v6466_v59  ;;  %v115_v44 = vld [vmem:[%s9353_s1 + $0x1f0] sm:$0xff]  ;;  %v101_v59 = vld [vmem:[%s9353_s1 + $0x180] sm:$0xff] }
 0x12c   :  { %1511 = vmatpush.msra.mxu3 %v310_v32  ;;  %1528 = vmatpush.msra.mxu1 %v443_v33  ;;  %v957_v32 = vpop.f32.mrf.mxu0  ;;  %v129_v33 = vld [vmem:[%s9353_s1 + $0x260] sm:$0xff] }
 0x12d   :  { %1568 = vmatpush.msra.mxu2 %v667_v34  ;;  %1550 = vmatpush.msrb.mxu0 %v541_v13  ;;  %v465_v34 = vld [vmem:[%s9353_s1 + $0xce0] sm:$0xff]  ;;  %v938_v13 = vadd.f32 %v937_v52, %v917_v51  ;;  %v738_v51 = vld [vmem:[%s9353_s1 + $0x1568] sm:$0xff] }
 0x12e   :  { %1512 = vmatpush.msra.mxu3 %v303_v36  ;;  %1529 = vmatpush.msra.mxu1 %v436_v37  ;;  %v227_v36 = vld [vmem:[%s9353_s1 + $0x570] sm:$0xff] }
 0x12f   :  { %1569 = vmatpush.msra.mxu2 %v660_v38  ;;  %1551 = vmatpush.msrb.mxu0 %v534_v40  ;;  %v339_v37 = vld [vmem:[%s9353_s1 + $0x8f0] sm:$0xff]  ;;  %v122_v38 = vld [vmem:[%s9353_s1 + $0x228] sm:$0xff] }
 0x130   :  { %1513 = vmatpush.msra.mxu3 %v296_v9  ;;  %1530 = vmatpush.msra.mxu1 %v429_v41  ;;  %v458_v40 = vld [vmem:[%s9353_s1 + $0xca8] sm:$0xff]  ;;  %v220_v9 = vld [vmem:[%s9353_s1 + $0x538] sm:$0xff] }
 0x131   :  { %1570 = vmatpush.msra.mxu2 %v653_v42  ;;  %1552 = vmatpush.msrb.mxu0 %v527_v7  ;;  %v332_v41 = vld [vmem:[%s9353_s1 + $0x8b8] sm:$0xff]  ;;  %v818_v42 = vadd.f32 %v6454_v54, %v798_v31  ;;  %v6605_v7 = vpop.f32.mrf.mxu1  ;;  %v318_v54 = vld [vmem:[%s9353_s1 + $0x848] sm:$0xff]  ;;  %v731_v31 = vld [vmem:[%s9353_s1 + $0x1530] sm:$0xff] }
 0x132   :  { %1514 = vmatpush.msra.mxu3 %v289_v45  ;;  %1531 = vmatpush.msra.mxu1 %v422_v46  ;;  %v451_v45 = vld [vmem:[%s9353_s1 + $0xc70] sm:$0xff]  ;;  %v958_v46 = vadd.f32 %v957_v32, %v938_v13  ;;  %v1893_v13 = vld [vmem:[%s9354_s2 + $0xf8] sm:$0xff] }
 0x133   :  { %1571 = vmatpush.msra.mxu2 %v646_v47  ;;  %1553 = vmatpush.msrb.mxu0 %v520_v48  ;;  %v213_v47 = vld [vmem:[%s9353_s1 + $0x500] sm:$0xff] }
 0x134   :  { %1496 = vmatmul.f32.vlgmr.msrb.gmra.mxu2 %v5879_v39  ;;  %1515 = vmatpush.msra.mxu3 %v282_v49  ;;  %v506_v39 = vld [vmem:[%s9353_s1 + $0xe28] sm:$0xff]  ;;  %v325_v48 = vld [vmem:[%s9353_s1 + $0x880] sm:$0xff]  ;;  %v108_v49 = vld [vmem:[%s9353_s1 + $0x1b8] sm:$0xff] }
 0x135   :  { %1532 = vmatpush.msra.mxu1 %v415_v50  ;;  %1572 = vmatpush.msra.mxu2 %v639_v53  ;;  %v444_v50 = vld [vmem:[%s9353_s1 + $0xc38] sm:$0xff]  ;;  %v206_v53 = vld [vmem:[%s9353_s1 + $0x4c8] sm:$0xff] }
 0x136   :  { %1516 = vmatmul.f32.vlgmr.msra.gmra.mxu3 %v5900_v43  ;;  %1554 = vmatpush.msrb.mxu0 %v513_v55  ;;  %v276_v43 = vld [vmem:[%s9353_s1 + $0x6f8] sm:$0xff]  ;;  %v838_v55 = vadd.f32 %v6514_v14, %v818_v42  ;;  %v185_v14 = vld [vmem:[%s9353_s1 + $0x420] sm:$0xff]  ;;  %v1892_v42 = vld [vmem:[%s9354_s2 + $0xf0] sm:$0xff] }
 0x137   :  { %1594 = vmatpush.msrb.mxu3 %v737_v56  ;;  %1533 = vmatpush.msra.mxu1 %v408_v58  ;;  %v997_v56 = vpop.f32.mrf.mxu3  ;;  %v6632_v58 = vpop.f32.mrf.mxu0 }
 0x138   :  { %1573 = vmatpush.msra.mxu2 %v632_v61  ;;  %1476 = vmatmul.f32.vlgmr.msra.gmra.mxu0 %v5828_v25  ;;  %v618_v25 = vld [vmem:[%s9353_s1 + $0x11a8] sm:$0xff]  ;;  %v437_v61 = vld [vmem:[%s9353_s1 + $0xc00] sm:$0xff] }
 0x139   :  { %1555 = vmatpush.msrb.mxu0 %v506_v39  ;;  %1595 = vmatpush.msrb.mxu3 %v730_v62  ;;  %v978_v39 = vadd.f32 %v6540_v22, %v958_v46  ;;  %v199_v62 = vld [vmem:[%s9353_s1 + $0x490] sm:$0xff]  ;;  %v73_v22 = vld [vmem:[%s9353_s1 + $0xa0] sm:$0xff]  ;;  %v598_v46 = vld [vmem:[%s9353_s1 + $0x1108] sm:$0xff] }
 0x13a   :  { %1534 = vmatpush.msra.mxu1 %v401_v63  ;;  %1574 = vmatpush.msra.mxu2 %v625_v0  ;;  %v311_v63 = vld [vmem:[%s9353_s1 + $0x810] sm:$0xff]  ;;  %v94_v0 = vld [vmem:[%s9353_s1 + $0x148] sm:$0xff] }
 0x13b   :  { %1620 = vmatpush.msra.mxu3 %v276_v43  ;;  %1640 = vmatpush.msra.mxu0 %v388_v1  ;;  %v430_v43 = vld [vmem:[%s9353_s1 + $0xbc8] sm:$0xff]  ;;  %v192_v1 = vld [vmem:[%s9353_s1 + $0x458] sm:$0xff] }
 0x13c   :  { %1535 = vmatpush.msra.mxu1 %v394_v5  ;;  %1575 = vmatpush.msra.mxu2 %v618_v25  ;;  %v304_v5 = vld [vmem:[%s9353_s1 + $0x7d8] sm:$0xff]  ;;  %v858_v25 = vadd.f32 %v6525_v18, %v838_v55 }
 0x13d   :  { %1621 = vmatpush.msra.mxu3 %v269_v6  ;;  %1641 = vmatpush.msra.mxu0 %v381_v8  ;;  %v1017_v6 = vpop.f32.mrf.mxu2  ;;  %v6660_v8 = vpop.f32.mrf.mxu1  ;;  %v416_v18 = vld [vmem:[%s9353_s1 + $0xb58] sm:$0xff] }
 0x13e   :  { %1576 = vmatmul.f32.vlgmr.msra.gmra.mxu2 %v5942_v60  ;;  %1600 = vmatpush.msrb.mxu1 %v164_v10  ;;  %v367_v60 = vld [vmem:[%s9353_s1 + $0x9d0] sm:$0xff] }
 0x13f   :  { %1660 = vmatpush.msrb.mxu2 %v500_v11  ;;  %1622 = vmatpush.msra.mxu3 %v262_v12  ;;  %v87_v10 = vld [vmem:[%s9353_s1 + $0x110] sm:$0xff]  ;;  %v998_v12 = vadd.f32 %v997_v56, %v978_v39 }
 0x140   :  { %1642 = vmatpush.msra.mxu0 %v374_v16  ;;  %1536 = vmatmul.f32.vlgmr.msra.gmra.mxu1 %v5867_v35  ;;  %v248_v35 = vld [vmem:[%s9353_s1 + $0x618] sm:$0xff]  ;;  %v423_v11 = vld [vmem:[%s9353_s1 + $0xb90] sm:$0xff]  ;;  %v297_v16 = vld [vmem:[%s9353_s1 + $0x7a0] sm:$0xff] }
 0x141   :  { %4475 = vmatmul.msk.f32.vlgmr.msrb.gmra.mxu3 %vm757_vm0, %v5960_v3  ;;  %1601 = vmatpush.msrb.mxu1 %v157_v17  ;;  %v143_v3 = vld [vmem:[%s9353_s1 + $0x2d0] sm:$0xff]  ;;  %v80_v17 = vld [vmem:[%s9353_s1 + $0xd8] sm:$0xff] }
 0x142   :  { %1661 = vmatpush.msrb.mxu2 %v493_v19  ;;  %1623 = vmatpush.msra.mxu3 %v255_v20  ;;  %v178_v19 = vld [vmem:[%s9353_s1 + $0x3e8] sm:$0xff] }
 0x143   :  { %1643 = vmatpush.msra.mxu0 %v367_v60  ;;  %1602 = vmatpush.msrb.mxu1 %v150_v21  ;;  %v290_v20 = vld [vmem:[%s9353_s1 + $0x768] sm:$0xff]  ;;  %v878_v60 = vadd.f32 %v6491_v4, %v858_v25  ;;  %v6687_v21 = vpop.f32.mrf.mxu3  ;;  %v283_v4 = vld [vmem:[%s9353_s1 + $0x730] sm:$0xff]  ;;  %v1889_v25 = vld [vmem:[%s9354_s2 + $0xd8] sm:$0xff] }
 0x144   :  { %1556 = vmatmul.f32.vlgmr.msrb.gmra.mxu0 %v5885_v2  ;;  %1662 = vmatpush.msrb.mxu2 %v486_v57  ;;  %v472_v2 = vld [vmem:[%s9353_s1 + $0xd18] sm:$0xff]  ;;  %v409_v57 = vld [vmem:[%s9353_s1 + $0xb20] sm:$0xff] }
 0x145   :  { %1624 = vmatpush.msra.mxu3 %v248_v35  ;;  %1644 = vmatpush.msra.mxu0 %v360_v23  ;;  %v1018_v35 = vadd.f32 %v1017_v6, %v998_v12  ;;  %v171_v23 = vld [vmem:[%s9353_s1 + $0x3b0] sm:$0xff]  ;;  %v6716_v52 = vadd.f32 %v6516_v15, %v878_v60  ;;  %v717_v15 = vld [vmem:[%s9353_s1 + $0x14c0] sm:$0xff]  ;;  %v6735_v32 = vpop.f32.mrf.mxu1  ;;  %v570_v60 = vld [vmem:[%s9353_s1 + $0x1028] sm:$0xff] }
 0x146   :  { %1603 = vmatpush.msrb.mxu1 %v143_v3  ;;  %1663 = vmatpush.msrb.mxu2 %v479_v24  ;;  %v6701_v3 = vpop.f32.mrf.mxu0  ;;  %v66_v24 = vld [vmem:[%s9353_s1 + $0x68] sm:$0xff]  ;;  %v577_v12 = vld [vmem:[%s9353_s1 + $0x1060] sm:$0xff] }
 0x147   :  { %1625 = vmatpush.msra.mxu3 %v241_v26  ;;  %1645 = vmatpush.msra.mxu0 %v353_v27  ;;  %v402_v26 = vld [vmem:[%s9353_s1 + $0xae8] sm:$0xff]  ;;  %v724_v27 = vld [vmem:[%s9353_s1 + $0x14f8] sm:$0xff]  ;;  %v1741_v39 = vsel %vm1740_vm1, %v6716_v52, 0.0 }
 0x148   :  { %1604 = vmatpush.msrb.mxu1 %v136_v28  ;;  %1664 = vmatpush.msrb.mxu2 %v472_v2  ;;  %v6718_v28 = vpop.f32.mrf.mxu2  ;;  %v59_v2 = vld [vmem:[%s9353_s1 + $0x30] sm:$0xff] }
 0x149   :  { %1626 = vmatpush.msra.mxu3 %v234_v29  ;;  %1646 = vmatpush.msra.mxu0 %v346_v30  ;;  %v395_v29 = vld [vmem:[%s9353_s1 + $0xab0] sm:$0xff]  ;;  %v6727_v30 = vadd.f32 %v6605_v7, %v1018_v35 }
 0x14a   :  { %1605 = vmatpush.msrb.mxu1 %v129_v33  ;;  %1665 = vmatpush.msrb.mxu2 %v465_v34  ;;  %v612_v33 = vld [vmem:[%s9353_s1 + $0x1178] sm:$0xff] }
 0x14b   :  { %1627 = vmatpush.msra.mxu3 %v227_v36  ;;  %1647 = vmatpush.msra.mxu0 %v339_v37  ;;  %v1877_v34 = vld [vmem:[%s9354_s2 + $0x78] sm:$0xff]  ;;  %v1791_v36 = vmul.f32 %v6716_v52, %v6716_v52  ;;  %v710_v37 = vld [vmem:[%s9353_s1 + $0x1488] sm:$0xff]  ;;  %v6762_v7 = vpop.f32.mrf.mxu3 }
 0x14c   :  { %1606 = vmatpush.msrb.mxu1 %v122_v38  ;;  %1666 = vmatpush.msrb.mxu2 %v458_v40  ;;  %v605_v38 = vld [vmem:[%s9353_s1 + $0x1140] sm:$0xff]  ;;  %v1792_v40 = vmul.f32 %v6727_v30, %v6727_v30 }
 0x14d   :  { %1628 = vmatpush.msra.mxu3 %v220_v9  ;;  %1648 = vmatpush.msra.mxu0 %v332_v41  ;;  %v4530_v9 = vld.sshfl [vmem:[#allocation1 + $0x10] sm:$0xff pattern:$0x73625140] }
 0x14e   :  { %1607 = vmatpush.msrb.mxu1 %v115_v44  ;;  %1667 = vmatpush.msrb.mxu2 %v451_v45  ;;  %v1876_v41 = vld [vmem:[%s9354_s2 + $0x70] sm:$0xff]  ;;  %v1805_v55 = vsel %vm1740_vm1, %v1792_v40, 0.0  ;;  %v549_v40 = vld [vmem:[%s9353_s1 + $0xf80] sm:$0xff] }
 0x14f   :  { %1629 = vmatpush.msra.mxu3 %v213_v47  ;;  %1649 = vmatpush.msra.mxu0 %v325_v48  ;;  %v1217_v44 = vpop.f32.mrf.mxu0  ;;  %v703_v45 = vld [vmem:[%s9353_s1 + $0x1450] sm:$0xff]  ;;  %v1875_v47 = vld [vmem:[%s9354_s2 + $0x68] sm:$0xff]  ;;  %v1806_v6 = vrot.slane %v1805_v55, 4 }
 0x150   :  { %1608 = vmatpush.msrb.mxu1 %v108_v49  ;;  %1668 = vmatpush.msrb.mxu2 %v444_v50  ;;  %v1891_v48 = vld [vmem:[%s9354_s2 + $0xe8] sm:$0xff]  ;;  %v1798_v49 = vsel %vm1740_vm1, %v1791_v36, 0.0  ;;  %v1197_v50 = vpop.f32.mrf.mxu2 }
 0x151   :  { %1630 = vmatpush.msra.mxu3 %v206_v53  ;;  %1650 = vmatpush.msra.mxu0 %v318_v54  ;;  %v696_v53 = vld [vmem:[%s9353_s1 + $0x1418] sm:$0xff]  ;;  %v591_v54 = vld [vmem:[%s9353_s1 + $0x10d0] sm:$0xff]  ;;  %v1218_v56 = vadd.f32 %v1217_v44, %v1197_v50  ;;  %v1807_v35 = vadd.f32 %v1806_v6, %v1805_v55  ;;  %v1883_v55 = vld [vmem:[%s9354_s2 + $0xa8] sm:$0xff] }
 0x152   :  { %1609 = vmatpush.msrb.mxu1 %v101_v59  ;;  %1669 = vmatpush.msrb.mxu2 %v437_v61  ;;  %v1874_v59 = vld [vmem:[%s9354_s2 + $0x60] sm:$0xff]  ;;  %v4532_v6 = vld.sshfl [vmem:[#allocation1 + $0x18] sm:$0xff pattern:$0x73625140] }
 0x153   :  { %1631 = vmatpush.msra.mxu3 %v199_v62  ;;  %1651 = vmatpush.msra.mxu0 %v311_v63  ;;  %v1890_v61 = vld [vmem:[%s9354_s2 + $0xe0] sm:$0xff]  ;;  %v1237_v62 = vpop.f32.mrf.mxu1  ;;  %v1808_v36 = vrot.slane %v1807_v35, 2 }
 0x154   :  { %1610 = vmatpush.msrb.mxu1 %v94_v0  ;;  %1670 = vmatpush.msrb.mxu2 %v430_v43  ;;  %v689_v63 = vld [vmem:[%s9353_s1 + $0x13e0] sm:$0xff]  ;;  %v584_v0 = vld [vmem:[%s9353_s1 + $0x1098] sm:$0xff]  ;;  %v1799_v43 = vrot.slane %v1798_v49, 4 }
 0x155   :  { %1632 = vmatpush.msra.mxu3 %v192_v1  ;;  %1652 = vmatpush.msra.mxu0 %v304_v5  ;;  %v1748_v1 = vsel %vm1740_vm1, %v6727_v30, 0.0  ;;  %v1873_v5 = vld [vmem:[%s9354_s2 + $0x58] sm:$0xff]  ;;  %v1809_v50 = vadd.f32 %v1808_v36, %v1807_v35  ;;  %v514_v35 = vld [vmem:[%s9353_s1 + $0xe68] sm:$0xff] }
 0x156   :  { %1611 = vmatpush.msrb.mxu1 %v87_v10  ;;  %1671 = vmatpush.msrb.mxu2 %v423_v11  ;;  %v1078_v10 = vadd.f32 %v6687_v21, %v6660_v8  ;;  %v682_v11 = vld [vmem:[%s9353_s1 + $0x13a8] sm:$0xff]  ;;  %v1888_v8 = vld [vmem:[%s9354_s2 + $0xd0] sm:$0xff]  ;;  %v1800_v21 = vadd.f32 %v1799_v43, %v1798_v49 }
 0x157   :  { %1633 = vmatpush.msra.mxu3 %v185_v14  ;;  %1653 = vmatpush.msra.mxu0 %v297_v16  ;;  %v1742_v14 = vrot.slane %v1741_v39, 4  ;;  %v1238_v16 = vadd.f32 %v1237_v62, %v1218_v56  ;;  %v1867_v49 = vld [vmem:[%s9354_s2 + $0x28] sm:$0xff]  ;;  %v640_v56 = vld [vmem:[%s9353_s1 + $0x1258] sm:$0xff] }
 0x158   :  { %1612 = vmatpush.msrb.mxu1 %v80_v17  ;;  %1672 = vmatpush.msrb.mxu2 %v416_v18  ;;  %v1872_v17 = vld [vmem:[%s9354_s2 + $0x50] sm:$0xff]  ;;  %v1749_v18 = vrot.slane %v1748_v1, 4 }
 0x159   :  { %1634 = vmatpush.msra.mxu3 %v178_v19  ;;  %1654 = vmatpush.msra.mxu0 %v290_v20  ;;  %v1257_v19 = vpop.f32.mrf.mxu3  ;;  %v675_v20 = vld [vmem:[%s9353_s1 + $0x1370] sm:$0xff] }
 0x15a   :  { %1613 = vmatpush.msrb.mxu1 %v73_v22  ;;  %1673 = vmatpush.msrb.mxu2 %v409_v57  ;;  %v1871_v22 = vld [vmem:[%s9354_s2 + $0x48] sm:$0xff] }
 0x15b   :  { %1635 = vmatpush.msra.mxu3 %v171_v23  ;;  %1655 = vmatpush.msra.mxu0 %v283_v4  ;;  %v1887_v57 = vld [vmem:[%s9354_s2 + $0xc8] sm:$0xff]  ;;  %v1098_v23 = vadd.f32 %v6632_v58, %v1078_v10  ;;  %v668_v4 = vld [vmem:[%s9353_s1 + $0x1338] sm:$0xff]  ;;  %v1886_v58 = vld [vmem:[%s9354_s2 + $0xc0] sm:$0xff] }
 0x15c   :  { %1614 = vmatpush.msrb.mxu1 %v66_v24  ;;  %1674 = vmatpush.msrb.mxu2 %v402_v26  ;;  %v563_v24 = vld [vmem:[%s9353_s1 + $0xff0] sm:$0xff]  ;;  %v1743_v26 = vadd.f32 %v1742_v14, %v1741_v39  ;;  %v1317_v62 = vpop.f32.mrf.mxu1  ;;  %v528_v10 = vld [vmem:[%s9353_s1 + $0xed8] sm:$0xff] }
 0x15d   :  { %1700 = vmatpush.msrb.mxu3 %v724_v27  ;;  %1734 = vmatpush.msrb.mxu0 %v738_v51  ;;  %v1258_v27 = vadd.f32 %v1257_v19, %v1238_v16  ;;  %v1870_v51 = vld [vmem:[%s9354_s2 + $0x40] sm:$0xff]  ;;  %v535_v39 = vld [vmem:[%s9353_s1 + $0xf10] sm:$0xff]  ;;  %v1865_v14 = vld [vmem:[%s9354_s2 + $0x18] sm:$0xff] }
 0x15e   :  { %1615 = vmatpush.msrb.mxu1 %v59_v2  ;;  %1675 = vmatpush.msrb.mxu2 %v395_v29  ;;  %v1750_v2 = vadd.f32 %v1749_v18, %v1748_v1  ;;  %v1277_v29 = vpop.f32.mrf.mxu2  ;;  %v633_v1 = vld [vmem:[%s9353_s1 + $0x1220] sm:$0xff]  ;;  %v4534_v19 = vld.sshfl [vmem:[#allocation1 + $0x30] sm:$0xff pattern:$0x73625140] }
 0x15f   :  { %1701 = vmatpush.msrb.mxu3 %v717_v15  ;;  %1735 = vmatpush.msrb.mxu0 %v731_v31  ;;  %v661_v15 = vld [vmem:[%s9353_s1 + $0x1300] sm:$0xff]  ;;  %v556_v31 = vld [vmem:[%s9353_s1 + $0xfb8] sm:$0xff] }
 0x160   :  { %1656 = vmatmul.f32.vlgmr.msra.gmra.mxu0 %v4530_v9  ;;  %1680 = vmatpush.msra.mxu1 %v612_v33  ;;  %v1801_v33 = vrot.slane %v1800_v21, 2  ;;  %v1744_v9 = vrot.slane %v1743_v26, 2  ;;  %v1751_v44 = vrot.slane %v1750_v2, 2  ;;  %v521_v18 = vld [vmem:[%s9353_s1 + $0xea0] sm:$0xff] }
 0x161   :  { %1963 = vmatpush.msra.mxu2 %v1877_v34  ;;  %1983 = vmatpush.msra.mxu0 %v1893_v13  ;;  %v1869_v34 = vld [vmem:[%s9354_s2 + $0x38] sm:$0xff] }
 0x162   :  { %1702 = vmatpush.msrb.mxu3 %v710_v37  ;;  %1681 = vmatpush.msra.mxu1 %v605_v38  ;;  %v1885_v13 = vld [vmem:[%s9354_s2 + $0xb8] sm:$0xff]  ;;  %v1118_v37 = vadd.f32 %v6718_v28, %v1098_v23  ;;  %v654_v38 = vld [vmem:[%s9353_s1 + $0x12c8] sm:$0xff]  ;;  %v1297_v28 = vpop.f32.mrf.mxu0 }
 0x163   :  { %1964 = vmatpush.msra.mxu2 %v1876_v41  ;;  %1984 = vmatpush.msra.mxu0 %v1892_v42  ;;  %v1278_v41 = vadd.f32 %v1277_v29, %v1258_v27  ;;  %v1868_v42 = vld [vmem:[%s9354_s2 + $0x30] sm:$0xff]  ;;  %v1879_v27 = vld [vmem:[%s9354_s2 + $0x88] sm:$0xff] }
 0x164   :  { %1703 = vmatpush.msrb.mxu3 %v703_v45  ;;  %1682 = vmatpush.msra.mxu1 %v598_v46  ;;  %v1884_v45 = vld [vmem:[%s9354_s2 + $0xb0] sm:$0xff] }
 0x165   :  { %1965 = vmatpush.msra.mxu2 %v1875_v47  ;;  %1985 = vmatpush.msra.mxu0 %v1891_v48  ;;  %v647_v46 = vld [vmem:[%s9353_s1 + $0x1290] sm:$0xff]  ;;  %v1802_v47 = vadd.f32 %v1801_v33, %v1800_v21  ;;  %v542_v48 = vld [vmem:[%s9353_s1 + $0xf48] sm:$0xff]  ;;  %v1878_v33 = vld [vmem:[%s9354_s2 + $0x80] sm:$0xff] }
 0x166   :  { %1704 = vmatpush.msrb.mxu3 %v696_v53  ;;  %1683 = vmatpush.msra.mxu1 %v591_v54  ;;  %v1138_v53 = vadd.f32 %v6735_v32, %v1118_v37  ;;  %v4531_v54 = vld.sshfl [vmem:[#allocation1 + $0x8] sm:$0xff pattern:$0x73625140]  ;;  %v1752_v32 = vadd.f32 %v1751_v44, %v1750_v2  ;;  %v1862_v2 = vld [vmem:[%s9354_s2] sm:$0xff] }
 0x167   :  { %1966 = vmatpush.msra.mxu2 %v1874_v59  ;;  %1986 = vmatpush.msra.mxu0 %v1890_v61  ;;  %v1745_v59 = vadd.f32 %v1744_v9, %v1743_v26  ;;  %v1298_v61 = vadd.f32 %v1297_v28, %v1278_v41  ;;  %v1803_v43 = vrot.slane %v1802_v47, 1  ;;  %v1923_v41 = vld [vmem:[%s9354_s2 + $0x1e8] sm:$0xff] }
 0x168   :  { %1705 = vmatpush.msrb.mxu3 %v689_v63  ;;  %1684 = vmatpush.msra.mxu1 %v584_v0  ;;  %v1866_v63 = vld [vmem:[%s9354_s2 + $0x20] sm:$0xff]  ;;  %v1753_v16 = vrot.slane %v1752_v32, 1 }
 0x169   :  { %1967 = vmatpush.msra.mxu2 %v1873_v5  ;;  %1987 = vmatpush.msra.mxu0 %v1889_v25  ;;  %v1882_v0 = vld [vmem:[%s9354_s2 + $0xa0] sm:$0xff]  ;;  %v1810_v5 = vrot.slane %v1809_v50, 1  ;;  %v1158_v25 = vadd.f32 %v6762_v7, %v1138_v53  ;;  %v1881_v7 = vld [vmem:[%s9354_s2 + $0x98] sm:$0xff]  ;;  %v1804_v21 = vadd.f32 %v1803_v43, %v1802_v47  ;;  %v1907_v53 = vld [vmem:[%s9354_s2 + $0x168] sm:$0xff] }
 0x16a   :  { %1706 = vmatpush.msrb.mxu3 %v682_v11  ;;  %1685 = vmatpush.msra.mxu1 %v577_v12  ;;  %v1746_v11 = vrot.slane %v1745_v59, 1  ;;  %v6902_v12 = vadd.f32 %v1317_v62, %v1298_v61  ;;  %v1754_v26 = vadd.f32 %v1753_v16, %v1752_v32  ;;  %v1922_v47 = vld [vmem:[%s9354_s2 + $0x1e0] sm:$0xff]  ;;  %v1920_v32 = vld [vmem:[%s9354_s2 + $0x1d0] sm:$0xff]  ;;  %v1903_v16 = vld [vmem:[%s9354_s2 + $0x148] sm:$0xff] }
 0x16b   :  { %1968 = vmatpush.msra.mxu2 %v1872_v17  ;;  %1988 = vmatpush.msra.mxu0 %v1888_v8  ;;  %v4533_v17 = vld.sshfl [vmem:[#allocation1] sm:$0xff pattern:$0x73625140]  ;;  %v626_v8 = vld [vmem:[%s9353_s1 + $0x11e8] sm:$0xff]  ;;  %v1811_v23 = vadd.f32 %v1810_v5, %v1809_v50  ;;  %v1937_v5 = vld [vmem:[%s9354_s2 + $0x258] sm:$0xff] }
 0x16c   :  { %1707 = vmatpush.msrb.mxu3 %v675_v20  ;;  %1686 = vmatpush.msra.mxu1 %v570_v60  ;;  %v1864_v20 = vld [vmem:[%s9354_s2 + $0x10] sm:$0xff]  ;;  %v1906_v61 = vld [vmem:[%s9354_s2 + $0x160] sm:$0xff] }
 0x16d   :  { %1969 = vmatpush.msra.mxu2 %v1871_v22  ;;  %1989 = vmatpush.msra.mxu0 %v1887_v57  ;;  %v1880_v60 = vld [vmem:[%s9354_s2 + $0x90] sm:$0xff]  ;;  %v6924_v22 = vadd.f32 %v6701_v3, %v1158_v25  ;;  %v1863_v3 = vld [vmem:[%s9354_s2 + $0x8] sm:$0xff]  ;;  %v1938_v62 = vld [vmem:[%s9354_s2 + $0x260] sm:$0xff] }
 0x16e   :  { %1708 = vmatpush.msrb.mxu3 %v668_v4  ;;  %1687 = vmatpush.msra.mxu1 %v563_v24  ;;  %v619_v57 = vld [vmem:[%s9353_s1 + $0x11b0] sm:$0xff]  ;;  %v1747_v4 = vadd.f32 %v1746_v11, %v1745_v59  ;;  %v1794_v24 = vmul.f32 %v6902_v12, %v6902_v12  ;;  %v1918_v11 = vld [vmem:[%s9354_s2 + $0x1c0] sm:$0xff] }
 0x16f   :  { %1970 = vmatpush.msra.mxu2 %v1870_v51  ;;  %1990 = vmatpush.msra.mxu0 %v1886_v58  ;;  %v1925_v51 = vld [vmem:[%s9354_s2 + $0x1f8] sm:$0xff]  ;;  %v507_v58 = vld [vmem:[%s9353_s1 + $0xe30] sm:$0xff] }
 0x170   :  { %1709 = vmatpush.msrb.mxu3 %v661_v15  ;;  %1688 = vmatpush.msra.mxu1 %v556_v31  ;;  %v1848_v29 = vsel %vm1847_vm2, %v1747_v4, %v1804_v21  ;;  %v1793_v15 = vmul.f32 %v6924_v22, %v6924_v22  ;;  %v4535_v31 = vld.sshfl [vmem:[#allocation1 + $0x28] sm:$0xff pattern:$0x73625140]  ;;  %v1819_v36 = vsel %vm1740_vm1, %v1794_v24, 0.0  ;;  %v1934_v4 = vld [vmem:[%s9354_s2 + $0x240] sm:$0xff] }
 0x171   :  { %1971 = vmatpush.msra.mxu2 %v1869_v34  ;;  %1991 = vmatpush.msra.mxu0 %v1885_v13  ;;  %v1924_v34 = vld [vmem:[%s9354_s2 + $0x1f0] sm:$0xff]  ;;  %v1849_v13 = vsel %vm1847_vm2, %v1754_v26, %v1811_v23  ;;  %v1855_v37 = vmul.f32 0.5, %v1848_v29  ;;  %v1820_v28 = vrot.slane %v1819_v36, 4 }
 0x172   :  { %1710 = vmatpush.msrb.mxu3 %v654_v38  ;;  %1689 = vmatpush.msra.mxu1 %v549_v40  ;;  %v1909_v38 = vld [vmem:[%s9354_s2 + $0x178] sm:$0xff]  ;;  %v1762_v40 = vsel %vm1740_vm1, %v6902_v12, 0.0  ;;  %v1856_v9 = vmul.f32 0.5, %v1849_v13  ;;  %v1812_v44 = vsel %vm1740_vm1, %v1793_v15, 0.0  ;;  %v1900_v29 = vld [vmem:[%s9354_s2 + $0x130] sm:$0xff] }
 0x173   :  { %1636 = vmatmul.f32.vlgmr.msra.gmra.mxu3 %v4531_v54  ;;  %1972 = vmatpush.msra.mxu2 %v1868_v42  ;;  %v1941_v42 = vld [vmem:[%s9354_s2 + $0x278] sm:$0xff]  ;;  %v1763_v50 = vrot.slane %v1762_v40, 4  ;;  %v1813_v54 = vrot.slane %v1812_v44, 4  ;;  %v1821_v59 = vadd.f32 %v1820_v28, %v1819_v36  ;;  %v1932_v13 = vld [vmem:[%s9354_s2 + $0x230] sm:$0xff]  ;;  %v1898_v28 = vld [vmem:[%s9354_s2 + $0x120] sm:$0xff] }
 0x174   :  { %1992 = vmatpush.msra.mxu0 %v1884_v45  ;;  %1711 = vmatpush.msrb.mxu3 %v647_v46  ;;  %v4536_v45 = vld.sshfl [vmem:[#allocation1 + $0x20] sm:$0xff pattern:$0x73625140]  ;;  %v1908_v46 = vld [vmem:[%s9354_s2 + $0x170] sm:$0xff] }
 0x175   :  { %1690 = vmatpush.msra.mxu1 %v542_v48  ;;  %1973 = vmatpush.msra.mxu2 %v1867_v49  ;;  %v1940_v48 = vld [vmem:[%s9354_s2 + $0x270] sm:$0xff]  ;;  %v1755_v49 = vsel %vm1740_vm1, %v6924_v22, 0.0  ;;  %v1814_v43 = vadd.f32 %v1813_v54, %v1812_v44  ;;  %v1822_v25 = vrot.slane %v1821_v59, 2 }
 0x176   :  { %1993 = vmatpush.msra.mxu0 %v1883_v55  ;;  %1712 = vmatpush.msrb.mxu3 %v640_v56  ;;  %v1921_v55 = vld [vmem:[%s9354_s2 + $0x1d8] sm:$0xff]  ;;  %v1939_v56 = vld [vmem:[%s9354_s2 + $0x268] sm:$0xff] }
 0x177   :  { %1676 = vmatmul.f32.vlgmr.msrb.gmra.mxu2 %v4532_v6  ;;  %1691 = vmatpush.msra.mxu1 %v535_v39  ;;  %v1756_v39 = vrot.slane %v1755_v49, 4  ;;  %v1904_v6 = vld [vmem:[%s9354_s2 + $0x150] sm:$0xff] }
 0x178   :  { %1974 = vmatpush.msra.mxu2 %v1866_v63  ;;  %1994 = vmatpush.msra.mxu0 %v1882_v0  ;;  %v1764_v63 = vadd.f32 %v1763_v50, %v1762_v40  ;;  %v1905_v0 = vld [vmem:[%s9354_s2 + $0x158] sm:$0xff] }
 0x179   :  { %1616 = vmatmul.f32.vlgmr.msrb.gmra.mxu1 %v4533_v17  ;;  %1713 = vmatpush.msrb.mxu3 %v633_v1  ;;  %v1919_v1 = vld [vmem:[%s9354_s2 + $0x1c8] sm:$0xff] }
 0x17a   :  { %4476 = vmatmul.msk.f32.vlgmr.msrb.gmra.mxu0 %vm757_vm0, %v4534_v19  ;;  %1692 = vmatpush.msra.mxu1 %v528_v10  ;;  %v1757_v10 = vadd.f32 %v1756_v39, %v1755_v49  ;;  %v1935_v19 = vld [vmem:[%s9354_s2 + $0x248] sm:$0xff]  ;;  %v1957_v49 = vld [vmem:[%s9354_s2 + $0x2f8] sm:$0xff]  ;;  %v1896_v39 = vld [vmem:[%s9354_s2 + $0x110] sm:$0xff] }
 0x17b   :  { %1975 = vmatpush.msra.mxu2 %v1865_v14  ;;  %1995 = vmatpush.msra.mxu0 %v1881_v7  ;;  %v1936_v14 = vld [vmem:[%s9354_s2 + $0x250] sm:$0xff]  ;;  %v1765_v7 = vrot.slane %v1764_v63, 2  ;;  %v1377_v23 = vpop.f32.mrf.mxu2 }
 0x17c   :  { %1714 = vmatpush.msrb.mxu3 %v626_v8  ;;  %1693 = vmatpush.msra.mxu1 %v521_v18  ;;  %v1815_v8 = vrot.slane %v1814_v43, 2  ;;  %v1917_v18 = vld [vmem:[%s9354_s2 + $0x1b8] sm:$0xff]  ;;  %v1758_v21 = vrot.slane %v1757_v10, 2 }
 0x17d   :  { %1976 = vmatpush.msra.mxu2 %v1864_v20  ;;  %1996 = vmatpush.msra.mxu0 %v1880_v60  ;;  %v1823_v20 = vadd.f32 %v1822_v25, %v1821_v59  ;;  %v1902_v60 = vld [vmem:[%s9354_s2 + $0x140] sm:$0xff]  ;;  %v1766_v24 = vadd.f32 %v1765_v7, %v1764_v63  ;;  %v1929_v59 = vld [vmem:[%s9354_s2 + $0x218] sm:$0xff] }
 0x17e   :  { %1715 = vmatpush.msrb.mxu3 %v619_v57  ;;  %1694 = vmatpush.msra.mxu1 %v514_v35  ;;  %v1916_v57 = vld [vmem:[%s9354_s2 + $0x1b0] sm:$0xff]  ;;  %v1894_v7 = vld [vmem:[%s9354_s2 + $0x100] sm:$0xff] }
 0x17f   :  { %1716 = vmatmul.f32.vlgmr.msrb.gmra.mxu3 %v4535_v31  ;;  %1977 = vmatpush.msra.mxu2 %v1863_v3  ;;  %v1901_v3 = vld [vmem:[%s9354_s2 + $0x138] sm:$0xff]  ;;  %v1759_v31 = vadd.f32 %v1758_v21, %v1757_v10  ;;  %v1767_v36 = vrot.slane %v1766_v24, 1 }
 0x180   :  { %1997 = vmatpush.msra.mxu0 %v1879_v27  ;;  %2023 = vmatpush.msra.mxu3 %v1925_v51  ;;  %v1816_v27 = vadd.f32 %v1815_v8, %v1814_v43  ;;  %v1915_v51 = vld [vmem:[%s9354_s2 + $0x1a8] sm:$0xff] }
 0x181   :  { %1695 = vmatpush.msra.mxu1 %v507_v58  ;;  %1978 = vmatpush.msra.mxu2 %v1862_v2  ;;  %v1933_v58 = vld [vmem:[%s9354_s2 + $0x238] sm:$0xff]  ;;  %v1824_v2 = vrot.slane %v1823_v20, 1  ;;  %v1768_v50 = vadd.f32 %v1767_v36, %v1766_v24  ;;  %v1948_v36 = vld [vmem:[%s9354_s2 + $0x2b0] sm:$0xff] }
 0x182   :  { %1998 = vmatpush.msra.mxu0 %v1878_v33  ;;  %2024 = vmatpush.msra.mxu3 %v1924_v34  ;;  %v1914_v33 = vld [vmem:[%s9354_s2 + $0x1a0] sm:$0xff]  ;;  %v1817_v40 = vrot.slane %v1816_v27, 1 }
 0x183   :  { %1696 = vmatmul.f32.vlgmr.msra.gmra.mxu1 %v4536_v45  ;;  %1979 = vmatmul.f32.vlgmr.msra.gmra.mxu2 %v1855_v37  ;;  %v1899_v37 = vld [vmem:[%s9354_s2 + $0x128] sm:$0xff]  ;;  %v1825_v44 = vadd.f32 %v1824_v2, %v1823_v20 }
 0x184   :  { %1999 = vmatmul.f32.vlgmr.msra.gmra.mxu0 %v1856_v9  ;;  %2003 = vmatpush.msrb.mxu1 %v1909_v38  ;;  %v1913_v9 = vld [vmem:[%s9354_s2 + $0x198] sm:$0xff]  ;;  %v1818_v54 = vadd.f32 %v1817_v40, %v1816_v27 }
 0x185   :  { %2025 = vmatpush.msra.mxu3 %v1923_v41  ;;  %2043 = vmatpush.msrb.mxu2 %v1941_v42  ;;  %v1931_v42 = vld [vmem:[%s9354_s2 + $0x228] sm:$0xff]  ;;  %v1945_v40 = vld [vmem:[%s9354_s2 + $0x298] sm:$0xff] }
 0x186   :  { %2004 = vmatpush.msrb.mxu1 %v1908_v46  ;;  %v1760_v46 = vrot.slane %v1759_v31, 1  ;;  %2063 = vmatpush.msrb.mxu0 %v1957_v49 }
 0x187   :  { %2026 = vmatpush.msra.mxu3 %v1922_v47  ;;  %2044 = vmatpush.msrb.mxu2 %v1940_v48  ;;  %v1912_v47 = vld [vmem:[%s9354_s2 + $0x190] sm:$0xff]  ;;  %v1930_v48 = vld [vmem:[%s9354_s2 + $0x220] sm:$0xff] }
 0x188   :  { %2005 = vmatpush.msrb.mxu1 %v1907_v53  ;;  %v1897_v53 = vld [vmem:[%s9354_s2 + $0x118] sm:$0xff]  ;;  %v1761_v63 = vadd.f32 %v1760_v46, %v1759_v31  ;;  %v1943_v46 = vld [vmem:[%s9354_s2 + $0x288] sm:$0xff] }
 0x189   :  { %2027 = vmatpush.msra.mxu3 %v1921_v55  ;;  %2045 = vmatpush.msrb.mxu2 %v1939_v56  ;;  %v1911_v55 = vld [vmem:[%s9354_s2 + $0x188] sm:$0xff] }
 0x18a   :  { %2006 = vmatpush.msrb.mxu1 %v1906_v61  ;;  %v1956_v61 = vld [vmem:[%s9354_s2 + $0x2f0] sm:$0xff]  ;;  %v1850_v10 = vsel %vm1847_vm2, %v1761_v63, %v1818_v54 }
 0x18b   :  { %2028 = vmatpush.msra.mxu3 %v1920_v32  ;;  %2046 = vmatpush.msrb.mxu2 %v1938_v62  ;;  %v1851_v32 = vsel %vm1847_vm2, %v1768_v50, %v1825_v44  ;;  %v1944_v44 = vld [vmem:[%s9354_s2 + $0x290] sm:$0xff] }
 0x18c   :  { %2007 = vmatpush.msrb.mxu1 %v1905_v0  ;;  %v1910_v0 = vld [vmem:[%s9354_s2 + $0x180] sm:$0xff]  ;;  %2064 = vmatpush.msrb.mxu0 %v1956_v61 }
 0x18d   :  { %2029 = vmatpush.msra.mxu3 %v1919_v1  ;;  %v1337_v17 = vpop.f32.mrf.mxu3  ;;  %2047 = vmatpush.msrb.mxu2 %v1937_v5  ;;  %v1928_v1 = vld [vmem:[%s9354_s2 + $0x210] sm:$0xff]  ;;  %v1895_v5 = vld [vmem:[%s9354_s2 + $0x108] sm:$0xff] }
 0x18e   :  { %2008 = vmatpush.msrb.mxu1 %v1904_v6  ;;  %v1858_v6 = vmul.f32 0.5, %v1851_v32 }
 0x18f   :  { %2030 = vmatpush.msra.mxu3 %v1918_v11  ;;  %2048 = vmatpush.msrb.mxu2 %v1936_v14  ;;  %v1927_v11 = vld [vmem:[%s9354_s2 + $0x208] sm:$0xff] }
 0x190   :  { %2009 = vmatpush.msrb.mxu1 %v1903_v16  ;;  %v1357_v35 = vpop.f32.mrf.mxu1  ;;  %v1955_v14 = vld [vmem:[%s9354_s2 + $0x2e8] sm:$0xff] }
 0x191   :  { %2031 = vmatpush.msra.mxu3 %v1917_v18  ;;  %v1358_v26 = vadd.f32 %v1357_v35, %v1337_v17  ;;  %2049 = vmatpush.msrb.mxu2 %v1935_v19  ;;  %v1926_v18 = vld [vmem:[%s9354_s2 + $0x200] sm:$0xff]  ;;  %v1857_v19 = vmul.f32 0.5, %v1850_v10 }
 0x192   :  { %2010 = vmatpush.msrb.mxu1 %v1902_v60  ;;  %2065 = vmatpush.msrb.mxu0 %v1955_v14 }
 0x193   :  { %2032 = vmatpush.msra.mxu3 %v1916_v57  ;;  %v1378_v15 = vadd.f32 %v1377_v23, %v1358_v26  ;;  %2050 = vmatpush.msrb.mxu2 %v1934_v4  ;;  %v1954_v57 = vld [vmem:[%s9354_s2 + $0x2e0] sm:$0xff]  ;;  %v1953_v4 = vld [vmem:[%s9354_s2 + $0x2d8] sm:$0xff] }
 0x194   :  { %2011 = vmatpush.msrb.mxu1 %v1901_v3  ;;  %v1397_v34 = vpop.f32.mrf.mxu0  ;;  %2066 = vmatpush.msrb.mxu0 %v1954_v57 }
 0x195   :  { %2033 = vmatpush.msra.mxu3 %v1915_v51  ;;  %v1398_v38 = vadd.f32 %v1397_v34, %v1378_v15  ;;  %2051 = vmatpush.msrb.mxu2 %v1933_v58  ;;  %v1952_v58 = vld [vmem:[%s9354_s2 + $0x2d0] sm:$0xff]  ;;  %v1951_v15 = vld [vmem:[%s9354_s2 + $0x2c8] sm:$0xff] }
 0x196   :  { %2012 = vmatpush.msrb.mxu1 %v1900_v29  ;;  %v1417_v41 = vpop.f32.mrf.mxu3  ;;  %2067 = vmatpush.msrb.mxu0 %v1953_v4 }
 0x197   :  { %2034 = vmatpush.msra.mxu3 %v1914_v33  ;;  %v1418_v45 = vadd.f32 %v1417_v41, %v1398_v38  ;;  %2052 = vmatpush.msrb.mxu2 %v1932_v13  ;;  %v1950_v33 = vld [vmem:[%s9354_s2 + $0x2c0] sm:$0xff]  ;;  %v1949_v13 = vld [vmem:[%s9354_s2 + $0x2b8] sm:$0xff] }
 0x198   :  { %2013 = vmatpush.msrb.mxu1 %v1899_v37  ;;  %2068 = vmatpush.msrb.mxu0 %v1952_v58  ;;  %v1947_v37 = vld [vmem:[%s9354_s2 + $0x2a8] sm:$0xff]  ;;  %v1946_v38 = vld [vmem:[%s9354_s2 + $0x2a0] sm:$0xff] }
 0x199   :  { %2035 = vmatpush.msra.mxu3 %v1913_v9  ;;  %2053 = vmatpush.msrb.mxu2 %v1931_v42 }
 0x19a   :  { %2014 = vmatpush.msrb.mxu1 %v1898_v28  ;;  %v1437_v56 = vpop.f32.mrf.mxu1  ;;  %2069 = vmatpush.msrb.mxu0 %v1951_v15 }
 0x19b   :  { %2036 = vmatpush.msra.mxu3 %v1912_v47  ;;  %v1438_v62 = vadd.f32 %v1437_v56, %v1418_v45  ;;  %2054 = vmatpush.msrb.mxu2 %v1930_v48  ;;  %v1942_v47 = vld [vmem:[%s9354_s2 + $0x280] sm:$0xff] }
 0x19c   :  { %2015 = vmatpush.msrb.mxu1 %v1897_v53  ;;  %v1457_v43 = vpop.f32.mrf.mxu2  ;;  %2070 = vmatpush.msrb.mxu0 %v1950_v33 }
 0x19d   :  { %2037 = vmatpush.msra.mxu3 %v1911_v55  ;;  %v7101_v25 = vadd.f32 %v1457_v43, %v1438_v62  ;;  %2055 = vmatpush.msrb.mxu2 %v1929_v59 }
 0x19e   :  { %2016 = vmatpush.msrb.mxu1 %v1896_v39  ;;  %2071 = vmatpush.msrb.mxu0 %v1949_v13 }
 0x19f   :  { %2038 = vmatpush.msra.mxu3 %v1910_v0  ;;  %v1769_v16 = vsel %vm1740_vm1, %v7101_v25, 0.0  ;;  %v1795_v17 = vmul.f32 %v7101_v25, %v7101_v25  ;;  %2056 = vmatpush.msrb.mxu2 %v1928_v1 }
 0x1a0   :  { %2017 = vmatpush.msrb.mxu1 %v1895_v5  ;;  %2039 = vmatmul.f32.vlgmr.msra.gmra.mxu3 %v1858_v6  ;;  %v1770_v8 = vrot.slane %v1769_v16, 4 }
 0x1a1   :  { %v1826_v20 = vsel %vm1740_vm1, %v1795_v17, 0.0  ;;  %2057 = vmatpush.msrb.mxu2 %v1927_v11  ;;  %2072 = vmatpush.msrb.mxu0 %v1948_v36 }
 0x1a2   :  { %2018 = vmatpush.msrb.mxu1 %v1894_v7  ;;  %v1771_v60 = vadd.f32 %v1770_v8, %v1769_v16  ;;  %v1827_v21 = vrot.slane %v1826_v20, 4 }
 0x1a3   :  { %2019 = vmatmul.f32.vlgmr.msrb.gmra.mxu1 %v1857_v19  ;;  %2058 = vmatpush.msrb.mxu2 %v1926_v18  ;;  %v1959_v18 = vld [vmem:[%s9354_s2 + $0x308] sm:$0xff]  ;;  %v1958_v19 = vld [vmem:[%s9354_s2 + $0x300] sm:$0xff] }
 0x1a4   :  { %v1772_v35 = vrot.slane %v1771_v60, 2  ;;  %v1828_v23 = vadd.f32 %v1827_v21, %v1826_v20  ;;  %2073 = vmatpush.msrb.mxu0 %v1947_v37  ;;  %2097 = vmatpush.msra.mxu1 %v1959_v18  ;;  %v2492_v18 = vld [vmem:[%s9356_s4 + $0x3a0] sm:$0xff] }
 0x1a6   :  { %v1773_v24 = vadd.f32 %v1772_v35, %v1771_v60  ;;  %v1829_v3 = vrot.slane %v1828_v23, 2  ;;  %2074 = vmatpush.msrb.mxu0 %v1946_v38  ;;  %2098 = vmatpush.msra.mxu1 %v1958_v19 }
 0x1a8   :  { %v1774_v26 = vrot.slane %v1773_v24, 1  ;;  %v1830_v27 = vadd.f32 %v1829_v3, %v1828_v23  ;;  %2075 = vmatpush.msrb.mxu0 %v1945_v40 }
 0x1aa   :  { %v1831_v51 = vrot.slane %v1830_v27, 1  ;;  %v1775_v2 = vadd.f32 %v1774_v26, %v1773_v24  ;;  %2076 = vmatpush.msrb.mxu0 %v1944_v44 }
 0x1ac   :  { %v1832_v29 = vadd.f32 %v1831_v51, %v1830_v27  ;;  %2077 = vmatpush.msrb.mxu0 %v1943_v46 }
 0x1ae   :  { %v1852_v31 = vsel %vm1847_vm2, %v1775_v2, %v1832_v29  ;;  %2078 = vmatpush.msrb.mxu0 %v1942_v47 }
 0x1af   :  { %v1859_v34 = vmul.f32 0.5, %v1852_v31 }
 0x1b1   :  { %2059 = vmatmul.f32.vlgmr.msrb.gmra.mxu2 %v1859_v34 }
 0x1b5   :  { %v1477_v9 = vpop.f32.mrf.mxu0 }
 0x1b7   :  { %v1497_v41 = vpop.f32.mrf.mxu2 }
 0x1b8   :  { %v1498_v42 = vadd.f32 %v1497_v41, %v1477_v9 }
 0x1b9   :  { %v1517_v28 = vpop.f32.mrf.mxu3 }
 0x1ba   :  { %v1518_v45 = vadd.f32 %v1517_v28, %v1498_v42 }
 0x1bd   :  { %v1537_v48 = vpop.f32.mrf.mxu1 }
 0x1be   :  { %v1538_v49 = vadd.f32 %v1537_v48, %v1518_v45 }
 0x1c1   :  { %v1557_v50 = vpop.f32.mrf.mxu0  ;;  %v1577_v53 = vpop.f32.mrf.mxu2 }
 0x1c2   :  { %v1558_v54 = vadd.f32 %v1557_v50, %v1538_v49 }
 0x1c4   :  { %v1578_v55 = vadd.f32 %v1577_v53, %v1558_v54  ;;  %v1597_v56 = vpop.f32.mrf.mxu3 }
 0x1c6   :  { %v7161_v59 = vadd.f32 %v1597_v56, %v1578_v55 }
 0x1c8   :  { %v1776_v61 = vsel %vm1740_vm1, %v7161_v59, 0.0  ;;  %v1796_v39 = vmul.f32 %v7161_v59, %v7161_v59 }
 0x1c9   :  { %v1777_v32 = vrot.slane %v1776_v61, 4 }
 0x1ca   :  { %v1833_v62 = vsel %vm1740_vm1, %v1796_v39, 0.0 }
 0x1cb   :  { %v1778_v63 = vadd.f32 %v1777_v32, %v1776_v61  ;;  %v1834_v0 = vrot.slane %v1833_v62, 4 }
 0x1cd   :  { %v1779_v43 = vrot.slane %v1778_v63, 2  ;;  %v1835_v1 = vadd.f32 %v1834_v0, %v1833_v62  ;;  %v2129_v0 = vld [vmem:[%s9355_s3 + $0x8] sm:$0xf] }
 0x1ce   :  { %4480 = vmatpush.msk.msrb.mxu1 %vm2139_vm4, %v2129_v0  ;;  %v2752_v0 = vld [vmem:[%s9356_s4 + $0xbc0] sm:$0xff] }
 0x1cf   :  { %v1780_v5 = vadd.f32 %v1779_v43, %v1778_v63  ;;  %v1836_v6 = vrot.slane %v1835_v1, 2  ;;  %v2128_v63 = vld [vmem:[%s9355_s3] sm:$0xf]  ;;  %v2130_v43 = vld [vmem:[%s9355_s3 + $0x10] sm:$0xf] }
 0x1d0   :  { %4478 = vmatpush.msk.msrb.mxu3 %vm2139_vm4, %v2128_v63  ;;  %4482 = vmatpush.msk.msra.mxu2 %vm2139_vm4, %v2130_v43  ;;  %v2412_v63 = vld [vmem:[%s9356_s4 + $0x120] sm:$0xff] }
 0x1d1   :  { %v1781_v10 = vrot.slane %v1780_v5, 1  ;;  %v1837_v11 = vadd.f32 %v1836_v6, %v1835_v1  ;;  %v2132_v1 = vld [vmem:[%s9355_s3 + $0x20] sm:$0xf] }
 0x1d2   :  { %4486 = vmatpush.msk.msra.mxu0 %vm2139_vm4, %v2132_v1  ;;  %v2604_v43 = vld [vmem:[%s9356_s4 + $0x720] sm:$0xff] }
 0x1d3   :  { %v1838_v14 = vrot.slane %v1837_v11, 1  ;;  %v1782_v7 = vadd.f32 %v1781_v10, %v1780_v5  ;;  %v2131_v10 = vld [vmem:[%s9355_s3 + $0x18] sm:$0xf]  ;;  %v2544_v1 = vld [vmem:[%s9356_s4 + $0x540] sm:$0xff] }
 0x1d4   :  { %4484 = vmatpush.msk.msra.mxu3 %vm2139_vm4, %v2131_v10  ;;  %v2600_v10 = vld [vmem:[%s9356_s4 + $0x700] sm:$0xff] }
 0x1d5   :  { %v1839_v16 = vadd.f32 %v1838_v14, %v1837_v11  ;;  %v2133_v11 = vld [vmem:[%s9355_s3 + $0x28] sm:$0xf]  ;;  %v2134_v14 = vld [vmem:[%s9355_s3 + $0x30] sm:$0xf] }
 0x1d6   :  { %4490 = vmatpush.msk.msrb.mxu2 %vm2139_vm4, %v2134_v14  ;;  %v2404_v14 = vld [vmem:[%s9356_s4 + $0xe0] sm:$0xff] }
 0x1d7   :  { %v1853_v17 = vsel %vm1847_vm2, %v1782_v7, %v1839_v16 }
 0x1d8   :  { %v1860_v8 = vmul.f32 0.5, %v1853_v17  ;;  %v2500_v17 = vld [vmem:[%s9356_s4 + $0x3e0] sm:$0xff] }
 0x1da   :  { %2079 = vmatmul.f32.vlgmr.msrb.gmra.mxu0 %v1860_v8  ;;  %v2496_v8 = vld [vmem:[%s9356_s4 + $0x3c0] sm:$0xff] }
 0x1db   :  { %2791 = vmatpush.msrb.mxu0 %v2500_v17  ;;  %v2536_v17 = vld [vmem:[%s9356_s4 + $0x500] sm:$0xff] }
 0x1dd   :  { %v1657_v57 = vpop.f32.mrf.mxu0  ;;  %2792 = vmatpush.msrb.mxu0 %v2496_v8  ;;  %v2400_v8 = vld [vmem:[%s9356_s4 + $0xc0] sm:$0xff] }
 0x1df   :  { %2793 = vmatpush.msrb.mxu0 %v2492_v18  ;;  %v2740_v18 = vld [vmem:[%s9356_s4 + $0xb60] sm:$0xff] }
 0x1f6   :  { %v1617_v20 = vpop.f32.mrf.mxu1  ;;  %v1637_v60 = vpop.f32.mrf.mxu3 }
 0x1f7   :  { %v1638_v21 = vadd.f32 %v1637_v60, %v1617_v20  ;;  %v1737_v51 = vpop.f32.mrf.mxu0  ;;  %v2488_v20 = vld [vmem:[%s9356_s4 + $0x380] sm:$0xff] }
 0x1f8   :  { %2794 = vmatpush.msrb.mxu0 %v2488_v20  ;;  %v2532_v20 = vld [vmem:[%s9356_s4 + $0x4e0] sm:$0xff] }
 0x1f9   :  { %v1658_v35 = vadd.f32 %v1657_v57, %v1638_v21  ;;  %v2484_v21 = vld [vmem:[%s9356_s4 + $0x360] sm:$0xff] }
 0x1fa   :  { %v1677_v23 = vpop.f32.mrf.mxu2  ;;  %2795 = vmatpush.msrb.mxu0 %v2484_v21  ;;  %v2736_v21 = vld [vmem:[%s9356_s4 + $0xb40] sm:$0xff] }
 0x1fb   :  { %v1678_v4 = vadd.f32 %v1677_v23, %v1658_v35  ;;  %v2480_v35 = vld [vmem:[%s9356_s4 + $0x340] sm:$0xff] }
 0x1fc   :  { %2796 = vmatpush.msrb.mxu0 %v2480_v35  ;;  %v2392_v35 = vld [vmem:[%s9356_s4 + $0x80] sm:$0xff] }
 0x200   :  { %v1697_v24 = vpop.f32.mrf.mxu1 }
 0x201   :  { %v1698_v3 = vadd.f32 %v1697_v24, %v1678_v4  ;;  %v2000_v47 = vpop.f32.mrf.mxu0  ;;  %v2476_v4 = vld [vmem:[%s9356_s4 + $0x320] sm:$0xff] }
 0x202   :  { %v1717_v26 = vpop.f32.mrf.mxu3  ;;  %2797 = vmatpush.msrb.mxu0 %v2476_v4  ;;  %v2584_v4 = vld [vmem:[%s9356_s4 + $0x680] sm:$0xff] }
 0x203   :  { %v1718_v27 = vadd.f32 %v1717_v26, %v1698_v3  ;;  %v2472_v3 = vld [vmem:[%s9356_s4 + $0x300] sm:$0xff] }
 0x204   :  { %2798 = vmatpush.msrb.mxu0 %v2472_v3  ;;  %v2728_v3 = vld [vmem:[%s9356_s4 + $0xb00] sm:$0xff] }
 0x205   :  { %v7175_v58 = vadd.f32 %v1737_v51, %v1718_v27  ;;  %v2468_v27 = vld [vmem:[%s9356_s4 + $0x2e0] sm:$0xff] }
 0x206   :  { %v1980_v46 = vpop.f32.mrf.mxu2  ;;  %2799 = vmatpush.msrb.mxu0 %v2468_v27  ;;  %v2384_v27 = vld [vmem:[%s9356_s4 + $0x40] sm:$0xff] }
 0x207   :  { %v1784_v2 = vsel %vm1783_vm3, %v7175_v58, 0.0  ;;  %v1797_v29 = vmul.f32 %v7175_v58, %v7175_v58  ;;  %v2001_v49 = vadd.f32 %v2000_v47, %v1980_v46  ;;  %v2448_v46 = vld [vmem:[%s9356_s4 + $0x240] sm:$0xff] }
 0x208   :  { %v1785_v15 = vrot.slane %v1784_v2, 4  ;;  %v2556_v47 = vld [vmem:[%s9356_s4 + $0x5a0] sm:$0xff] }
 0x209   :  { %v1840_v31 = vsel %vm1783_vm3, %v1797_v29, 0.0  ;;  %vm3352_vm3 = vcmask 58368  }
 0x20a   :  { %v1786_v33 = vadd.f32 %v1785_v15, %v1784_v2  ;;  %v1841_v34 = vrot.slane %v1840_v31, 4  ;;  %v2464_v15 = vld [vmem:[%s9356_s4 + $0x2c0] sm:$0xff] }
 0x20b   :  { %2800 = vmatpush.msrb.mxu0 %v2464_v15  ;;  %v2720_v15 = vld [vmem:[%s9356_s4 + $0xac0] sm:$0xff] }
 0x20c   :  { %v1787_v13 = vrot.slane %v1786_v33, 2  ;;  %v1842_v36 = vadd.f32 %v1841_v34, %v1840_v31 }
 0x20e   :  { %v1788_v37 = vadd.f32 %v1787_v13, %v1786_v33  ;;  %v1843_v38 = vrot.slane %v1842_v36, 2  ;;  %v2460_v33 = vld [vmem:[%s9356_s4 + $0x2a0] sm:$0xff] }
 0x20f   :  { %2801 = vmatpush.msrb.mxu0 %v2460_v33  ;;  %v2376_v33 = vld [vmem:[%s9356_s4] sm:$0xff] }
 0x210   :  { %v1789_v40 = vrot.slane %v1788_v37, 1  ;;  %v1844_v9 = vadd.f32 %v1843_v38, %v1842_v36  ;;  %v2436_v36 = vld [vmem:[%s9356_s4 + $0x1e0] sm:$0xff] }
 0x211   :  { %v2456_v38 = vld [vmem:[%s9356_s4 + $0x280] sm:$0xff] }
 0x212   :  { %v1845_v41 = vrot.slane %v1844_v9, 1  ;;  %v1790_v42 = vadd.f32 %v1789_v40, %v1788_v37  ;;  %v2628_v37 = vld [vmem:[%s9356_s4 + $0x7e0] sm:$0xff]  ;;  %2802 = vmatpush.msrb.mxu0 %v2456_v38 }
 0x213   :  { %v2564_v40 = vld [vmem:[%s9356_s4 + $0x5e0] sm:$0xff] }
 0x214   :  { %v1846_v44 = vadd.f32 %v1845_v41, %v1844_v9  ;;  %v2432_v9 = vld [vmem:[%s9356_s4 + $0x1c0] sm:$0xff] }
 0x215   :  { %v2624_v41 = vld [vmem:[%s9356_s4 + $0x7c0] sm:$0xff] }
 0x216   :  { %v1854_v28 = vsel %vm1847_vm2, %v1790_v42, %v1846_v44  ;;  %v2452_v42 = vld [vmem:[%s9356_s4 + $0x260] sm:$0xff] }
 0x217   :  { %v1861_v45 = vmul.f32 0.5, %v1854_v28  ;;  %v2560_v44 = vld [vmem:[%s9356_s4 + $0x5c0] sm:$0xff]  ;;  %2803 = vmatpush.msrb.mxu0 %v2452_v42 }
 0x218   :  { %v2428_v28 = vld [vmem:[%s9356_s4 + $0x1a0] sm:$0xff] }
 0x219   :  { %4477 = vmatmul.msk.f32.vlgmr.msra.gmra.mxu1 %vm757_vm0, %v1861_v45  ;;  %v2620_v45 = vld [vmem:[%s9356_s4 + $0x7a0] sm:$0xff]  ;;  %2804 = vmatpush.msrb.mxu0 %v2448_v46 }
 0x21a   :  { %4488 = vmatpush.msk.msra.mxu1 %vm2139_vm4, %v2133_v11  ;;  %v2540_v11 = vld [vmem:[%s9356_s4 + $0x520] sm:$0xff]  ;;  %vm3449_vm4 = vcmask 64512  }
 0x21b   :  { %v2688_v38 = vld [vmem:[%s9356_s4 + $0x9c0] sm:$0xff] }
 0x21c   :  { %v2680_v42 = vld [vmem:[%s9356_s4 + $0x980] sm:$0xff] }
 0x21d   :  { %v2668_v46 = vld [vmem:[%s9356_s4 + $0x920] sm:$0xff] }
 0x220   :  { %v2020_v48 = vpop.f32.mrf.mxu1 }
 0x221   :  { %v2021_v50 = vadd.f32 %v2020_v48, %v2001_v49  ;;  %v2424_v48 = vld [vmem:[%s9356_s4 + $0x180] sm:$0xff] }
 0x222   :  { %v2616_v49 = vld [vmem:[%s9356_s4 + $0x780] sm:$0xff] }
 0x223   :  { %v2040_v53 = vpop.f32.mrf.mxu3 }
 0x224   :  { %v2041_v55 = vadd.f32 %v2040_v53, %v2021_v50  ;;  %v2444_v50 = vld [vmem:[%s9356_s4 + $0x220] sm:$0xff] }
 0x225   :  { %v2420_v53 = vld [vmem:[%s9356_s4 + $0x160] sm:$0xff]  ;;  %2805 = vmatpush.msrb.mxu0 %v2444_v50 }
 0x226   :  { %v2712_v50 = vld [vmem:[%s9356_s4 + $0xa80] sm:$0xff] }
 0x234   :  { %v2060_v54 = vpop.f32.mrf.mxu2 }
 0x235   :  { %v2061_v61 = vadd.f32 %v2060_v54, %v2041_v55  ;;  %v2552_v54 = vld [vmem:[%s9356_s4 + $0x580] sm:$0xff] }
 0x236   :  { %v2612_v55 = vld [vmem:[%s9356_s4 + $0x760] sm:$0xff] }
 0x257   :  { %v2080_v56 = vpop.f32.mrf.mxu0 }
 0x258   :  { %v2081_v39 = vadd.f32 %v2080_v56, %v2061_v61  ;;  %v2440_v56 = vld [vmem:[%s9356_s4 + $0x200] sm:$0xff] }
 0x259   :  { %v2416_v61 = vld [vmem:[%s9356_s4 + $0x140] sm:$0xff]  ;;  %2806 = vmatpush.msrb.mxu0 %v2440_v56 }
 0x25a   :  { %v2708_v56 = vld [vmem:[%s9356_s4 + $0xa60] sm:$0xff] }
 0x296   :  { %v2100_v32 = vpop.f32.mrf.mxu1 }
 0x297   :  { %v2101_v62 = vadd.f32 %v2100_v32, %v2081_v39  ;;  %v2756_v39 = vld [vmem:[%s9356_s4 + $0xbe0] sm:$0xff] }
 0x298   :  { %v2608_v32 = vld [vmem:[%s9356_s4 + $0x740] sm:$0xff] }
 0x299   :  { %v2103_v5 = vmul.f32 %v2101_v62, %v2101_v62  ;;  %v2119_v2 = vsub.f32 0.0, %v2101_v62 }
 0x29b   :  { %v2105_v6 = vrot.slane %v2103_v5, 7  ;;  %v2408_v5 = vld [vmem:[%s9356_s4 + $0x100] sm:$0xff] }
 0x29d   :  { %v2107_v7 = vsub.f32 %v2101_v62, %v2105_v6  ;;  %v2548_v62 = vld [vmem:[%s9356_s4 + $0x560] sm:$0xff] }
 0x29e   :  { %v2748_v6 = vld [vmem:[%s9356_s4 + $0xba0] sm:$0xff] }
 0x29f   :  { %v2108_v16 = vadd.f32 1e-05, %v2107_v7  ;;  %v2744_v7 = vld [vmem:[%s9356_s4 + $0xb80] sm:$0xff] }
 0x2a1   :  { %4513 = vrsqrt.f32 %v2108_v16  ;;  %vm2115_vm6 = vweird.f32 %v2108_v16 }
 0x2a7   :  { %v4514_v19 = vpop.eup %4513 }
 0x2a8   :  { %v2110_v60 = vmul.f32 %v4514_v19, %v2108_v16  ;;  %vm2116_vm5 = vweird.f32 %v4514_v19  ;;  %v2596_v16 = vld [vmem:[%s9356_s4 + $0x6e0] sm:$0xff] }
 0x2a9   :  { %vm2117_vm7 = vmor %vm2115_vm6, %vm2116_vm5 }
 0x2aa   :  { %v2111_v57 = vmul.f32 %v4514_v19, %v2110_v60  ;;  %v2396_v60 = vld [vmem:[%s9356_s4 + $0xa0] sm:$0xff] }
 0x2ac   :  { %v2112_v23 = vmul.f32 0.5, %v2111_v57  ;;  %v2588_v57 = vld [vmem:[%s9356_s4 + $0x6a0] sm:$0xff] }
 0x2ae   :  { %v2113_v24 = vsub.f32 1.5, %v2112_v23  ;;  %v2732_v23 = vld [vmem:[%s9356_s4 + $0xb20] sm:$0xff] }
 0x2b0   :  { %v2114_v26 = vmul.f32 %v4514_v19, %v2113_v24  ;;  %v2388_v24 = vld [vmem:[%s9356_s4 + $0x60] sm:$0xff] }
 0x2b2   :  { %v2118_v51 = vsel %vm2117_vm7, %v4514_v19, %v2114_v26  ;;  %v2592_v19 = vld [vmem:[%s9356_s4 + $0x6c0] sm:$0xff] }
 0x2b3   :  { %v2121_v29 = vrot.slane %v2118_v51, 1  ;;  %v2580_v26 = vld [vmem:[%s9356_s4 + $0x660] sm:$0xff] }
 0x2b4   :  { %v2724_v51 = vld [vmem:[%s9356_s4 + $0xae0] sm:$0xff] }
 0x2b5   :  { %v2123_v31 = vmul.f32 %v2121_v29, %v2119_v2  ;;  %v2576_v2 = vld [vmem:[%s9356_s4 + $0x640] sm:$0xff] }
 0x2b7   :  { %v2125_v34 = vrot.slane %v2123_v31, 7  ;;  %v2572_v31 = vld [vmem:[%s9356_s4 + $0x620] sm:$0xff] }
 0x2b9   :  { %v2127_v13 = vsel %vm1847_vm2, %v2121_v29, %v2125_v34  ;;  %v2380_v29 = vld [vmem:[%s9356_s4 + $0x20] sm:$0xff] }
 0x2ba   :  { %4479 = vmatmul.msk.f32.vlgmr.msrb.gmra.mxu3 %vm2135_vm8, %v2127_v13  ;;  %4481 = vmatmul.msk.f32.vlgmr.msrb.gmra.mxu1 %vm2135_vm8, %v2127_v13  ;;  %v2716_v34 = vld [vmem:[%s9356_s4 + $0xaa0] sm:$0xff] }
 0x2bb   :  { %4483 = vmatmul.msk.f32.vlgmr.msra.gmra.mxu2 %vm2135_vm8, %v2127_v13  ;;  %4487 = vmatmul.msk.f32.vlgmr.msra.gmra.mxu0 %vm2135_vm8, %v2127_v13 }
 0x2bc   :  { %2771 = vmatpush.msrb.mxu3 %v2436_v36  ;;  %2831 = vmatpush.msra.mxu2 %v2628_v37  ;;  %v2568_v36 = vld [vmem:[%s9356_s4 + $0x600] sm:$0xff]  ;;  %v2437_v37 = vld [vmem:[%s9356_s4 + $0x1e8] sm:$0xff] }
 0x2bd   :  { %2811 = vmatpush.msrb.mxu1 %v2564_v40  ;;  %2871 = vmatpush.msra.mxu0 %v2756_v39  ;;  %v2433_v40 = vld [vmem:[%s9356_s4 + $0x1c8] sm:$0xff]  ;;  %v2520_v39 = vld [vmem:[%s9356_s4 + $0x480] sm:$0xff] }
 0x2be   :  { %2772 = vmatpush.msrb.mxu3 %v2432_v9  ;;  %2832 = vmatpush.msra.mxu2 %v2624_v41  ;;  %v2684_v9 = vld [vmem:[%s9356_s4 + $0x9a0] sm:$0xff]  ;;  %v2429_v41 = vld [vmem:[%s9356_s4 + $0x1a8] sm:$0xff] }
 0x2bf   :  { %2812 = vmatpush.msrb.mxu1 %v2560_v44  ;;  %2872 = vmatpush.msra.mxu0 %v2752_v0  ;;  %v2425_v44 = vld [vmem:[%s9356_s4 + $0x188] sm:$0xff]  ;;  %v2516_v0 = vld [vmem:[%s9356_s4 + $0x460] sm:$0xff] }
 0x2c0   :  { %2773 = vmatpush.msrb.mxu3 %v2428_v28  ;;  %2833 = vmatpush.msra.mxu2 %v2620_v45  ;;  %v2676_v28 = vld [vmem:[%s9356_s4 + $0x960] sm:$0xff] }
 0x2c1   :  { %2813 = vmatpush.msrb.mxu1 %v2556_v47  ;;  %2873 = vmatpush.msra.mxu0 %v2748_v6  ;;  %v2672_v45 = vld [vmem:[%s9356_s4 + $0x940] sm:$0xff] }
 0x2c2   :  { %4485 = vmatmul.msk.f32.vlgmr.msra.gmra.mxu3 %vm2135_vm8, %v2127_v13  ;;  %4489 = vmatmul.msk.f32.vlgmr.msra.gmra.mxu1 %vm2135_vm8, %v2127_v13  ;;  %v2664_v47 = vld [vmem:[%s9356_s4 + $0x900] sm:$0xff] }
 0x2c3   :  { %4491 = vmatmul.msk.f32.vlgmr.msrb.gmra.mxu2 %vm2135_vm8, %v2127_v13  ;;  %2774 = vmatpush.msrb.mxu3 %v2424_v48  ;;  %v2692_v13 = vld [vmem:[%s9356_s4 + $0x9e0] sm:$0xff] }
 0x2c4   :  { %2834 = vmatpush.msra.mxu2 %v2616_v49  ;;  %2814 = vmatpush.msrb.mxu1 %v2552_v54  ;;  %v2528_v48 = vld [vmem:[%s9356_s4 + $0x4c0] sm:$0xff] }
 0x2c5   :  { %2775 = vmatpush.msrb.mxu3 %v2420_v53  ;;  %2874 = vmatpush.msra.mxu0 %v2744_v7  ;;  %v2660_v49 = vld [vmem:[%s9356_s4 + $0x8e0] sm:$0xff]  ;;  %v2421_v53 = vld [vmem:[%s9356_s4 + $0x168] sm:$0xff] }
 0x2c6   :  { %2835 = vmatpush.msra.mxu2 %v2612_v55  ;;  %2815 = vmatpush.msrb.mxu1 %v2548_v62  ;;  %v2524_v54 = vld [vmem:[%s9356_s4 + $0x4a0] sm:$0xff] }
 0x2c7   :  { %2776 = vmatpush.msrb.mxu3 %v2416_v61  ;;  %2875 = vmatpush.msra.mxu0 %v2740_v18  ;;  %v2656_v55 = vld [vmem:[%s9356_s4 + $0x8c0] sm:$0xff]  ;;  %v2417_v61 = vld [vmem:[%s9356_s4 + $0x148] sm:$0xff] }
 0x2c8   :  { %2836 = vmatpush.msra.mxu2 %v2608_v32  ;;  %2816 = vmatpush.msrb.mxu1 %v2544_v1  ;;  %v2652_v32 = vld [vmem:[%s9356_s4 + $0x8a0] sm:$0xff] }
 0x2c9   :  { %2777 = vmatpush.msrb.mxu3 %v2412_v63  ;;  %2876 = vmatpush.msra.mxu0 %v2736_v21  ;;  %v2704_v62 = vld [vmem:[%s9356_s4 + $0xa40] sm:$0xff]  ;;  %v2413_v63 = vld [vmem:[%s9356_s4 + $0x128] sm:$0xff] }
 0x2ca   :  { %2837 = vmatpush.msra.mxu2 %v2604_v43  ;;  %2817 = vmatpush.msrb.mxu1 %v2540_v11  ;;  %v2648_v43 = vld [vmem:[%s9356_s4 + $0x880] sm:$0xff] }
 0x2cb   :  { %2778 = vmatpush.msrb.mxu3 %v2408_v5  ;;  %2877 = vmatpush.msra.mxu0 %v2732_v23  ;;  %v2700_v1 = vld [vmem:[%s9356_s4 + $0xa20] sm:$0xff]  ;;  %v2409_v5 = vld [vmem:[%s9356_s4 + $0x108] sm:$0xff] }
 0x2cc   :  { %2838 = vmatpush.msra.mxu2 %v2600_v10  ;;  %2818 = vmatpush.msrb.mxu1 %v2536_v17  ;;  %v2512_v6 = vld [vmem:[%s9356_s4 + $0x440] sm:$0xff]  ;;  %v2401_v17 = vld [vmem:[%s9356_s4 + $0xc8] sm:$0xff] }
 0x2cd   :  { %2779 = vmatpush.msrb.mxu3 %v2404_v14  ;;  %2878 = vmatpush.msra.mxu0 %v2728_v3  ;;  %v2644_v10 = vld [vmem:[%s9356_s4 + $0x860] sm:$0xff]  ;;  %v2405_v14 = vld [vmem:[%s9356_s4 + $0xe8] sm:$0xff] }
 0x2ce   :  { %2839 = vmatpush.msra.mxu2 %v2596_v16  ;;  %2819 = vmatpush.msrb.mxu1 %v2532_v20  ;;  %v2696_v11 = vld [vmem:[%s9356_s4 + $0xa00] sm:$0xff]  ;;  %v2397_v20 = vld [vmem:[%s9356_s4 + $0xa8] sm:$0xff] }
 0x2cf   :  { %2780 = vmatpush.msrb.mxu3 %v2400_v8  ;;  %2879 = vmatpush.msra.mxu0 %v2724_v51  ;;  %v2508_v7 = vld [vmem:[%s9356_s4 + $0x420] sm:$0xff]  ;;  %v2385_v23 = vld [vmem:[%s9356_s4 + $0x48] sm:$0xff] }
 0x2d0   :  { %2840 = vmatpush.msra.mxu2 %v2592_v19  ;;  %2820 = vmatpush.msrb.mxu1 %v2528_v48  ;;  %v2640_v16 = vld [vmem:[%s9356_s4 + $0x840] sm:$0xff]  ;;  %v2381_v3 = vld [vmem:[%s9356_s4 + $0x28] sm:$0xff] }
 0x2d1   :  { %2781 = vmatpush.msrb.mxu3 %v2396_v60  ;;  %2880 = vmatpush.msra.mxu0 %v2720_v15  ;;  %v2504_v8 = vld [vmem:[%s9356_s4 + $0x400] sm:$0xff] }
 0x2d2   :  { %2841 = vmatpush.msra.mxu2 %v2588_v57  ;;  %2821 = vmatpush.msrb.mxu1 %v2524_v54  ;;  %v2636_v18 = vld [vmem:[%s9356_s4 + $0x820] sm:$0xff]  ;;  %v2393_v57 = vld [vmem:[%s9356_s4 + $0x88] sm:$0xff] }
 0x2d3   :  { %2782 = vmatpush.msrb.mxu3 %v2392_v35  ;;  %2881 = vmatpush.msra.mxu0 %v2716_v34  ;;  %v2764_v19 = vld [vmem:[%s9356_s4 + $0xc20] sm:$0xff]  ;;  %v2389_v35 = vld [vmem:[%s9356_s4 + $0x68] sm:$0xff] }
 0x2d4   :  { %2842 = vmatpush.msra.mxu2 %v2584_v4  ;;  %2822 = vmatpush.msrb.mxu1 %v2520_v39  ;;  %v2632_v60 = vld [vmem:[%s9356_s4 + $0x800] sm:$0xff] }
 0x2d5   :  { %2783 = vmatpush.msrb.mxu3 %v2388_v24  ;;  %2882 = vmatpush.msra.mxu0 %v2712_v50  ;;  %v2760_v21 = vld [vmem:[%s9356_s4 + $0xc00] sm:$0xff] }
 0x2d6   :  { %2843 = vmatpush.msra.mxu2 %v2580_v26  ;;  %2823 = vmatpush.msrb.mxu1 %v2516_v0  ;;  %v4492_v4 = vld [vmem:[%s9355_s3 + $0x4] ss:$8 sm:$0xf] }
 0x2d7   :  { %2784 = vmatpush.msrb.mxu3 %v2384_v27  ;;  %2883 = vmatpush.msra.mxu0 %v2708_v56  ;;  %v4493_v24 = vld [vmem:[%s9355_s3 + $0x4] ss:$8 sm:$0x70] }
 0x2d8   :  { %2844 = vmatpush.msra.mxu2 %v2576_v2  ;;  %2824 = vmatpush.msrb.mxu1 %v2512_v6  ;;  %v2377_v26 = vld [vmem:[%s9356_s4 + $0x8] sm:$0xff]  ;;  %v7566_v27 = vor.u32 %v4493_v24, %v4492_v4 }
 0x2d9   :  { %2785 = vmatpush.msrb.mxu3 %v2380_v29  ;;  %2884 = vmatpush.msra.mxu0 %v2704_v62  ;;  %v2629_v56 = vld [vmem:[%s9356_s4 + $0x7e8] sm:$0xff] }
 0x2da   :  { %2845 = vmatpush.msra.mxu2 %v2572_v31  ;;  %2825 = vmatpush.msrb.mxu1 %v2508_v7  ;;  %v2321_v51 = vperm.slane %v7566_v27, 1  ;;  %v2621_v6 = vld [vmem:[%s9356_s4 + $0x7a8] sm:$0xff] }
 0x2db   :  { %2786 = vmatpush.msrb.mxu3 %v2376_v33  ;;  %2885 = vmatpush.msra.mxu0 %v2700_v1  ;;  %v2324_v33 = vperm.slane %v7566_v27, 4  ;;  %v2565_v7 = vld [vmem:[%s9356_s4 + $0x5e8] sm:$0xff] }
 0x2dc   :  { %2846 = vmatpush.msra.mxu2 %v2568_v36  ;;  %2826 = vmatpush.msrb.mxu1 %v2504_v8  ;;  %v2320_v36 = vperm.slane %v7566_v27, 0 }
 0x2dd   :  { %2851 = vmatpush.msra.mxu3 %v2692_v13  ;;  %2886 = vmatpush.msra.mxu0 %v2696_v11 }
 0x2de   :  { %2911 = vmatpush.msrb.mxu2 %v2437_v37  ;;  %2905 = vmatpush.msra.mxu1 %v2764_v19  ;;  %v2501_v19 = vld [vmem:[%s9356_s4 + $0x3e8] sm:$0xff] }
 0x2df   :  { %2852 = vmatpush.msra.mxu3 %v2688_v38  ;;  %v2322_v38 = vperm.slane %v7566_v27, 2 }
 0x2e0   :  { %2912 = vmatpush.msrb.mxu2 %v2433_v40  ;;  %2906 = vmatpush.msra.mxu1 %v2760_v21 }
 0x2e1   :  { %2853 = vmatpush.msra.mxu3 %v2684_v9  ;;  %v2325_v9 = vperm.slane %v7566_v27, 5 }
 0x2e2   :  { %2913 = vmatpush.msrb.mxu2 %v2429_v41 }
 0x2e3   :  { %2854 = vmatpush.msra.mxu3 %v2680_v42 }
 0x2e4   :  { %2914 = vmatpush.msrb.mxu2 %v2425_v44 }
 0x2e5   :  { %2855 = vmatpush.msra.mxu3 %v2676_v28 }
 0x2e6   :  { %2915 = vmatpush.msrb.mxu2 %v2421_v53 }
 0x2e7   :  { %2856 = vmatpush.msra.mxu3 %v2672_v45 }
 0x2e8   :  { %2916 = vmatpush.msrb.mxu2 %v2417_v61 }
 0x2e9   :  { %2857 = vmatpush.msra.mxu3 %v2668_v46 }
 0x2ea   :  { %2917 = vmatpush.msrb.mxu2 %v2413_v63 }
 0x2eb   :  { %2858 = vmatpush.msra.mxu3 %v2664_v47 }
 0x2ec   :  { %2918 = vmatpush.msrb.mxu2 %v2409_v5  ;;  %v2326_v5 = vperm.slane %v7566_v27, 6 }
 0x2ed   :  { %2859 = vmatpush.msra.mxu3 %v2660_v49 }
 0x2ee   :  { %2919 = vmatpush.msrb.mxu2 %v2405_v14 }
 0x2ef   :  { %2860 = vmatpush.msra.mxu3 %v2656_v55 }
 0x2f0   :  { %2920 = vmatpush.msrb.mxu2 %v2401_v17 }
 0x2f1   :  { %2861 = vmatpush.msra.mxu3 %v2652_v32 }
 0x2f2   :  { %2921 = vmatpush.msrb.mxu2 %v2397_v20  ;;  %v2617_v20 = vld [vmem:[%s9356_s4 + $0x788] sm:$0xff] }
 0x2f3   :  { %2862 = vmatpush.msra.mxu3 %v2648_v43  ;;  %v2323_v43 = vperm.slane %v7566_v27, 3 }
 0x2f4   :  { %2922 = vmatpush.msrb.mxu2 %v2393_v57 }
 0x2f5   :  { %2863 = vmatpush.msra.mxu3 %v2644_v10 }
 0x2f6   :  { %2923 = vmatpush.msrb.mxu2 %v2389_v35 }
 0x2f7   :  { %2864 = vmatpush.msra.mxu3 %v2640_v16 }
 0x2f8   :  { %2924 = vmatpush.msrb.mxu2 %v2385_v23  ;;  %v2561_v23 = vld [vmem:[%s9356_s4 + $0x5c8] sm:$0xff] }
 0x2f9   :  { %2865 = vmatpush.msra.mxu3 %v2636_v18 }
 0x2fa   :  { %2925 = vmatpush.msrb.mxu2 %v2381_v3  ;;  %v2497_v3 = vld [vmem:[%s9356_s4 + $0x3c8] sm:$0xff] }
 0x2fb   :  { %2866 = vmatpush.msra.mxu3 %v2632_v60 }
 0x2fc   :  { %2926 = vmatpush.msrb.mxu2 %v2377_v26  ;;  %v2613_v26 = vld [vmem:[%s9356_s4 + $0x768] sm:$0xff] }
 0x337   :  { %v2198_v2 = vpop.f32.mrf.mxu1 }
 0x338   :  { %v2302_v29 = vperm.slane %v2198_v2, 0  ;;  %v2335_v15 = vadd.f32 %v2321_v51, %v2198_v2  ;;  %v2258_v31 = vpop.f32.mrf.mxu0 }
 0x339   :  { %v2305_v37 = vperm.slane %v2258_v31, 0  ;;  %v2338_v41 = vadd.f32 %v2324_v33, %v2258_v31  ;;  %v2553_v33 = vld [vmem:[%s9356_s4 + $0x588] sm:$0xff] }
 0x33a   :  { %v2309_v34 = vmul.f32 %v2302_v29, %v6727_v30  ;;  %v2342_v13 = vperm.slane %v2335_v15, 1  ;;  %v2493_v15 = vld [vmem:[%s9356_s4 + $0x3a8] sm:$0xff] }
 0x33b   :  { %v2312_v47 = vmul.f32 %v2305_v37, %v7101_v25  ;;  %v2345_v61 = vperm.slane %v2338_v41, 1 }
 0x33c   :  { %v2349_v40 = vadd.f32 %v2342_v13, %v2309_v34  ;;  %v2489_v13 = vld [vmem:[%s9356_s4 + $0x388] sm:$0xff] }
 0x33d   :  { %v2178_v42 = vpop.f32.mrf.mxu3  ;;  %v2352_v10 = vadd.f32 %v2345_v61, %v2312_v47  ;;  %v2481_v47 = vld [vmem:[%s9356_s4 + $0x348] sm:$0xff] }
 0x33e   :  { %v2301_v44 = vperm.slane %v2178_v42, 0  ;;  %v2334_v28 = vadd.f32 %v2320_v36, %v2178_v42  ;;  %v2218_v45 = vpop.f32.mrf.mxu2  ;;  %vm2356_vm9 = vcmp.ge.f32.partialorder %v2349_v40, 0.0  ;;  %v2363_v46 = vmul.f32 0.01, %v2349_v40  ;;  %v2605_v36 = vld [vmem:[%s9356_s4 + $0x728] sm:$0xff] }
 0x33f   :  { %v2303_v48 = vperm.slane %v2218_v45, 0  ;;  %v2336_v30 = vadd.f32 %v2322_v38, %v2218_v45  ;;  %v2278_v49 = vpop.f32.mrf.mxu1  ;;  %v2366_v34 = vmul.f32 0.01, %v2352_v10  ;;  %vm2359_vm14 = vcmp.ge.f32.partialorder %v2352_v10, 0.0  ;;  %v2693_v45 = vld [vmem:[%s9356_s4 + $0x9e8] sm:$0xff] }
 0x340   :  { %v2308_v50 = vmul.f32 %v2301_v44, %v6716_v52  ;;  %v2341_v53 = vperm.slane %v2334_v28, 1  ;;  %v2306_v54 = vperm.slane %v2278_v49, 0  ;;  %v2339_v55 = vadd.f32 %v2325_v9, %v2278_v49  ;;  %v2625_v52 = vld [vmem:[%s9356_s4 + $0x7c8] sm:$0xff] }
 0x341   :  { %v2310_v39 = vmul.f32 %v2303_v48, %v6924_v22  ;;  %v2343_v32 = vperm.slane %v2336_v30, 1  ;;  %v7580_v62 = vsel %vm2356_vm9, %v2349_v40, %v2363_v46  ;;  %v2549_v9 = vld [vmem:[%s9356_s4 + $0x568] sm:$0xff]  ;;  %v7645_v41 = vsel %vm2359_vm14, %v2352_v10, %v2366_v34 }
 0x342   :  { %v2348_v63 = vadd.f32 %v2341_v53, %v2308_v50  ;;  %v2313_v25 = vmul.f32 %v2306_v54, %v7161_v59  ;;  %v2346_v0 = vperm.slane %v2339_v55, 1  ;;  %2807 = vmatmul.f32.vlgmr.msrb.gmra.mxu0 %v7580_v62  ;;  %v2485_v44 = vld [vmem:[%s9356_s4 + $0x368] sm:$0xff] }
 0x343   :  { %v2350_v1 = vadd.f32 %v2343_v32, %v2310_v39  ;;  %2971 = vmatpush.msrb.mxu0 %v2629_v56  ;;  %v2601_v28 = vld [vmem:[%s9356_s4 + $0x708] sm:$0xff] }
 0x344   :  { %v2353_v22 = vadd.f32 %v2346_v0, %v2313_v25  ;;  %vm2355_vm10 = vcmp.ge.f32.partialorder %v2348_v63, 0.0  ;;  %v2362_v59 = vmul.f32 0.01, %v2348_v63  ;;  %v2545_v46 = vld [vmem:[%s9356_s4 + $0x548] sm:$0xff] }
 0x345   :  { %2972 = vmatpush.msrb.mxu0 %v2625_v52  ;;  %v2238_v11 = vpop.f32.mrf.mxu3  ;;  %vm2357_vm11 = vcmp.ge.f32.partialorder %v2350_v1, 0.0  ;;  %v2364_v14 = vmul.f32 0.01, %v2350_v1  ;;  %v2597_v48 = vld [vmem:[%s9356_s4 + $0x6e8] sm:$0xff] }
 0x346   :  { %v2304_v16 = vperm.slane %v2238_v11, 0  ;;  %v2337_v17 = vadd.f32 %v2323_v43, %v2238_v11  ;;  %v2298_v8 = vpop.f32.mrf.mxu2  ;;  %v7595_v18 = vsel %vm2355_vm10, %v2348_v63, %v2362_v59  ;;  %vm2360_vm12 = vcmp.ge.f32.partialorder %v2353_v22, 0.0  ;;  %v2689_v30 = vld [vmem:[%s9356_s4 + $0x9c8] sm:$0xff] }
 0x347   :  { %v2307_v60 = vperm.slane %v2298_v8, 0  ;;  %v2340_v21 = vadd.f32 %v2326_v5, %v2298_v8  ;;  %2973 = vmatpush.msrb.mxu0 %v2621_v6  ;;  %2787 = vmatmul.f32.vlgmr.msrb.gmra.mxu3 %v7595_v18  ;;  %v7604_v57 = vsel %vm2357_vm11, %v2350_v1, %v2364_v14  ;;  %v2367_v35 = vmul.f32 0.01, %v2353_v22  ;;  %v2541_v49 = vld [vmem:[%s9356_s4 + $0x528] sm:$0xff] }
 0x348   :  { %v2311_v4 = vmul.f32 %v2304_v16, %v6902_v12  ;;  %v2344_v24 = vperm.slane %v2337_v17, 1  ;;  %2827 = vmatmul.f32.vlgmr.msrb.gmra.mxu1 %v7604_v57  ;;  %2951 = vmatpush.msrb.mxu3 %v2565_v7  ;;  %v2557_v12 = vld [vmem:[%s9356_s4 + $0x5a8] sm:$0xff] }
 0x349   :  { %v2314_v27 = vmul.f32 %v2307_v60, %v7175_v58  ;;  %v2347_v51 = vperm.slane %v2340_v21, 1  ;;  %2931 = vmatpush.msrb.mxu1 %v2501_v19  ;;  %2974 = vmatpush.msrb.mxu0 %v2617_v20  ;;  %v7619_v2 = vsel %vm2360_vm12, %v2353_v22, %v2367_v35  ;;  %v2609_v58 = vld [vmem:[%s9356_s4 + $0x748] sm:$0xff]  ;;  %v2438_v21 = vld [vmem:[%s9356_s4 + $0x1f0] sm:$0xff] }
 0x34a   :  { %v2351_v29 = vadd.f32 %v2344_v24, %v2311_v4  ;;  %2887 = vmatmul.f32.vlgmr.msra.gmra.mxu0 %v7619_v2  ;;  %2952 = vmatpush.msrb.mxu3 %v2561_v23  ;;  %v2477_v50 = vld [vmem:[%s9356_s4 + $0x328] sm:$0xff]  ;;  %v2434_v24 = vld [vmem:[%s9356_s4 + $0x1d0] sm:$0xff] }
 0x34b   :  { %v2354_v31 = vadd.f32 %v2347_v51, %v2314_v27  ;;  %2932 = vmatpush.msrb.mxu1 %v2497_v3  ;;  %2975 = vmatpush.msrb.mxu0 %v2613_v26  ;;  %v2593_v53 = vld [vmem:[%s9356_s4 + $0x6c8] sm:$0xff]  ;;  %v2430_v51 = vld [vmem:[%s9356_s4 + $0x1b0] sm:$0xff] }
 0x34c   :  { %2953 = vmatpush.msrb.mxu3 %v2557_v12  ;;  %vm2358_vm13 = vcmp.ge.f32.partialorder %v2351_v29, 0.0  ;;  %v2365_v37 = vmul.f32 0.01, %v2351_v29  ;;  %v2685_v54 = vld [vmem:[%s9356_s4 + $0x9a8] sm:$0xff] }
 0x34d   :  { %v2368_v38 = vmul.f32 0.01, %v2354_v31  ;;  %2933 = vmatpush.msrb.mxu1 %v2493_v15  ;;  %2976 = vmatpush.msrb.mxu0 %v2609_v58  ;;  %vm2361_vm15 = vcmp.ge.f32.partialorder %v2354_v31, 0.0  ;;  %v2537_v55 = vld [vmem:[%s9356_s4 + $0x508] sm:$0xff] }
 0x34e   :  { %2954 = vmatpush.msrb.mxu3 %v2553_v33  ;;  %v7640_v40 = vsel %vm2358_vm13, %v2351_v29, %v2365_v37  ;;  %v2473_v56 = vld [vmem:[%s9356_s4 + $0x308] sm:$0xff] }
 0x34f   :  { %2934 = vmatpush.msrb.mxu1 %v2489_v13  ;;  %2977 = vmatpush.msrb.mxu0 %v2605_v36  ;;  %v7647_v42 = vsel %vm2361_vm15, %v2354_v31, %v2368_v38  ;;  %v2589_v61 = vld [vmem:[%s9356_s4 + $0x6a8] sm:$0xff]  ;;  %v2426_v31 = vld [vmem:[%s9356_s4 + $0x190] sm:$0xff] }
 0x350   :  { %2847 = vmatmul.f32.vlgmr.msra.gmra.mxu2 %v7640_v40  ;;  %2867 = vmatmul.f32.vlgmr.msra.gmra.mxu3 %v7645_v41  ;;  %v2681_v39 = vld [vmem:[%s9356_s4 + $0x988] sm:$0xff]  ;;  %v2422_v36 = vld [vmem:[%s9356_s4 + $0x170] sm:$0xff] }
 0x351   :  { %4494 = vmatmul.msk.f32.vlgmr.msra.gmra.mxu1 %vm757_vm0, %v7647_v42  ;;  %2955 = vmatpush.msrb.mxu3 %v2549_v9  ;;  %v2533_v32 = vld [vmem:[%s9356_s4 + $0x4e8] sm:$0xff]  ;;  %v2566_v38 = vld [vmem:[%s9356_s4 + $0x5f0] sm:$0xff] }
 0x352   :  { %2935 = vmatpush.msrb.mxu1 %v2485_v44  ;;  %2978 = vmatpush.msrb.mxu0 %v2601_v28  ;;  %v2469_v63 = vld [vmem:[%s9356_s4 + $0x2e8] sm:$0xff]  ;;  %v2418_v44 = vld [vmem:[%s9356_s4 + $0x150] sm:$0xff] }
 0x353   :  { %2991 = vmatpush.msra.mxu2 %v2693_v45  ;;  %2956 = vmatpush.msrb.mxu3 %v2545_v46  ;;  %v2585_v25 = vld [vmem:[%s9356_s4 + $0x688] sm:$0xff]  ;;  %v2562_v45 = vld [vmem:[%s9356_s4 + $0x5d0] sm:$0xff] }
 0x354   :  { %2936 = vmatpush.msrb.mxu1 %v2481_v47  ;;  %2979 = vmatpush.msrb.mxu0 %v2597_v48  ;;  %v2677_v0 = vld [vmem:[%s9356_s4 + $0x968] sm:$0xff]  ;;  %v2414_v47 = vld [vmem:[%s9356_s4 + $0x130] sm:$0xff] }
 0x355   :  { %2992 = vmatpush.msra.mxu2 %v2689_v30  ;;  %2957 = vmatpush.msrb.mxu3 %v2541_v49  ;;  %v2465_v52 = vld [vmem:[%s9356_s4 + $0x2c8] sm:$0xff]  ;;  %v2558_v30 = vld [vmem:[%s9356_s4 + $0x5b0] sm:$0xff] }
 0x356   :  { %2937 = vmatpush.msrb.mxu1 %v2477_v50  ;;  %2980 = vmatpush.msrb.mxu0 %v2593_v53  ;;  %v2529_v43 = vld [vmem:[%s9356_s4 + $0x4c8] sm:$0xff]  ;;  %v2410_v50 = vld [vmem:[%s9356_s4 + $0x110] sm:$0xff] }
 0x357   :  { %2993 = vmatpush.msra.mxu2 %v2685_v54  ;;  %2958 = vmatpush.msrb.mxu3 %v2537_v55  ;;  %v2581_v1 = vld [vmem:[%s9356_s4 + $0x668] sm:$0xff]  ;;  %v2502_v53 = vld [vmem:[%s9356_s4 + $0x3f0] sm:$0xff] }
 0x358   :  { %2938 = vmatpush.msrb.mxu1 %v2473_v56  ;;  %2981 = vmatpush.msrb.mxu0 %v2589_v61  ;;  %v2673_v5 = vld [vmem:[%s9356_s4 + $0x948] sm:$0xff]  ;;  %v2554_v54 = vld [vmem:[%s9356_s4 + $0x590] sm:$0xff] }
 0x359   :  { %2994 = vmatpush.msra.mxu2 %v2681_v39  ;;  %2959 = vmatpush.msrb.mxu3 %v2533_v32  ;;  %v2461_v22 = vld [vmem:[%s9356_s4 + $0x2a8] sm:$0xff]  ;;  %v2406_v56 = vld [vmem:[%s9356_s4 + $0xf0] sm:$0xff] }
 0x35a   :  { %2927 = vmatmul.f32.vlgmr.msrb.gmra.mxu2 %v7595_v18  ;;  %2939 = vmatpush.msrb.mxu1 %v2469_v63  ;;  %v2525_v6 = vld [vmem:[%s9356_s4 + $0x4a8] sm:$0xff]  ;;  %v2498_v61 = vld [vmem:[%s9356_s4 + $0x3d0] sm:$0xff] }
 0x35b   :  { %2982 = vmatpush.msrb.mxu0 %v2585_v25  ;;  %2995 = vmatpush.msra.mxu2 %v2677_v0  ;;  %v2577_v59 = vld [vmem:[%s9356_s4 + $0x648] sm:$0xff]  ;;  %v2550_v39 = vld [vmem:[%s9356_s4 + $0x570] sm:$0xff] }
 0x35c   :  { %2940 = vmatpush.msrb.mxu1 %v2465_v52  ;;  %2960 = vmatpush.msrb.mxu3 %v2529_v43  ;;  %v2669_v10 = vld [vmem:[%s9356_s4 + $0x928] sm:$0xff]  ;;  %v2402_v63 = vld [vmem:[%s9356_s4 + $0xd0] sm:$0xff] }
 0x35d   :  { %2983 = vmatpush.msrb.mxu0 %v2581_v1  ;;  %2996 = vmatpush.msra.mxu2 %v2673_v5  ;;  %v2457_v11 = vld [vmem:[%s9356_s4 + $0x288] sm:$0xff]  ;;  %v2494_v25 = vld [vmem:[%s9356_s4 + $0x3b0] sm:$0xff] }
 0x35e   :  { %v2521_v14 = vld [vmem:[%s9356_s4 + $0x488] sm:$0xff]  ;;  %2941 = vmatpush.msrb.mxu1 %v2461_v22  ;;  %2961 = vmatpush.msrb.mxu3 %v2525_v6  ;;  %v2546_v0 = vld [vmem:[%s9356_s4 + $0x550] sm:$0xff] }
 0x35f   :  { %v2573_v7 = vld [vmem:[%s9356_s4 + $0x628] sm:$0xff]  ;;  %2984 = vmatpush.msrb.mxu0 %v2577_v59  ;;  %2997 = vmatpush.msra.mxu2 %v2669_v10  ;;  %v2398_v43 = vld [vmem:[%s9356_s4 + $0xb0] sm:$0xff] }
 0x360   :  { %v2665_v16 = vld [vmem:[%s9356_s4 + $0x908] sm:$0xff]  ;;  %2942 = vmatpush.msrb.mxu1 %v2457_v11  ;;  %2962 = vmatpush.msrb.mxu3 %v2521_v14  ;;  %v2490_v1 = vld [vmem:[%s9356_s4 + $0x390] sm:$0xff] }
 0x361   :  { %v2453_v17 = vld [vmem:[%s9356_s4 + $0x268] sm:$0xff]  ;;  %2985 = vmatpush.msrb.mxu0 %v2573_v7  ;;  %2998 = vmatpush.msra.mxu2 %v2665_v16  ;;  %v2542_v5 = vld [vmem:[%s9356_s4 + $0x530] sm:$0xff] }
 0x362   :  { %v2517_v8 = vld [vmem:[%s9356_s4 + $0x468] sm:$0xff]  ;;  %2943 = vmatpush.msrb.mxu1 %v2453_v17  ;;  %v2394_v6 = vld [vmem:[%s9356_s4 + $0x90] sm:$0xff] }
 0x363   :  { %v2569_v19 = vld [vmem:[%s9356_s4 + $0x608] sm:$0xff]  ;;  %2963 = vmatpush.msrb.mxu3 %v2517_v8  ;;  %v2486_v59 = vld [vmem:[%s9356_s4 + $0x370] sm:$0xff] }
 0x364   :  { %v2661_v20 = vld [vmem:[%s9356_s4 + $0x8e8] sm:$0xff]  ;;  %2986 = vmatpush.msrb.mxu0 %v2569_v19  ;;  %v2538_v10 = vld [vmem:[%s9356_s4 + $0x510] sm:$0xff] }
 0x365   :  { %v2449_v60 = vld [vmem:[%s9356_s4 + $0x248] sm:$0xff]  ;;  %2999 = vmatpush.msra.mxu2 %v2661_v20  ;;  %2987 = vmatmul.f32.vlgmr.msrb.gmra.mxu0 %v7640_v40  ;;  %v2390_v14 = vld [vmem:[%s9356_s4 + $0x70] sm:$0xff] }
 0x366   :  { %v2513_v35 = vld [vmem:[%s9356_s4 + $0x448] sm:$0xff]  ;;  %2944 = vmatpush.msrb.mxu1 %v2449_v60  ;;  %3051 = vmatpush.msra.mxu0 %v2438_v21  ;;  %v2482_v7 = vld [vmem:[%s9356_s4 + $0x350] sm:$0xff] }
 0x367   :  { %v2657_v23 = vld [vmem:[%s9356_s4 + $0x8c8] sm:$0xff]  ;;  %2964 = vmatpush.msrb.mxu3 %v2513_v35  ;;  %v2534_v16 = vld [vmem:[%s9356_s4 + $0x4f0] sm:$0xff] }
 0x368   :  { %v2445_v4 = vld [vmem:[%s9356_s4 + $0x228] sm:$0xff]  ;;  %3000 = vmatpush.msra.mxu2 %v2657_v23  ;;  %3052 = vmatpush.msra.mxu0 %v2434_v24  ;;  %v2386_v8 = vld [vmem:[%s9356_s4 + $0x50] sm:$0xff] }
 0x369   :  { %v2509_v3 = vld [vmem:[%s9356_s4 + $0x428] sm:$0xff]  ;;  %2945 = vmatpush.msrb.mxu1 %v2445_v4  ;;  %v2478_v19 = vld [vmem:[%s9356_s4 + $0x330] sm:$0xff] }
 0x36a   :  { %v2653_v26 = vld [vmem:[%s9356_s4 + $0x8a8] sm:$0xff]  ;;  %2965 = vmatpush.msrb.mxu3 %v2509_v3  ;;  %3053 = vmatpush.msra.mxu0 %v2430_v51  ;;  %v2530_v20 = vld [vmem:[%s9356_s4 + $0x4d0] sm:$0xff] }
 0x36b   :  { %v2441_v27 = vld [vmem:[%s9356_s4 + $0x208] sm:$0xff]  ;;  %3001 = vmatpush.msra.mxu2 %v2653_v26  ;;  %v2382_v21 = vld [vmem:[%s9356_s4 + $0x30] sm:$0xff] }
 0x36c   :  { %v2505_v12 = vld [vmem:[%s9356_s4 + $0x408] sm:$0xff]  ;;  %2946 = vmatpush.msrb.mxu1 %v2441_v27  ;;  %3054 = vmatpush.msra.mxu0 %v2426_v31  ;;  %v2474_v35 = vld [vmem:[%s9356_s4 + $0x310] sm:$0xff] }
 0x36d   :  { %v2649_v29 = vld [vmem:[%s9356_s4 + $0x888] sm:$0xff]  ;;  %2966 = vmatpush.msrb.mxu3 %v2505_v12  ;;  %2947 = vmatmul.f32.vlgmr.msrb.gmra.mxu1 %v7580_v62  ;;  %v2526_v23 = vld [vmem:[%s9356_s4 + $0x4b0] sm:$0xff] }
 0x36e   :  { %v2757_v15 = vld [vmem:[%s9356_s4 + $0xbe8] sm:$0xff]  ;;  %3002 = vmatpush.msra.mxu2 %v2649_v29  ;;  %2967 = vmatmul.f32.vlgmr.msrb.gmra.mxu3 %v7604_v57  ;;  %v2378_v24 = vld [vmem:[%s9356_s4 + $0x10] sm:$0xff] }
 0x36f   :  { %v2765_v58 = vld [vmem:[%s9356_s4 + $0xc28] sm:$0xff]  ;;  %3011 = vmatpush.msra.mxu1 %v2757_v15  ;;  %3055 = vmatpush.msra.mxu0 %v2422_v36  ;;  %v2470_v3 = vld [vmem:[%s9356_s4 + $0x2f0] sm:$0xff] }
 0x370   :  { %v2645_v33 = vld [vmem:[%s9356_s4 + $0x868] sm:$0xff]  ;;  %3045 = vmatpush.msra.mxu3 %v2765_v58  ;;  %v2522_v26 = vld [vmem:[%s9356_s4 + $0x490] sm:$0xff] }
 0x371   :  { %v2753_v34 = vld [vmem:[%s9356_s4 + $0xbc8] sm:$0xff]  ;;  %3003 = vmatpush.msra.mxu2 %v2645_v33  ;;  %3056 = vmatpush.msra.mxu0 %v2418_v44  ;;  %v2694_v27 = vld [vmem:[%s9356_s4 + $0x9f0] sm:$0xff] }
 0x372   :  { %v2761_v13 = vld [vmem:[%s9356_s4 + $0xc08] sm:$0xff]  ;;  %3012 = vmatpush.msra.mxu1 %v2753_v34  ;;  %v2466_v12 = vld [vmem:[%s9356_s4 + $0x2d0] sm:$0xff] }
 0x373   :  { %v2641_v37 = vld [vmem:[%s9356_s4 + $0x848] sm:$0xff]  ;;  %3046 = vmatpush.msra.mxu3 %v2761_v13  ;;  %3057 = vmatpush.msra.mxu0 %v2414_v47  ;;  %v2518_v29 = vld [vmem:[%s9356_s4 + $0x470] sm:$0xff] }
 0x374   :  { %v2749_v9 = vld [vmem:[%s9356_s4 + $0xba8] sm:$0xff]  ;;  %3004 = vmatpush.msra.mxu2 %v2641_v37  ;;  %v2690_v15 = vld [vmem:[%s9356_s4 + $0x9d0] sm:$0xff] }
 0x375   :  { %v2637_v28 = vld [vmem:[%s9356_s4 + $0x828] sm:$0xff]  ;;  %3091 = vmatpush.msrb.mxu3 %v2566_v38  ;;  %3013 = vmatpush.msra.mxu1 %v2749_v9  ;;  %v2462_v31 = vld [vmem:[%s9356_s4 + $0x2b0] sm:$0xff] }
 0x376   :  { %v2745_v46 = vld [vmem:[%s9356_s4 + $0xb88] sm:$0xff]  ;;  %3005 = vmatpush.msra.mxu2 %v2637_v28  ;;  %4495 = vmatmul.msk.f32.vlgmr.msra.gmra.mxu3 %vm757_vm0, %v7647_v42  ;;  %v2514_v33 = vld [vmem:[%s9356_s4 + $0x450] sm:$0xff] }
 0x377   :  { %v2633_v48 = vld [vmem:[%s9356_s4 + $0x808] sm:$0xff]  ;;  %3092 = vmatpush.msrb.mxu3 %v2562_v45  ;;  %3014 = vmatpush.msra.mxu1 %v2745_v46  ;;  %v2686_v34 = vld [vmem:[%s9356_s4 + $0x9b0] sm:$0xff] }
 0x378   :  { %v2741_v49 = vld [vmem:[%s9356_s4 + $0xb68] sm:$0xff]  ;;  %3006 = vmatpush.msra.mxu2 %v2633_v48  ;;  %3058 = vmatpush.msra.mxu0 %v2410_v50  ;;  %v2458_v36 = vld [vmem:[%s9356_s4 + $0x290] sm:$0xff] }
 0x379   :  { %3093 = vmatpush.msrb.mxu3 %v2558_v30  ;;  %3007 = vmatmul.f32.vlgmr.msra.gmra.mxu2 %v7645_v41  ;;  %v2737_v55 = vld [vmem:[%s9356_s4 + $0xb48] sm:$0xff]  ;;  %v2510_v37 = vld [vmem:[%s9356_s4 + $0x430] sm:$0xff] }
 0x37a   :  { %3015 = vmatpush.msra.mxu1 %v2741_v49  ;;  %3071 = vmatpush.msrb.mxu2 %v2502_v53  ;;  %v2733_v32 = vld [vmem:[%s9356_s4 + $0xb28] sm:$0xff]  ;;  %v2630_v38 = vld [vmem:[%s9356_s4 + $0x7f0] sm:$0xff] }
 0x37b   :  { %3094 = vmatpush.msrb.mxu3 %v2554_v54  ;;  %3059 = vmatpush.msra.mxu0 %v2406_v56  ;;  %v2729_v52 = vld [vmem:[%s9356_s4 + $0xb08] sm:$0xff]  ;;  %v2682_v9 = vld [vmem:[%s9356_s4 + $0x990] sm:$0xff]  ;;  %v2503_v56 = vld [vmem:[%s9356_s4 + $0x3f8] sm:$0xff] }
 0x37c   :  { %3016 = vmatpush.msra.mxu1 %v2737_v55  ;;  %3072 = vmatpush.msrb.mxu2 %v2498_v61  ;;  %v2725_v22 = vld [vmem:[%s9356_s4 + $0xae8] sm:$0xff]  ;;  %v2454_v44 = vld [vmem:[%s9356_s4 + $0x270] sm:$0xff] }
 0x37d   :  { %3095 = vmatpush.msrb.mxu3 %v2550_v39  ;;  %3060 = vmatpush.msra.mxu0 %v2402_v63  ;;  %v2721_v11 = vld [vmem:[%s9356_s4 + $0xac8] sm:$0xff]  ;;  %v2506_v28 = vld [vmem:[%s9356_s4 + $0x410] sm:$0xff] }
 0x37e   :  { %3017 = vmatpush.msra.mxu1 %v2733_v32  ;;  %3073 = vmatpush.msrb.mxu2 %v2494_v25  ;;  %v2717_v17 = vld [vmem:[%s9356_s4 + $0xaa8] sm:$0xff]  ;;  %v2626_v45 = vld [vmem:[%s9356_s4 + $0x7d0] sm:$0xff]  ;;  %v2499_v25 = vld [vmem:[%s9356_s4 + $0x3d8] sm:$0xff] }
 0x37f   :  { %3096 = vmatpush.msrb.mxu3 %v2546_v0  ;;  %3061 = vmatpush.msra.mxu0 %v2398_v43  ;;  %v2713_v60 = vld [vmem:[%s9356_s4 + $0xa88] sm:$0xff]  ;;  %v2678_v46 = vld [vmem:[%s9356_s4 + $0x970] sm:$0xff] }
 0x380   :  { %3018 = vmatpush.msra.mxu1 %v2729_v52  ;;  %3074 = vmatpush.msrb.mxu2 %v2490_v1  ;;  %v2709_v4 = vld [vmem:[%s9356_s4 + $0xa68] sm:$0xff]  ;;  %v2450_v47 = vld [vmem:[%s9356_s4 + $0x250] sm:$0xff]  ;;  %v2495_v1 = vld [vmem:[%s9356_s4 + $0x3b8] sm:$0xff] }
 0x381   :  { %3097 = vmatpush.msrb.mxu3 %v2542_v5  ;;  %3062 = vmatpush.msra.mxu0 %v2394_v6  ;;  %v2705_v51 = vld [vmem:[%s9356_s4 + $0xa48] sm:$0xff]  ;;  %v2766_v48 = vld [vmem:[%s9356_s4 + $0xc30] sm:$0xff] }
 0x382   :  { %3019 = vmatpush.msra.mxu1 %v2725_v22  ;;  %3075 = vmatpush.msrb.mxu2 %v2486_v59  ;;  %v2701_v58 = vld [vmem:[%s9356_s4 + $0xa28] sm:$0xff]  ;;  %v2622_v30 = vld [vmem:[%s9356_s4 + $0x7b0] sm:$0xff]  ;;  %v2491_v59 = vld [vmem:[%s9356_s4 + $0x398] sm:$0xff] }
 0x383   :  { %3098 = vmatpush.msrb.mxu3 %v2538_v10  ;;  %3063 = vmatpush.msra.mxu0 %v2390_v14  ;;  %v2697_v13 = vld [vmem:[%s9356_s4 + $0xa08] sm:$0xff]  ;;  %v2674_v49 = vld [vmem:[%s9356_s4 + $0x950] sm:$0xff] }
 0x384   :  { %3020 = vmatpush.msra.mxu1 %v2721_v11  ;;  %3076 = vmatpush.msrb.mxu2 %v2482_v7  ;;  %v2446_v50 = vld [vmem:[%s9356_s4 + $0x230] sm:$0xff]  ;;  %v2487_v7 = vld [vmem:[%s9356_s4 + $0x378] sm:$0xff] }
 0x385   :  { %3099 = vmatpush.msrb.mxu3 %v2534_v16  ;;  %3064 = vmatpush.msra.mxu0 %v2386_v8  ;;  %v2762_v53 = vld [vmem:[%s9356_s4 + $0xc10] sm:$0xff] }
 0x386   :  { %3021 = vmatpush.msra.mxu1 %v2717_v17  ;;  %3077 = vmatpush.msrb.mxu2 %v2478_v19  ;;  %v2618_v54 = vld [vmem:[%s9356_s4 + $0x790] sm:$0xff]  ;;  %v2483_v19 = vld [vmem:[%s9356_s4 + $0x358] sm:$0xff] }
 0x387   :  { %3100 = vmatpush.msrb.mxu3 %v2530_v20  ;;  %3065 = vmatpush.msra.mxu0 %v2382_v21  ;;  %v2670_v55 = vld [vmem:[%s9356_s4 + $0x930] sm:$0xff] }
 0x388   :  { %3022 = vmatpush.msra.mxu1 %v2713_v60  ;;  %3078 = vmatpush.msrb.mxu2 %v2474_v35  ;;  %v2442_v61 = vld [vmem:[%s9356_s4 + $0x210] sm:$0xff]  ;;  %v2479_v35 = vld [vmem:[%s9356_s4 + $0x338] sm:$0xff] }
 0x389   :  { %3101 = vmatpush.msrb.mxu3 %v2526_v23  ;;  %3066 = vmatpush.msra.mxu0 %v2378_v24  ;;  %v2614_v39 = vld [vmem:[%s9356_s4 + $0x770] sm:$0xff] }
 0x38a   :  { %3023 = vmatpush.msra.mxu1 %v2709_v4  ;;  %3079 = vmatpush.msrb.mxu2 %v2470_v3  ;;  %v2666_v32 = vld [vmem:[%s9356_s4 + $0x910] sm:$0xff]  ;;  %v2475_v3 = vld [vmem:[%s9356_s4 + $0x318] sm:$0xff] }
 0x38b   :  { %3067 = vmatmul.f32.vlgmr.msra.gmra.mxu0 %v7595_v18  ;;  %3102 = vmatpush.msrb.mxu3 %v2522_v26  ;;  %v2758_v63 = vld [vmem:[%s9356_s4 + $0xbf0] sm:$0xff] }
 0x38c   :  { %3131 = vmatpush.msrb.mxu0 %v2694_v27  ;;  %3024 = vmatpush.msra.mxu1 %v2705_v51  ;;  %v2610_v0 = vld [vmem:[%s9356_s4 + $0x750] sm:$0xff] }
 0x38d   :  { %3080 = vmatpush.msrb.mxu2 %v2466_v12  ;;  %3103 = vmatpush.msrb.mxu3 %v2518_v29  ;;  %v2662_v52 = vld [vmem:[%s9356_s4 + $0x8f0] sm:$0xff]  ;;  %v2471_v12 = vld [vmem:[%s9356_s4 + $0x2f8] sm:$0xff] }
 0x38e   :  { %3132 = vmatpush.msrb.mxu0 %v2690_v15  ;;  %3025 = vmatpush.msra.mxu1 %v2701_v58  ;;  %v2754_v43 = vld [vmem:[%s9356_s4 + $0xbd0] sm:$0xff] }
 0x38f   :  { %3081 = vmatpush.msrb.mxu2 %v2462_v31  ;;  %3104 = vmatpush.msrb.mxu3 %v2514_v33  ;;  %v2606_v5 = vld [vmem:[%s9356_s4 + $0x730] sm:$0xff]  ;;  %v2467_v31 = vld [vmem:[%s9356_s4 + $0x2d8] sm:$0xff] }
 0x390   :  { %3133 = vmatpush.msrb.mxu0 %v2686_v34  ;;  %3026 = vmatpush.msra.mxu1 %v2697_v13  ;;  %v2658_v22 = vld [vmem:[%s9356_s4 + $0x8d0] sm:$0xff]  ;;  %v2567_v33 = vld [vmem:[%s9356_s4 + $0x5f8] sm:$0xff] }
 0x391   :  { %3082 = vmatpush.msrb.mxu2 %v2458_v36  ;;  %3027 = vmatmul.f32.vlgmr.msra.gmra.mxu1 %v7619_v2  ;;  %v2750_v6 = vld [vmem:[%s9356_s4 + $0xbb0] sm:$0xff]  ;;  %v2463_v36 = vld [vmem:[%s9356_s4 + $0x2b8] sm:$0xff] }
 0x392   :  { %3105 = vmatpush.msrb.mxu3 %v2510_v37  ;;  %3111 = vmatpush.msrb.mxu1 %v2630_v38  ;;  %v2602_v10 = vld [vmem:[%s9356_s4 + $0x710] sm:$0xff]  ;;  %v2563_v37 = vld [vmem:[%s9356_s4 + $0x5d8] sm:$0xff] }
 0x393   :  { %3134 = vmatpush.msrb.mxu0 %v2682_v9  ;;  %3083 = vmatpush.msrb.mxu2 %v2454_v44  ;;  %v2654_v11 = vld [vmem:[%s9356_s4 + $0x8b0] sm:$0xff]  ;;  %v2459_v44 = vld [vmem:[%s9356_s4 + $0x298] sm:$0xff] }
 0x394   :  { %3106 = vmatpush.msrb.mxu3 %v2506_v28  ;;  %3112 = vmatpush.msrb.mxu1 %v2626_v45  ;;  %v2746_v14 = vld [vmem:[%s9356_s4 + $0xb90] sm:$0xff]  ;;  %v2559_v28 = vld [vmem:[%s9356_s4 + $0x5b8] sm:$0xff] }
 0x395   :  { %3135 = vmatpush.msrb.mxu0 %v2678_v46  ;;  %3084 = vmatpush.msrb.mxu2 %v2450_v47  ;;  %v2598_v16 = vld [vmem:[%s9356_s4 + $0x6f0] sm:$0xff]  ;;  %v2455_v47 = vld [vmem:[%s9356_s4 + $0x278] sm:$0xff] }
 0x396   :  { %3107 = vmatmul.f32.vlgmr.msrb.gmra.mxu3 %v7604_v57  ;;  %3113 = vmatpush.msrb.mxu1 %v2622_v30  ;;  %v2650_v17 = vld [vmem:[%s9356_s4 + $0x890] sm:$0xff]  ;;  %v2439_v30 = vld [vmem:[%s9356_s4 + $0x1f8] sm:$0xff] }
 0x397   :  { %3185 = vmatpush.msra.mxu3 %v2766_v48  ;;  %3136 = vmatpush.msrb.mxu0 %v2674_v49  ;;  %v2742_v8 = vld [vmem:[%s9356_s4 + $0xb70] sm:$0xff]  ;;  %v2555_v48 = vld [vmem:[%s9356_s4 + $0x598] sm:$0xff] }
 0x398   :  { %3085 = vmatpush.msrb.mxu2 %v2446_v50  ;;  %3114 = vmatpush.msrb.mxu1 %v2618_v54  ;;  %v2594_v20 = vld [vmem:[%s9356_s4 + $0x6d0] sm:$0xff]  ;;  %v2451_v50 = vld [vmem:[%s9356_s4 + $0x258] sm:$0xff] }
 0x399   :  { %3186 = vmatpush.msra.mxu3 %v2762_v53  ;;  %3137 = vmatpush.msrb.mxu0 %v2670_v55  ;;  %v2646_v60 = vld [vmem:[%s9356_s4 + $0x870] sm:$0xff]  ;;  %v2551_v53 = vld [vmem:[%s9356_s4 + $0x578] sm:$0xff] }
 0x39a   :  { %3086 = vmatpush.msrb.mxu2 %v2442_v61  ;;  %3115 = vmatpush.msrb.mxu1 %v2614_v39  ;;  %v2738_v21 = vld [vmem:[%s9356_s4 + $0xb50] sm:$0xff]  ;;  %v2435_v54 = vld [vmem:[%s9356_s4 + $0x1d8] sm:$0xff] }
 0x39b   :  { %3211 = vmatpush.msrb.mxu3 %v2503_v56  ;;  %3087 = vmatmul.f32.vlgmr.msrb.gmra.mxu2 %v7580_v62  ;;  %v2590_v23 = vld [vmem:[%s9356_s4 + $0x6b0] sm:$0xff]  ;;  %v2447_v56 = vld [vmem:[%s9356_s4 + $0x238] sm:$0xff] }
 0x39c   :  { %3138 = vmatpush.msrb.mxu0 %v2666_v32  ;;  %3151 = vmatpush.msra.mxu2 %v2758_v63  ;;  %v2642_v4 = vld [vmem:[%s9356_s4 + $0x850] sm:$0xff]  ;;  %v2547_v61 = vld [vmem:[%s9356_s4 + $0x558] sm:$0xff] }
 0x39d   :  { %3212 = vmatpush.msrb.mxu3 %v2499_v25  ;;  %3116 = vmatpush.msrb.mxu1 %v2610_v0  ;;  %v2734_v24 = vld [vmem:[%s9356_s4 + $0xb30] sm:$0xff]  ;;  %v2431_v39 = vld [vmem:[%s9356_s4 + $0x1b8] sm:$0xff] }
 0x39e   :  { %3139 = vmatpush.msrb.mxu0 %v2662_v52  ;;  %3152 = vmatpush.msra.mxu2 %v2754_v43  ;;  %v2586_v26 = vld [vmem:[%s9356_s4 + $0x690] sm:$0xff]  ;;  %v2443_v63 = vld [vmem:[%s9356_s4 + $0x218] sm:$0xff] }
 0x39f   :  { %3213 = vmatpush.msrb.mxu3 %v2495_v1  ;;  %3117 = vmatpush.msrb.mxu1 %v2606_v5  ;;  %v2638_v27 = vld [vmem:[%s9356_s4 + $0x830] sm:$0xff]  ;;  %v2543_v25 = vld [vmem:[%s9356_s4 + $0x538] sm:$0xff] }
 0x3a0   :  { %4496 = vmatmul.msk.f32.vlgmr.msra.gmra.mxu3 %vm757_vm0, %v7647_v42  ;;  %3140 = vmatpush.msrb.mxu0 %v2658_v22  ;;  %v2730_v51 = vld [vmem:[%s9356_s4 + $0xb10] sm:$0xff]  ;;  %v2427_v0 = vld [vmem:[%s9356_s4 + $0x198] sm:$0xff] }
 0x3a1   :  { %3153 = vmatpush.msra.mxu2 %v2750_v6  ;;  %3214 = vmatpush.msrb.mxu3 %v2491_v59  ;;  %v2582_v29 = vld [vmem:[%s9356_s4 + $0x670] sm:$0xff]  ;;  %v2759_v52 = vld [vmem:[%s9356_s4 + $0xbf8] sm:$0xff] }
 0x3a2   :  { %3118 = vmatpush.msrb.mxu1 %v2602_v10  ;;  %3141 = vmatpush.msrb.mxu0 %v2654_v11  ;;  %v2634_v15 = vld [vmem:[%s9356_s4 + $0x810] sm:$0xff]  ;;  %v2423_v1 = vld [vmem:[%s9356_s4 + $0x178] sm:$0xff] }
 0x3a3   :  { %3154 = vmatpush.msra.mxu2 %v2746_v14  ;;  %3215 = vmatpush.msrb.mxu3 %v2487_v7  ;;  %v2726_v58 = vld [vmem:[%s9356_s4 + $0xaf0] sm:$0xff]  ;;  %v2539_v5 = vld [vmem:[%s9356_s4 + $0x518] sm:$0xff] }
 0x3a4   :  { %3119 = vmatpush.msrb.mxu1 %v2598_v16  ;;  %3142 = vmatpush.msrb.mxu0 %v2650_v17  ;;  %v2578_v34 = vld [vmem:[%s9356_s4 + $0x650] sm:$0xff]  ;;  %v2631_v22 = vld [vmem:[%s9356_s4 + $0x7f8] sm:$0xff] }
 0x3a5   :  { %3155 = vmatpush.msra.mxu2 %v2742_v8  ;;  %3216 = vmatpush.msrb.mxu3 %v2483_v19  ;;  %v2722_v13 = vld [vmem:[%s9356_s4 + $0xad0] sm:$0xff]  ;;  %v2755_v6 = vld [vmem:[%s9356_s4 + $0xbd8] sm:$0xff] }
 0x3a6   :  { %3120 = vmatpush.msrb.mxu1 %v2594_v20  ;;  %3143 = vmatpush.msrb.mxu0 %v2646_v60  ;;  %v2574_v38 = vld [vmem:[%s9356_s4 + $0x630] sm:$0xff]  ;;  %v2419_v59 = vld [vmem:[%s9356_s4 + $0x158] sm:$0xff] }
 0x3a7   :  { %3156 = vmatpush.msra.mxu2 %v2738_v21  ;;  %3217 = vmatpush.msrb.mxu3 %v2479_v35  ;;  %v2718_v9 = vld [vmem:[%s9356_s4 + $0xab0] sm:$0xff]  ;;  %v2627_v10 = vld [vmem:[%s9356_s4 + $0x7d8] sm:$0xff] }
 0x3a8   :  { %3121 = vmatpush.msrb.mxu1 %v2590_v23  ;;  %3144 = vmatpush.msrb.mxu0 %v2642_v4  ;;  %v2570_v45 = vld [vmem:[%s9356_s4 + $0x610] sm:$0xff]  ;;  %v2751_v11 = vld [vmem:[%s9356_s4 + $0xbb8] sm:$0xff] }
 0x3a9   :  { %3157 = vmatpush.msra.mxu2 %v2734_v24  ;;  %3218 = vmatpush.msrb.mxu3 %v2475_v3  ;;  %v2714_v46 = vld [vmem:[%s9356_s4 + $0xa90] sm:$0xff]  ;;  %v2415_v14 = vld [vmem:[%s9356_s4 + $0x138] sm:$0xff] }
 0x3aa   :  { %3122 = vmatpush.msrb.mxu1 %v2586_v26  ;;  %3145 = vmatpush.msrb.mxu0 %v2638_v27  ;;  %v2710_v49 = vld [vmem:[%s9356_s4 + $0xa70] sm:$0xff]  ;;  %v2531_v7 = vld [vmem:[%s9356_s4 + $0x4d8] sm:$0xff] }
 0x3ab   :  { %3158 = vmatpush.msra.mxu2 %v2730_v51  ;;  %3219 = vmatpush.msrb.mxu3 %v2471_v12  ;;  %v2706_v55 = vld [vmem:[%s9356_s4 + $0xa50] sm:$0xff]  ;;  %v2623_v16 = vld [vmem:[%s9356_s4 + $0x7b8] sm:$0xff] }
 0x3ac   :  { %3123 = vmatpush.msrb.mxu1 %v2582_v29  ;;  %3146 = vmatpush.msrb.mxu0 %v2634_v15  ;;  %v2702_v32 = vld [vmem:[%s9356_s4 + $0xa30] sm:$0xff]  ;;  %v2747_v17 = vld [vmem:[%s9356_s4 + $0xb98] sm:$0xff] }
 0x3ad   :  { %3159 = vmatpush.msra.mxu2 %v2726_v58  ;;  %3220 = vmatpush.msrb.mxu3 %v2467_v31  ;;  %v2698_v43 = vld [vmem:[%s9356_s4 + $0xa10] sm:$0xff]  ;;  %v2411_v8 = vld [vmem:[%s9356_s4 + $0x118] sm:$0xff] }
 0x3ae   :  { %3147 = vmatmul.f32.vlgmr.msrb.gmra.mxu0 %v7645_v41  ;;  %3124 = vmatpush.msrb.mxu1 %v2578_v34  ;;  %v2527_v19 = vld [vmem:[%s9356_s4 + $0x4b8] sm:$0xff] }
 0x3af   :  { %3231 = vmatpush.msra.mxu0 %v2567_v33  ;;  %3160 = vmatpush.msra.mxu2 %v2722_v13  ;;  %v2619_v20 = vld [vmem:[%s9356_s4 + $0x798] sm:$0xff] }
 0x3b0   :  { %3221 = vmatpush.msrb.mxu3 %v2463_v36  ;;  %3125 = vmatpush.msrb.mxu1 %v2574_v38  ;;  %v2743_v60 = vld [vmem:[%s9356_s4 + $0xb78] sm:$0xff] }
 0x3b1   :  { %3232 = vmatpush.msra.mxu0 %v2563_v37  ;;  %3161 = vmatpush.msra.mxu2 %v2718_v9  ;;  %v2407_v21 = vld [vmem:[%s9356_s4 + $0xf8] sm:$0xff] }
 0x3b2   :  { %3222 = vmatpush.msrb.mxu3 %v2459_v44  ;;  %3126 = vmatpush.msrb.mxu1 %v2570_v45  ;;  %v2523_v35 = vld [vmem:[%s9356_s4 + $0x498] sm:$0xff] }
 0x3b3   :  { %3233 = vmatpush.msra.mxu0 %v2559_v28  ;;  %3162 = vmatpush.msra.mxu2 %v2714_v46  ;;  %v2615_v23 = vld [vmem:[%s9356_s4 + $0x778] sm:$0xff] }
 0x3b4   :  { %3223 = vmatpush.msrb.mxu3 %v2455_v47  ;;  %3127 = vmatmul.f32.vlgmr.msrb.gmra.mxu1 %v7640_v40  ;;  %v2739_v4 = vld [vmem:[%s9356_s4 + $0xb58] sm:$0xff] }
 0x3b5   :  { %3234 = vmatpush.msra.mxu0 %v2555_v48  ;;  %3191 = vmatpush.msra.mxu1 %v2439_v30  ;;  %v2403_v24 = vld [vmem:[%s9356_s4 + $0xd8] sm:$0xff] }
 0x3b6   :  { %3163 = vmatpush.msra.mxu2 %v2710_v49  ;;  %3224 = vmatpush.msrb.mxu3 %v2451_v50  ;;  %v2519_v3 = vld [vmem:[%s9356_s4 + $0x478] sm:$0xff] }
 0x3b7   :  { %3235 = vmatpush.msra.mxu0 %v2551_v53  ;;  %3192 = vmatpush.msra.mxu1 %v2435_v54  ;;  %v2611_v26 = vld [vmem:[%s9356_s4 + $0x758] sm:$0xff] }
 0x3b8   :  { %3164 = vmatpush.msra.mxu2 %v2706_v55  ;;  %3225 = vmatpush.msrb.mxu3 %v2447_v56  ;;  %v2735_v27 = vld [vmem:[%s9356_s4 + $0xb38] sm:$0xff] }
 0x3b9   :  { %3236 = vmatpush.msra.mxu0 %v2547_v61  ;;  %3193 = vmatpush.msra.mxu1 %v2431_v39  ;;  %v2399_v51 = vld [vmem:[%s9356_s4 + $0xb8] sm:$0xff] }
 0x3ba   :  { %3165 = vmatpush.msra.mxu2 %v2702_v32  ;;  %3226 = vmatpush.msrb.mxu3 %v2443_v63  ;;  %v2515_v12 = vld [vmem:[%s9356_s4 + $0x458] sm:$0xff] }
 0x3bb   :  { %3237 = vmatpush.msra.mxu0 %v2543_v25  ;;  %3194 = vmatpush.msra.mxu1 %v2427_v0  ;;  %v2607_v29 = vld [vmem:[%s9356_s4 + $0x738] sm:$0xff] }
 0x3bc   :  { %3227 = vmatmul.f32.vlgmr.msrb.gmra.mxu3 %v7580_v62  ;;  %3166 = vmatpush.msra.mxu2 %v2698_v43  ;;  %v2535_v62 = vld [vmem:[%s9356_s4 + $0x4f8] sm:$0xff] }
 0x3bd   :  { %3291 = vmatpush.msra.mxu3 %v2759_v52  ;;  %3167 = vmatmul.f32.vlgmr.msra.gmra.mxu2 %v7619_v2  ;;  %v2731_v15 = vld [vmem:[%s9356_s4 + $0xb18] sm:$0xff] }
 0x3be   :  { %3195 = vmatpush.msra.mxu1 %v2423_v1  ;;  %3238 = vmatpush.msra.mxu0 %v2539_v5  ;;  %v2395_v58 = vld [vmem:[%s9356_s4 + $0x98] sm:$0xff] }
 0x3bf   :  { %3251 = vmatpush.msrb.mxu2 %v2631_v22  ;;  %3292 = vmatpush.msra.mxu3 %v2755_v6  ;;  %v2511_v31 = vld [vmem:[%s9356_s4 + $0x438] sm:$0xff] }
 0x3c0   :  { %3196 = vmatpush.msra.mxu1 %v2419_v59  ;;  %3239 = vmatpush.msra.mxu0 %v2535_v62  ;;  %v2603_v33 = vld [vmem:[%s9356_s4 + $0x718] sm:$0xff] }
 0x3c1   :  { %3252 = vmatpush.msrb.mxu2 %v2627_v10  ;;  %3293 = vmatpush.msra.mxu3 %v2751_v11  ;;  %v2727_v34 = vld [vmem:[%s9356_s4 + $0xaf8] sm:$0xff] }
 0x3c2   :  { %3197 = vmatpush.msra.mxu1 %v2415_v14  ;;  %3240 = vmatpush.msra.mxu0 %v2531_v7  ;;  %v2391_v13 = vld [vmem:[%s9356_s4 + $0x78] sm:$0xff] }
 0x3c3   :  { %3253 = vmatpush.msrb.mxu2 %v2623_v16  ;;  %3294 = vmatpush.msra.mxu3 %v2747_v17  ;;  %v2507_v36 = vld [vmem:[%s9356_s4 + $0x418] sm:$0xff] }
 0x3c4   :  { %3198 = vmatpush.msra.mxu1 %v2411_v8  ;;  %3241 = vmatpush.msra.mxu0 %v2527_v19  ;;  %v2599_v37 = vld [vmem:[%s9356_s4 + $0x6f8] sm:$0xff]  ;;  %v3414_v8 = vld [vmem:[%s9357_s5 + $0x70] sm:$0xff] }
 0x3c5   :  { %3254 = vmatpush.msrb.mxu2 %v2619_v20  ;;  %3295 = vmatpush.msra.mxu3 %v2743_v60  ;;  %v2723_v38 = vld [vmem:[%s9356_s4 + $0xad8] sm:$0xff]  ;;  %v2828_v61 = vpop.f32.mrf.mxu1 }
 0x3c6   :  { %3199 = vmatpush.msra.mxu1 %v2407_v21  ;;  %3242 = vmatpush.msra.mxu0 %v2523_v35  ;;  %v2387_v9 = vld [vmem:[%s9356_s4 + $0x58] sm:$0xff]  ;;  %v3413_v21 = vld [vmem:[%s9357_s5 + $0x68] sm:$0xff] }
 0x3c7   :  { %3255 = vmatpush.msrb.mxu2 %v2615_v23  ;;  %3296 = vmatpush.msra.mxu3 %v2739_v4  ;;  %v2595_v44 = vld [vmem:[%s9356_s4 + $0x6d8] sm:$0xff] }
 0x3c8   :  { %3200 = vmatpush.msra.mxu1 %v2403_v24  ;;  %3243 = vmatpush.msra.mxu0 %v2519_v3  ;;  %v2719_v28 = vld [vmem:[%s9356_s4 + $0xab8] sm:$0xff]  ;;  %v3412_v24 = vld [vmem:[%s9357_s5 + $0x60] sm:$0xff] }
 0x3c9   :  { %3256 = vmatpush.msrb.mxu2 %v2611_v26  ;;  %3297 = vmatpush.msra.mxu3 %v2735_v27  ;;  %v2767_v45 = vld [vmem:[%s9356_s4 + $0xc38] sm:$0xff] }
 0x3ca   :  { %3201 = vmatpush.msra.mxu1 %v2399_v51  ;;  %3244 = vmatpush.msra.mxu0 %v2515_v12  ;;  %v2383_v46 = vld [vmem:[%s9356_s4 + $0x38] sm:$0xff]  ;;  %v2788_v48 = vpop.f32.mrf.mxu3 }
 0x3cb   :  { %3257 = vmatpush.msrb.mxu2 %v2607_v29  ;;  %3298 = vmatpush.msra.mxu3 %v2731_v15  ;;  %v2591_v47 = vld [vmem:[%s9356_s4 + $0x6b8] sm:$0xff]  ;;  %v3410_v15 = vld [vmem:[%s9357_s5 + $0x50] sm:$0xff] }
 0x3cc   :  { %3202 = vmatpush.msra.mxu1 %v2395_v58  ;;  %3245 = vmatpush.msra.mxu0 %v2511_v31  ;;  %v2715_v30 = vld [vmem:[%s9356_s4 + $0xa98] sm:$0xff] }
 0x3cd   :  { %3258 = vmatpush.msrb.mxu2 %v2603_v33  ;;  %3299 = vmatpush.msra.mxu3 %v2727_v34  ;;  %v2763_v49 = vld [vmem:[%s9356_s4 + $0xc18] sm:$0xff]  ;;  %v3430_v33 = vld [vmem:[%s9357_s5 + $0xf0] sm:$0xff]  ;;  %v3429_v34 = vld [vmem:[%s9357_s5 + $0xe8] sm:$0xff] }
 0x3ce   :  { %3203 = vmatpush.msra.mxu1 %v2391_v13  ;;  %3246 = vmatpush.msra.mxu0 %v2507_v36  ;;  %v2379_v50 = vld [vmem:[%s9356_s4 + $0x18] sm:$0xff]  ;;  %v2908_v16 = vpop.f32.mrf.mxu1  ;;  %v3409_v13 = vld [vmem:[%s9357_s5 + $0x48] sm:$0xff] }
 0x3cf   :  { %3259 = vmatpush.msrb.mxu2 %v2599_v37  ;;  %3300 = vmatpush.msra.mxu3 %v2723_v38  ;;  %v2587_v53 = vld [vmem:[%s9356_s4 + $0x698] sm:$0xff]  ;;  %v3428_v38 = vld [vmem:[%s9357_s5 + $0xe0] sm:$0xff] }
 0x3d0   :  { %3247 = vmatmul.f32.vlgmr.msra.gmra.mxu0 %v7604_v57  ;;  %3204 = vmatpush.msra.mxu1 %v2387_v9  ;;  %v2808_v57 = vpop.f32.mrf.mxu0  ;;  %v2711_v54 = vld [vmem:[%s9356_s4 + $0xa78] sm:$0xff]  ;;  %v3408_v9 = vld [vmem:[%s9357_s5 + $0x40] sm:$0xff] }
 0x3d1   :  { %3260 = vmatpush.msrb.mxu2 %v2595_v44  ;;  %3301 = vmatpush.msra.mxu3 %v2719_v28  ;;  %v2809_v55 = vadd.f32 %v2808_v57, %v2788_v48  ;;  %v2695_v56 = vld [vmem:[%s9356_s4 + $0x9f8] sm:$0xff]  ;;  %v3406_v48 = vld [vmem:[%s9357_s5 + $0x30] sm:$0xff]  ;;  %v3405_v57 = vld [vmem:[%s9357_s5 + $0x28] sm:$0xff] }
 0x3d2   :  { %3325 = vmatpush.msrb.mxu0 %v2767_v45  ;;  %3205 = vmatpush.msra.mxu1 %v2383_v46  ;;  %v2583_v39 = vld [vmem:[%s9356_s4 + $0x678] sm:$0xff] }
 0x3d3   :  { %3261 = vmatpush.msrb.mxu2 %v2591_v47  ;;  %3302 = vmatpush.msra.mxu3 %v2715_v30  ;;  %v2707_v32 = vld [vmem:[%s9356_s4 + $0xa58] sm:$0xff]  ;;  %v2829_v52 = vadd.f32 %v2828_v61, %v2809_v55  ;;  %v2848_v1 = vpop.f32.mrf.mxu2  ;;  %v2868_v6 = vpop.f32.mrf.mxu3 }
 0x3d4   :  { %3326 = vmatpush.msrb.mxu0 %v2763_v49  ;;  %3206 = vmatpush.msra.mxu1 %v2379_v50  ;;  %v2691_v63 = vld [vmem:[%s9356_s4 + $0x9d8] sm:$0xff] }
 0x3d5   :  { %3262 = vmatpush.msrb.mxu2 %v2587_v53  ;;  %3303 = vmatpush.msra.mxu3 %v2711_v54  ;;  %v2579_v25 = vld [vmem:[%s9356_s4 + $0x658] sm:$0xff]  ;;  %v2849_v22 = vadd.f32 %v2848_v1, %v2829_v52  ;;  %v3404_v54 = vld [vmem:[%s9357_s5 + $0x20] sm:$0xff] }
 0x3d6   :  { %3207 = vmatmul.f32.vlgmr.msra.gmra.mxu1 %v7595_v18  ;;  %v2703_v0 = vld [vmem:[%s9356_s4 + $0xa38] sm:$0xff]  ;;  %v3400_v52 = vld [vmem:[%s9357_s5] sm:$0xff] }
 0x3d7   :  { %3271 = vmatpush.msrb.mxu1 %v2695_v56  ;;  %3263 = vmatpush.msrb.mxu2 %v2583_v39  ;;  %v2687_v18 = vld [vmem:[%s9356_s4 + $0x9b8] sm:$0xff]  ;;  %v2869_v62 = vadd.f32 %v2868_v6, %v2849_v22  ;;  %v3421_v22 = vld [vmem:[%s9357_s5 + $0xa8] sm:$0xff] }
 0x3d8   :  { %3304 = vmatpush.msra.mxu3 %v2707_v32  ;;  %4497 = vmatmul.msk.f32.vlgmr.msrb.gmra.mxu0 %vm757_vm0, %v7647_v42  ;;  %v2575_v43 = vld [vmem:[%s9356_s4 + $0x638] sm:$0xff]  ;;  %v2888_v10 = vpop.f32.mrf.mxu0  ;;  %v3402_v32 = vld [vmem:[%s9357_s5 + $0x10] sm:$0xff] }
 0x3d9   :  { %3272 = vmatpush.msrb.mxu1 %v2691_v63  ;;  %3264 = vmatpush.msrb.mxu2 %v2579_v25  ;;  %v2699_v5 = vld [vmem:[%s9356_s4 + $0xa18] sm:$0xff]  ;;  %v2889_v7 = vadd.f32 %v2888_v10, %v2869_v62  ;;  %v3426_v63 = vld [vmem:[%s9357_s5 + $0xd0] sm:$0xff] }
 0x3da   :  { %3305 = vmatpush.msra.mxu3 %v2703_v0  ;;  %v2683_v42 = vld [vmem:[%s9356_s4 + $0x998] sm:$0xff]  ;;  %v3401_v0 = vld [vmem:[%s9357_s5 + $0x8] sm:$0xff] }
 0x3db   :  { %3273 = vmatpush.msrb.mxu1 %v2687_v18  ;;  %3265 = vmatpush.msrb.mxu2 %v2575_v43  ;;  %v2571_v59 = vld [vmem:[%s9356_s4 + $0x618] sm:$0xff]  ;;  %v8438_v19 = vadd.f32 %v2908_v16, %v2889_v7  ;;  %v3424_v43 = vld [vmem:[%s9357_s5 + $0xc0] sm:$0xff]  ;;  %v3417_v16 = vld [vmem:[%s9357_s5 + $0x88] sm:$0xff] }
 0x3dc   :  { %3306 = vmatpush.msra.mxu3 %v2699_v5  ;;  %v2679_v11 = vld [vmem:[%s9356_s4 + $0x978] sm:$0xff]  ;;  %v3422_v5 = vld [vmem:[%s9357_s5 + $0xb0] sm:$0xff] }
 0x3dd   :  { %3274 = vmatpush.msrb.mxu1 %v2683_v42  ;;  %3307 = vmatmul.f32.vlgmr.msra.gmra.mxu3 %v7619_v2  ;;  %v3415_v14 = vld [vmem:[%s9357_s5 + $0x78] sm:$0xff]  ;;  %v3360_v60 = vmul.f32 %v8438_v19, %v8438_v19  ;;  %v3420_v42 = vld [vmem:[%s9357_s5 + $0xa0] sm:$0xff]  ;;  %v2928_v6 = vpop.f32.mrf.mxu2 }
 0x3de   :  { %3266 = vmatpush.msrb.mxu2 %v2571_v59  ;;  %v2675_v17 = vld [vmem:[%s9356_s4 + $0x958] sm:$0xff] }
 0x3df   :  { %3267 = vmatmul.f32.vlgmr.msrb.gmra.mxu2 %v7640_v40  ;;  %3275 = vmatpush.msrb.mxu1 %v2679_v11  ;;  %v3431_v2 = vld [vmem:[%s9357_s5 + $0xf8] sm:$0xff]  ;;  %v3331_v40 = vsel %vm1740_vm1, %v8438_v19, 0.0  ;;  %v3364_v4 = vsel %vm1740_vm1, %v3360_v60, 0.0 }
 0x3e0   :  { %3453 = vmatpush.msra.mxu2 %v3415_v14  ;;  %v2671_v20 = vld [vmem:[%s9356_s4 + $0x938] sm:$0xff]  ;;  %3473 = vmatpush.msra.mxu0 %v3431_v2  ;;  %v3332_v23 = vrot.slane %v3331_v40, 4  ;;  %v3365_v3 = vrot.slane %v3364_v4, 4  ;;  %v3418_v14 = vld [vmem:[%s9357_s5 + $0x90] sm:$0xff] }
 0x3e1   :  { %3276 = vmatpush.msrb.mxu1 %v2675_v17  ;;  %v2667_v35 = vld [vmem:[%s9356_s4 + $0x918] sm:$0xff]  ;;  %v3416_v17 = vld [vmem:[%s9357_s5 + $0x80] sm:$0xff] }
 0x3e2   :  { %3454 = vmatpush.msra.mxu2 %v3414_v8  ;;  %v2663_v26 = vld [vmem:[%s9356_s4 + $0x8f8] sm:$0xff]  ;;  %v3333_v51 = vadd.f32 %v3332_v23, %v3331_v40  ;;  %v3366_v12 = vadd.f32 %v3365_v3, %v3364_v4  ;;  %3474 = vmatpush.msra.mxu0 %v3430_v33  ;;  %v2988_v8 = vpop.f32.mrf.mxu0 }
 0x3e3   :  { %3277 = vmatpush.msrb.mxu1 %v2671_v20  ;;  %v3411_v27 = vld [vmem:[%s9357_s5 + $0x58] sm:$0xff] }
 0x3e4   :  { %3455 = vmatpush.msra.mxu2 %v3413_v21  ;;  %v2659_v29 = vld [vmem:[%s9356_s4 + $0x8d8] sm:$0xff]  ;;  %v3367_v58 = vrot.slane %v3366_v12, 2  ;;  %v3334_v36 = vrot.slane %v3333_v51, 2  ;;  %3475 = vmatpush.msra.mxu0 %v3429_v34 }
 0x3e5   :  { %3278 = vmatpush.msrb.mxu1 %v2667_v35  ;;  %v2655_v31 = vld [vmem:[%s9356_s4 + $0x8b8] sm:$0xff] }
 0x3e6   :  { %3456 = vmatpush.msra.mxu2 %v3412_v24  ;;  %v2651_v37 = vld [vmem:[%s9356_s4 + $0x898] sm:$0xff]  ;;  %v3368_v44 = vadd.f32 %v3367_v58, %v3366_v12  ;;  %3476 = vmatpush.msra.mxu0 %v3428_v38  ;;  %v3335_v46 = vadd.f32 %v3334_v36, %v3333_v51  ;;  %v3446_v24 = vld [vmem:[%s9357_s5 + $0x170] sm:$0xff]  ;;  %v3445_v51 = vld [vmem:[%s9357_s5 + $0x168] sm:$0xff] }
 0x3e7   :  { %3279 = vmatpush.msrb.mxu1 %v2663_v26  ;;  %v2647_v28 = vld [vmem:[%s9356_s4 + $0x878] sm:$0xff]  ;;  %v3444_v38 = vld [vmem:[%s9357_s5 + $0x160] sm:$0xff] }
 0x3e8   :  { %3457 = vmatpush.msra.mxu2 %v3411_v27  ;;  %v3407_v45 = vld [vmem:[%s9357_s5 + $0x38] sm:$0xff]  ;;  %v3369_v49 = vrot.slane %v3368_v44, 1  ;;  %v3336_v50 = vrot.slane %v3335_v46, 1 }
 0x3e9   :  { %3280 = vmatpush.msrb.mxu1 %v2659_v29  ;;  %v2643_v47 = vld [vmem:[%s9356_s4 + $0x858] sm:$0xff] }
 0x3ea   :  { %3458 = vmatpush.msra.mxu2 %v3410_v15  ;;  %v2639_v30 = vld [vmem:[%s9356_s4 + $0x838] sm:$0xff]  ;;  %v3370_v55 = vadd.f32 %v3369_v49, %v3368_v44  ;;  %v3337_v39 = vadd.f32 %v3336_v50, %v3335_v46  ;;  %v2948_v59 = vpop.f32.mrf.mxu1  ;;  %v3437_v50 = vld [vmem:[%s9357_s5 + $0x128] sm:$0xff] }
 0x3eb   :  { %3281 = vmatpush.msrb.mxu1 %v2655_v31  ;;  %v2635_v53 = vld [vmem:[%s9356_s4 + $0x818] sm:$0xff]  ;;  %v2949_v11 = vadd.f32 %v2948_v59, %v2928_v6 }
 0x3ec   :  { %3459 = vmatpush.msra.mxu2 %v3409_v13  ;;  %v3403_v56 = vld [vmem:[%s9357_s5 + $0x18] sm:$0xff]  ;;  %v3392_v25 = vsel %vm1847_vm2, %v3337_v39, %v3370_v55  ;;  %v3433_v39 = vld [vmem:[%s9357_s5 + $0x108] sm:$0xff] }
 0x3ed   :  { %3282 = vmatpush.msrb.mxu1 %v2651_v37  ;;  %v3427_v61 = vld [vmem:[%s9357_s5 + $0xd8] sm:$0xff]  ;;  %v3396_v18 = vmul.f32 0.5, %v3392_v25 }
 0x3ee   :  { %3460 = vmatpush.msra.mxu2 %v3408_v9  ;;  %3477 = vmatpush.msra.mxu0 %v3427_v61  ;;  %v3423_v1 = vld [vmem:[%s9357_s5 + $0xb8] sm:$0xff] }
 0x3ef   :  { %3283 = vmatpush.msrb.mxu1 %v2647_v28  ;;  %v3419_v62 = vld [vmem:[%s9357_s5 + $0x98] sm:$0xff] }
 0x3f0   :  { %3461 = vmatpush.msra.mxu2 %v3407_v45  ;;  %3478 = vmatpush.msra.mxu0 %v3426_v63  ;;  %v3447_v4 = vld [vmem:[%s9357_s5 + $0x178] sm:$0xff]  ;;  %v3432_v63 = vld [vmem:[%s9357_s5 + $0x100] sm:$0xff] }
 0x3f1   :  { %3284 = vmatpush.msrb.mxu1 %v2643_v47  ;;  %v2968_v10 = vpop.f32.mrf.mxu3  ;;  %v3443_v28 = vld [vmem:[%s9357_s5 + $0x158] sm:$0xff]  ;;  %v3442_v47 = vld [vmem:[%s9357_s5 + $0x150] sm:$0xff] }
 0x3f2   :  { %3462 = vmatpush.msra.mxu2 %v3406_v48  ;;  %v2969_v7 = vadd.f32 %v2968_v10, %v2949_v11  ;;  %v3441_v48 = vld [vmem:[%s9357_s5 + $0x148] sm:$0xff]  ;;  %v3439_v49 = vld [vmem:[%s9357_s5 + $0x138] sm:$0xff] }
 0x3f3   :  { %3285 = vmatpush.msrb.mxu1 %v2639_v30  ;;  %v3440_v30 = vld [vmem:[%s9357_s5 + $0x140] sm:$0xff] }
 0x3f4   :  { %3463 = vmatpush.msra.mxu2 %v3405_v57  ;;  %v2989_v20 = vadd.f32 %v2988_v8, %v2969_v7  ;;  %v3438_v57 = vld [vmem:[%s9357_s5 + $0x130] sm:$0xff] }
 0x3f5   :  { %3286 = vmatpush.msrb.mxu1 %v2635_v53  ;;  %v3436_v53 = vld [vmem:[%s9357_s5 + $0x120] sm:$0xff] }
 0x3f6   :  { %3287 = vmatmul.f32.vlgmr.msrb.gmra.mxu1 %v7645_v41  ;;  %3464 = vmatpush.msra.mxu2 %v3404_v54  ;;  %v3425_v41 = vld [vmem:[%s9357_s5 + $0xc8] sm:$0xff]  ;;  %v3435_v54 = vld [vmem:[%s9357_s5 + $0x118] sm:$0xff] }
 0x3f7   :  { %3479 = vmatpush.msra.mxu0 %v3425_v41  ;;  %3493 = vmatpush.msra.mxu1 %v3447_v4 }
 0x3f8   :  { %3465 = vmatpush.msra.mxu2 %v3403_v56  ;;  %v3434_v56 = vld [vmem:[%s9357_s5 + $0x110] sm:$0xff] }
 0x3f9   :  { %3480 = vmatpush.msra.mxu0 %v3424_v43  ;;  %v3048_v35 = vpop.f32.mrf.mxu3  ;;  %3494 = vmatpush.msra.mxu1 %v3446_v24  ;;  %v3448_v24 = vld [vmem:[%s9357_s5 + $0x180] sm:$0xff] }
 0x3fa   :  { %3466 = vmatpush.msra.mxu2 %v3402_v32  ;;  %3528 = vmatpush.msrb.mxu3 %v3448_v24  ;;  %v3742_v24 = vld [vmem:[%s9359_s7 + $0x1b0] sm:$0xff] }
 0x3fb   :  { %3481 = vmatpush.msra.mxu0 %v3423_v1  ;;  %3495 = vmatpush.msra.mxu1 %v3445_v51 }
 0x3fc   :  { %3467 = vmatpush.msra.mxu2 %v3401_v0  ;;  %v3008_v2 = vpop.f32.mrf.mxu2 }
 0x3fd   :  { %3482 = vmatpush.msra.mxu0 %v3422_v5  ;;  %v3009_v40 = vadd.f32 %v3008_v2, %v2989_v20  ;;  %3496 = vmatpush.msra.mxu1 %v3444_v38 }
 0x3fe   :  { %3468 = vmatpush.msra.mxu2 %v3400_v52 }
 0x3ff   :  { %3469 = vmatmul.f32.vlgmr.msra.gmra.mxu2 %v3396_v18  ;;  %3483 = vmatpush.msra.mxu0 %v3421_v22 }
 0x400   :  { %3497 = vmatpush.msra.mxu1 %v3443_v28 }
 0x401   :  { %3484 = vmatpush.msra.mxu0 %v3420_v42 }
 0x402   :  { %3498 = vmatpush.msra.mxu1 %v3442_v47 }
 0x403   :  { %3485 = vmatpush.msra.mxu0 %v3419_v62 }
 0x404   :  { %3499 = vmatpush.msra.mxu1 %v3441_v48 }
 0x405   :  { %3486 = vmatpush.msra.mxu0 %v3418_v14 }
 0x406   :  { %3500 = vmatpush.msra.mxu1 %v3440_v30 }
 0x407   :  { %3487 = vmatpush.msra.mxu0 %v3417_v16 }
 0x408   :  { %3501 = vmatpush.msra.mxu1 %v3439_v49  ;;  %v3068_v61 = vpop.f32.mrf.mxu0 }
 0x409   :  { %3488 = vmatpush.msra.mxu0 %v3416_v17 }
 0x40a   :  { %3502 = vmatpush.msra.mxu1 %v3438_v57 }
 0x40c   :  { %3503 = vmatpush.msra.mxu1 %v3437_v50 }
 0x40e   :  { %v3028_v60 = vpop.f32.mrf.mxu1  ;;  %3504 = vmatpush.msra.mxu1 %v3436_v53 }
 0x40f   :  { %v3029_v21 = vadd.f32 %v3028_v60, %v3009_v40 }
 0x410   :  { %3505 = vmatpush.msra.mxu1 %v3435_v54 }
 0x411   :  { %v8567_v23 = vadd.f32 %v3048_v35, %v3029_v21 }
 0x412   :  { %3506 = vmatpush.msra.mxu1 %v3434_v56 }
 0x413   :  { %v3338_v3 = vsel %vm1740_vm1, %v8567_v23, 0.0  ;;  %v3361_v26 = vmul.f32 %v8567_v23, %v8567_v23 }
 0x414   :  { %v3339_v27 = vrot.slane %v3338_v3, 4  ;;  %3507 = vmatpush.msra.mxu1 %v3433_v39 }
 0x415   :  { %v3371_v12 = vsel %vm1740_vm1, %v3361_v26, 0.0 }
 0x416   :  { %v3340_v29 = vadd.f32 %v3339_v27, %v3338_v3  ;;  %v3372_v15 = vrot.slane %v3371_v12, 4  ;;  %3508 = vmatpush.msra.mxu1 %v3432_v63 }
 0x418   :  { %v3341_v58 = vrot.slane %v3340_v29, 2  ;;  %v3373_v31 = vadd.f32 %v3372_v15, %v3371_v12 }
 0x419   :  { %v3108_v25 = vpop.f32.mrf.mxu3 }
 0x41a   :  { %v3342_v33 = vadd.f32 %v3341_v58, %v3340_v29  ;;  %v3374_v34 = vrot.slane %v3373_v31, 2 }
 0x41c   :  { %v3343_v13 = vrot.slane %v3342_v33, 1  ;;  %v3375_v36 = vadd.f32 %v3374_v34, %v3373_v31 }
 0x41e   :  { %v3376_v37 = vrot.slane %v3375_v36, 1  ;;  %v3344_v9 = vadd.f32 %v3343_v13, %v3342_v33  ;;  %v3088_v55 = vpop.f32.mrf.mxu2 }
 0x41f   :  { %v3089_v32 = vadd.f32 %v3088_v55, %v3068_v61 }
 0x420   :  { %v3377_v44 = vadd.f32 %v3376_v37, %v3375_v36 }
 0x421   :  { %v3109_v41 = vadd.f32 %v3108_v25, %v3089_v32 }
 0x422   :  { %v3393_v45 = vsel %vm1847_vm2, %v3344_v9, %v3377_v44 }
 0x423   :  { %v3397_v46 = vmul.f32 0.5, %v3393_v45  ;;  %v3188_v22 = vpop.f32.mrf.mxu3 }
 0x425   :  { %3489 = vmatmul.f32.vlgmr.msra.gmra.mxu0 %v3397_v46 }
 0x42b   :  { %v3148_v18 = vpop.f32.mrf.mxu0 }
 0x431   :  { %v3128_v0 = vpop.f32.mrf.mxu1 }
 0x432   :  { %v3129_v52 = vadd.f32 %v3128_v0, %v3109_v41 }
 0x434   :  { %v3149_v43 = vadd.f32 %v3148_v18, %v3129_v52  ;;  %v3558_v52 = vld [vmem:[%s9358_s6] sm:$0xff]  ;;  %v3560_v18 = vld [vmem:[%s9358_s6 + $0x10] sm:$0xff] }
 0x435   :  { %3580 = vmatpush.msra.mxu3 %v3558_v52  ;;  %3620 = vmatpush.msrb.mxu2 %v3560_v18  ;;  %v3688_v52 = vld [vmem:[%s9359_s7] sm:$0xff]  ;;  %v3751_v18 = vld [vmem:[%s9359_s7 + $0x1f8] sm:$0xff] }
 0x43f   :  { %v3228_v26 = vpop.f32.mrf.mxu3 }
 0x440   :  { %v3168_v1 = vpop.f32.mrf.mxu2 }
 0x441   :  { %v3169_v5 = vadd.f32 %v3168_v1, %v3149_v43  ;;  %v3559_v1 = vld [vmem:[%s9358_s6 + $0x8] sm:$0xff] }
 0x443   :  { %v8623_v42 = vadd.f32 %v3188_v22, %v3169_v5 }
 0x445   :  { %v3345_v6 = vsel %vm1740_vm1, %v8623_v42, 0.0  ;;  %v3362_v59 = vmul.f32 %v8623_v42, %v8623_v42 }
 0x446   :  { %v3346_v62 = vrot.slane %v3345_v6, 4 }
 0x447   :  { %v3378_v10 = vsel %vm1740_vm1, %v3362_v59, 0.0 }
 0x448   :  { %v3347_v11 = vadd.f32 %v3346_v62, %v3345_v6  ;;  %v3379_v14 = vrot.slane %v3378_v10, 4 }
 0x44a   :  { %v3348_v7 = vrot.slane %v3347_v11, 2  ;;  %v3380_v16 = vadd.f32 %v3379_v14, %v3378_v10  ;;  %v3716_v14 = vld [vmem:[%s9359_s7 + $0xe0] sm:$0xff] }
 0x44c   :  { %v3349_v17 = vadd.f32 %v3348_v7, %v3347_v11  ;;  %v3381_v8 = vrot.slane %v3380_v16, 2  ;;  %v3718_v11 = vld [vmem:[%s9359_s7 + $0xf0] sm:$0xff] }
 0x44d   :  { %v3248_v51 = vpop.f32.mrf.mxu0  ;;  %3789 = vmatpush.msrb.mxu0 %v3718_v11  ;;  %v3750_v7 = vld [vmem:[%s9359_s7 + $0x1f0] sm:$0xff]  ;;  %v3779_v11 = vld [vmem:[%s9359_s7 + $0x2d8] sm:$0xff] }
 0x44e   :  { %v3350_v2 = vrot.slane %v3349_v17, 1  ;;  %v3382_v20 = vadd.f32 %v3381_v8, %v3380_v16  ;;  %3809 = vmatpush.msrb.mxu1 %v3750_v7  ;;  %v3748_v8 = vld [vmem:[%s9359_s7 + $0x1e0] sm:$0xff]  ;;  %v3739_v7 = vld [vmem:[%s9359_s7 + $0x198] sm:$0xff] }
 0x44f   :  { %3790 = vmatpush.msrb.mxu0 %v3716_v14  ;;  %v3741_v14 = vld [vmem:[%s9359_s7 + $0x1a8] sm:$0xff] }
 0x450   :  { %v3383_v40 = vrot.slane %v3382_v20, 1  ;;  %v3351_v60 = vadd.f32 %v3350_v2, %v3349_v17  ;;  %v3714_v17 = vld [vmem:[%s9359_s7 + $0xd0] sm:$0xff]  ;;  %3810 = vmatpush.msrb.mxu1 %v3748_v8  ;;  %v3777_v8 = vld [vmem:[%s9359_s7 + $0x2c8] sm:$0xff] }
 0x451   :  { %v3746_v2 = vld [vmem:[%s9359_s7 + $0x1d0] sm:$0xff]  ;;  %3791 = vmatpush.msrb.mxu0 %v3714_v17  ;;  %v3737_v17 = vld [vmem:[%s9359_s7 + $0x188] sm:$0xff] }
 0x452   :  { %v3384_v21 = vadd.f32 %v3383_v40, %v3382_v20  ;;  %v3712_v40 = vld [vmem:[%s9359_s7 + $0xc0] sm:$0xff]  ;;  %3811 = vmatpush.msrb.mxu1 %v3746_v2 }
 0x453   :  { %v3208_v3 = vpop.f32.mrf.mxu1  ;;  %3792 = vmatpush.msrb.mxu0 %v3712_v40  ;;  %v3784_v2 = vld [vmem:[%s9359_s7 + $0x300] sm:$0xff]  ;;  %v3719_v40 = vld [vmem:[%s9359_s7 + $0xf8] sm:$0xff] }
 0x454   :  { %v3394_v35 = vsel %vm1847_vm2, %v3351_v60, %v3384_v21  ;;  %v3229_v27 = vadd.f32 %v3228_v26, %v3208_v3  ;;  %v3744_v60 = vld [vmem:[%s9359_s7 + $0x1c0] sm:$0xff] }
 0x455   :  { %v3398_v4 = vmul.f32 0.5, %v3394_v35  ;;  %v3328_v13 = vpop.f32.mrf.mxu0  ;;  %v3710_v35 = vld [vmem:[%s9359_s7 + $0xb0] sm:$0xff]  ;;  %v3780_v3 = vld [vmem:[%s9359_s7 + $0x2e0] sm:$0xff]  ;;  %3812 = vmatpush.msrb.mxu1 %v3744_v60  ;;  %v3735_v60 = vld [vmem:[%s9359_s7 + $0x178] sm:$0xff] }
 0x456   :  { %v3249_v29 = vadd.f32 %v3248_v51, %v3229_v27  ;;  %v3708_v27 = vld [vmem:[%s9359_s7 + $0xa0] sm:$0xff]  ;;  %v3778_v51 = vld [vmem:[%s9359_s7 + $0x2d0] sm:$0xff]  ;;  %3793 = vmatpush.msrb.mxu0 %v3710_v35 }
 0x457   :  { %3509 = vmatmul.f32.vlgmr.msra.gmra.mxu1 %v3398_v4  ;;  %v3782_v4 = vld [vmem:[%s9359_s7 + $0x2f0] sm:$0xff]  ;;  %v3756_v35 = vld [vmem:[%s9359_s7 + $0x220] sm:$0xff] }
 0x458   :  { %3829 = vmatpush.msra.mxu2 %v3782_v4  ;;  %3813 = vmatpush.msrb.mxu1 %v3742_v24  ;;  %v3717_v4 = vld [vmem:[%s9359_s7 + $0xe8] sm:$0xff] }
 0x459   :  { %3794 = vmatpush.msrb.mxu0 %v3708_v27  ;;  %v3733_v24 = vld [vmem:[%s9359_s7 + $0x168] sm:$0xff]  ;;  %v3715_v27 = vld [vmem:[%s9359_s7 + $0xd8] sm:$0xff] }
 0x45a   :  { %3830 = vmatpush.msra.mxu2 %v3780_v3  ;;  %v3773_v3 = vld [vmem:[%s9359_s7 + $0x2a8] sm:$0xff] }
 0x45c   :  { %3831 = vmatpush.msra.mxu2 %v3778_v51  ;;  %v3731_v51 = vld [vmem:[%s9359_s7 + $0x158] sm:$0xff] }
 0x460   :  { %v3308_v33 = vpop.f32.mrf.mxu3 }
 0x462   :  { %v3268_v12 = vpop.f32.mrf.mxu2 }
 0x463   :  { %v3269_v15 = vadd.f32 %v3268_v12, %v3249_v29 }
 0x473   :  { %v3288_v58 = vpop.f32.mrf.mxu1 }
 0x474   :  { %v3289_v31 = vadd.f32 %v3288_v58, %v3269_v15  ;;  %v3740_v15 = vld [vmem:[%s9359_s7 + $0x1a0] sm:$0xff]  ;;  %v3706_v58 = vld [vmem:[%s9359_s7 + $0x90] sm:$0xff] }
 0x475   :  { %3814 = vmatpush.msrb.mxu1 %v3740_v15  ;;  %3795 = vmatpush.msrb.mxu0 %v3706_v58  ;;  %v3713_v15 = vld [vmem:[%s9359_s7 + $0xc8] sm:$0xff] }
 0x476   :  { %v3309_v34 = vadd.f32 %v3308_v33, %v3289_v31  ;;  %v3776_v31 = vld [vmem:[%s9359_s7 + $0x2c0] sm:$0xff]  ;;  %v3729_v58 = vld [vmem:[%s9359_s7 + $0x148] sm:$0xff] }
 0x477   :  { %3832 = vmatpush.msra.mxu2 %v3776_v31  ;;  %v3769_v31 = vld [vmem:[%s9359_s7 + $0x288] sm:$0xff] }
 0x478   :  { %v8634_v36 = vadd.f32 %v3328_v13, %v3309_v34  ;;  %v3738_v34 = vld [vmem:[%s9359_s7 + $0x190] sm:$0xff]  ;;  %v3704_v13 = vld [vmem:[%s9359_s7 + $0x80] sm:$0xff] }
 0x479   :  { %3815 = vmatpush.msrb.mxu1 %v3738_v34  ;;  %3796 = vmatpush.msrb.mxu0 %v3704_v13  ;;  %v3727_v34 = vld [vmem:[%s9359_s7 + $0x138] sm:$0xff] }
 0x47a   :  { %v3353_v37 = vsel %vm3352_vm3, %v8634_v36, 0.0  ;;  %v3363_v38 = vmul.f32 %v8634_v36, %v8634_v36  ;;  %v3767_v13 = vld [vmem:[%s9359_s7 + $0x278] sm:$0xff] }
 0x47b   :  { %v3354_v9 = vrot.slane %v3353_v37, 4 }
 0x47c   :  { %v3385_v44 = vsel %vm3352_vm3, %v3363_v38, 0.0 }
 0x47d   :  { %v3355_v28 = vadd.f32 %v3354_v9, %v3353_v37  ;;  %v3386_v45 = vrot.slane %v3385_v44, 4  ;;  %v3774_v37 = vld [vmem:[%s9359_s7 + $0x2b0] sm:$0xff]  ;;  %v3561_v9 = vld [vmem:[%s9358_s6 + $0x18] sm:$0xff] }
 0x47e   :  { %3833 = vmatpush.msra.mxu2 %v3774_v37  ;;  %v3709_v37 = vld [vmem:[%s9359_s7 + $0xa8] sm:$0xff] }
 0x47f   :  { %v3356_v46 = vrot.slane %v3355_v28, 2  ;;  %v3387_v47 = vadd.f32 %v3386_v45, %v3385_v44  ;;  %v3702_v44 = vld [vmem:[%s9359_s7 + $0x70] sm:$0xff]  ;;  %v3736_v45 = vld [vmem:[%s9359_s7 + $0x180] sm:$0xff] }
 0x480   :  { %3797 = vmatpush.msrb.mxu0 %v3702_v44  ;;  %3816 = vmatpush.msrb.mxu1 %v3736_v45  ;;  %v3707_v44 = vld [vmem:[%s9359_s7 + $0x98] sm:$0xff] }
 0x481   :  { %v3357_v48 = vadd.f32 %v3356_v46, %v3355_v28  ;;  %v3388_v30 = vrot.slane %v3387_v47, 2  ;;  %v3772_v46 = vld [vmem:[%s9359_s7 + $0x2a0] sm:$0xff]  ;;  %v3763_v45 = vld [vmem:[%s9359_s7 + $0x258] sm:$0xff] }
 0x482   :  { %v3470_v39 = vpop.f32.mrf.mxu2  ;;  %3834 = vmatpush.msra.mxu2 %v3772_v46  ;;  %v3705_v46 = vld [vmem:[%s9359_s7 + $0x88] sm:$0xff] }
 0x483   :  { %v3358_v49 = vrot.slane %v3357_v48, 1  ;;  %v3389_v57 = vadd.f32 %v3388_v30, %v3387_v47  ;;  %v3700_v47 = vld [vmem:[%s9359_s7 + $0x60] sm:$0xff]  ;;  %v3770_v30 = vld [vmem:[%s9359_s7 + $0x290] sm:$0xff] }
 0x484   :  { %3798 = vmatpush.msrb.mxu0 %v3700_v47  ;;  %3835 = vmatpush.msra.mxu2 %v3770_v30  ;;  %v3721_v47 = vld [vmem:[%s9359_s7 + $0x108] sm:$0xff]  ;;  %v3703_v30 = vld [vmem:[%s9359_s7 + $0x78] sm:$0xff] }
 0x485   :  { %v3390_v50 = vrot.slane %v3389_v57, 1  ;;  %v3359_v53 = vadd.f32 %v3358_v49, %v3357_v48  ;;  %v3734_v48 = vld [vmem:[%s9359_s7 + $0x170] sm:$0xff] }
 0x486   :  { %v3698_v49 = vld [vmem:[%s9359_s7 + $0x50] sm:$0xff]  ;;  %3817 = vmatpush.msrb.mxu1 %v3734_v48  ;;  %v3761_v48 = vld [vmem:[%s9359_s7 + $0x248] sm:$0xff] }
 0x487   :  { %v3391_v54 = vadd.f32 %v3390_v50, %v3389_v57  ;;  %v3732_v57 = vld [vmem:[%s9359_s7 + $0x160] sm:$0xff]  ;;  %3799 = vmatpush.msrb.mxu0 %v3698_v49  ;;  %v3759_v49 = vld [vmem:[%s9359_s7 + $0x238] sm:$0xff] }
 0x488   :  { %v3768_v50 = vld [vmem:[%s9359_s7 + $0x280] sm:$0xff]  ;;  %3818 = vmatpush.msrb.mxu1 %v3732_v57  ;;  %v3701_v57 = vld [vmem:[%s9359_s7 + $0x68] sm:$0xff] }
 0x489   :  { %v3395_v55 = vsel %vm1847_vm2, %v3359_v53, %v3391_v54  ;;  %v3696_v53 = vld [vmem:[%s9359_s7 + $0x40] sm:$0xff]  ;;  %v3730_v54 = vld [vmem:[%s9359_s7 + $0x150] sm:$0xff]  ;;  %3836 = vmatpush.msra.mxu2 %v3768_v50  ;;  %v3757_v50 = vld [vmem:[%s9359_s7 + $0x228] sm:$0xff] }
 0x48a   :  { %v3399_v56 = vmul.f32 0.5, %v3395_v55  ;;  %v3694_v55 = vld [vmem:[%s9359_s7 + $0x30] sm:$0xff]  ;;  %3800 = vmatpush.msrb.mxu0 %v3696_v53  ;;  %3819 = vmatpush.msrb.mxu1 %v3730_v54  ;;  %v3699_v53 = vld [vmem:[%s9359_s7 + $0x58] sm:$0xff] }
 0x48b   :  { %v3755_v54 = vld [vmem:[%s9359_s7 + $0x218] sm:$0xff] }
 0x48c   :  { %4498 = vmatmul.msk.f32.vlgmr.msrb.gmra.mxu3 %vm3449_vm4, %v3399_v56  ;;  %v3766_v56 = vld [vmem:[%s9359_s7 + $0x270] sm:$0xff]  ;;  %3801 = vmatpush.msrb.mxu0 %v3694_v55  ;;  %v3697_v55 = vld [vmem:[%s9359_s7 + $0x48] sm:$0xff] }
 0x48d   :  { %3600 = vmatpush.msrb.mxu3 %v3559_v1  ;;  %3837 = vmatpush.msra.mxu2 %v3766_v56  ;;  %v3749_v1 = vld [vmem:[%s9359_s7 + $0x1e8] sm:$0xff] }
 0x48e   :  { %v3753_v56 = vld [vmem:[%s9359_s7 + $0x208] sm:$0xff] }
 0x4a2   :  { %v3490_v61 = vpop.f32.mrf.mxu0 }
 0x4a3   :  { %v3491_v63 = vadd.f32 %v3490_v61, %v3470_v39  ;;  %v3728_v61 = vld [vmem:[%s9359_s7 + $0x140] sm:$0xff] }
 0x4a4   :  { %v3692_v39 = vld [vmem:[%s9359_s7 + $0x20] sm:$0xff]  ;;  %3820 = vmatpush.msrb.mxu1 %v3728_v61  ;;  %v3785_v61 = vld [vmem:[%s9359_s7 + $0x308] sm:$0xff] }
 0x4a5   :  { %3802 = vmatpush.msrb.mxu0 %v3692_v39  ;;  %v4503_v39 = vld [vmem:[%s9358_s6 + $0x20] ss:$8 sm:$0xf] }
 0x4d4   :  { %v3510_v32 = vpop.f32.mrf.mxu1 }
 0x4d5   :  { %v3511_v25 = vadd.f32 %v3510_v32, %v3491_v63  ;;  %v3764_v32 = vld [vmem:[%s9359_s7 + $0x260] sm:$0xff]  ;;  %v3726_v63 = vld [vmem:[%s9359_s7 + $0x130] sm:$0xff] }
 0x4d6   :  { %3838 = vmatpush.msra.mxu2 %v3764_v32  ;;  %3821 = vmatpush.msrb.mxu1 %v3726_v63  ;;  %v3695_v32 = vld [vmem:[%s9359_s7 + $0x38] sm:$0xff]  ;;  %v3693_v63 = vld [vmem:[%s9359_s7 + $0x28] sm:$0xff] }
 0x50f   :  { %v3530_v0 = vpop.f32.mrf.mxu3 }
 0x510   :  { %v3531_v41 = vadd.f32 %v3530_v0, %v3511_v25  ;;  %v3690_v25 = vld [vmem:[%s9359_s7 + $0x10] sm:$0xff] }
 0x511   :  { %v3762_v0 = vld [vmem:[%s9359_s7 + $0x250] sm:$0xff]  ;;  %3803 = vmatpush.msrb.mxu0 %v3690_v25  ;;  %v3656_v25 = vperm.slane %v4503_v39, 0 }
 0x512   :  { %v3533_v43 = vmul.f32 %v3531_v41, %v3531_v41  ;;  %v3549_v12 = vsub.f32 0.0, %v3531_v41  ;;  %3839 = vmatpush.msra.mxu2 %v3762_v0  ;;  %v3658_v0 = vperm.slane %v4503_v39, 2 }
 0x513   :  { %3804 = vmatpush.msrb.mxu0 %v3688_v52  ;;  %v3689_v52 = vld [vmem:[%s9359_s7 + $0x8] sm:$0xff] }
 0x514   :  { %v3535_v5 = vrot.slane %v3533_v43, 7  ;;  %v3722_v43 = vld [vmem:[%s9359_s7 + $0x110] sm:$0xff] }
 0x515   :  { %3889 = vmatpush.msra.mxu0 %v3751_v18 }
 0x516   :  { %v3537_v22 = vsub.f32 %v3531_v41, %v3535_v5  ;;  %v3724_v41 = vld [vmem:[%s9359_s7 + $0x120] sm:$0xff] }
 0x517   :  { %3822 = vmatpush.msrb.mxu1 %v3724_v41  ;;  %v3720_v5 = vld [vmem:[%s9359_s7 + $0x100] sm:$0xff]  ;;  %3890 = vmatpush.msra.mxu0 %v3749_v1  ;;  %v3691_v41 = vld [vmem:[%s9359_s7 + $0x18] sm:$0xff] }
 0x518   :  { %v3538_v6 = vadd.f32 1e-05, %v3537_v22  ;;  %v3747_v22 = vld [vmem:[%s9359_s7 + $0x1d8] sm:$0xff] }
 0x519   :  { %3823 = vmatpush.msrb.mxu1 %v3722_v43  ;;  %3891 = vmatpush.msra.mxu0 %v3747_v22 }
 0x51a   :  { %4515 = vrsqrt.f32 %v3538_v6  ;;  %vm3545_vm6 = vweird.f32 %v3538_v6 }
 0x51b   :  { %3824 = vmatpush.msrb.mxu1 %v3720_v5 }
 0x520   :  { %v4516_v59 = vpop.eup %4515 }
 0x521   :  { %v3540_v62 = vmul.f32 %v4516_v59, %v3538_v6  ;;  %vm3546_vm5 = vweird.f32 %v4516_v59  ;;  %v3783_v6 = vld [vmem:[%s9359_s7 + $0x2f8] sm:$0xff] }
 0x522   :  { %vm3547_vm7 = vmor %vm3545_vm6, %vm3546_vm5  ;;  %3909 = vmatpush.msra.mxu1 %v3783_v6  ;;  %vm4304_vm5 = vcmask 261120   ;;  %vm4376_vm6 = vcmask 517120  }
 0x523   :  { %v3541_v10 = vmul.f32 %v4516_v59, %v3540_v62  ;;  %v3781_v62 = vld [vmem:[%s9359_s7 + $0x2e8] sm:$0xff] }
 0x524   :  { %3910 = vmatpush.msra.mxu1 %v3781_v62 }
 0x525   :  { %v3542_v16 = vmul.f32 0.5, %v3541_v10  ;;  %v3743_v10 = vld [vmem:[%s9359_s7 + $0x1b8] sm:$0xff] }
 0x526   :  { %3911 = vmatpush.msra.mxu1 %v3779_v11 }
 0x527   :  { %v3543_v20 = vsub.f32 1.5, %v3542_v16  ;;  %v3760_v16 = vld [vmem:[%s9359_s7 + $0x240] sm:$0xff] }
 0x528   :  { %3840 = vmatpush.msra.mxu2 %v3760_v16  ;;  %3912 = vmatpush.msra.mxu1 %v3777_v8  ;;  %v3657_v16 = vperm.slane %v4503_v39, 1 }
 0x529   :  { %v3544_v21 = vmul.f32 %v4516_v59, %v3543_v20  ;;  %v3758_v20 = vld [vmem:[%s9359_s7 + $0x230] sm:$0xff] }
 0x52a   :  { %3841 = vmatpush.msra.mxu2 %v3758_v20 }
 0x52b   :  { %v3548_v26 = vsel %vm3547_vm7, %v4516_v59, %v3544_v21  ;;  %v3745_v59 = vld [vmem:[%s9359_s7 + $0x1c8] sm:$0xff]  ;;  %v3775_v21 = vld [vmem:[%s9359_s7 + $0x2b8] sm:$0xff] }
 0x52c   :  { %v3551_v29 = vrot.slane %v3548_v26, 1  ;;  %3892 = vmatpush.msra.mxu0 %v3745_v59  ;;  %3913 = vmatpush.msra.mxu1 %v3775_v21  ;;  %v3754_v26 = vld [vmem:[%s9359_s7 + $0x210] sm:$0xff] }
 0x52d   :  { %3842 = vmatpush.msra.mxu2 %v3756_v35 }
 0x52e   :  { %v3553_v33 = vmul.f32 %v3551_v29, %v3549_v12  ;;  %3893 = vmatpush.msra.mxu0 %v3743_v10  ;;  %3914 = vmatpush.msra.mxu1 %v3773_v3  ;;  %v3771_v12 = vld [vmem:[%s9359_s7 + $0x298] sm:$0xff] }
 0x52f   :  { %3843 = vmatpush.msra.mxu2 %v3754_v26 }
 0x530   :  { %v3555_v38 = vrot.slane %v3553_v33, 7  ;;  %3894 = vmatpush.msra.mxu0 %v3741_v14  ;;  %3915 = vmatpush.msra.mxu1 %v3771_v12  ;;  %v3711_v33 = vld [vmem:[%s9359_s7 + $0xb8] sm:$0xff] }
 0x532   :  { %v3557_v28 = vsel %vm1847_vm2, %v3551_v29, %v3555_v38  ;;  %3895 = vmatpush.msra.mxu0 %v3739_v7  ;;  %v3752_v29 = vld [vmem:[%s9359_s7 + $0x200] sm:$0xff]  ;;  %3916 = vmatpush.msra.mxu1 %v3769_v31  ;;  %v3725_v38 = vld [vmem:[%s9359_s7 + $0x128] sm:$0xff] }
 0x533   :  { %4499 = vmatmul.msk.f32.vlgmr.msra.gmra.mxu3 %vm3449_vm4, %v3557_v28  ;;  %4501 = vmatmul.msk.f32.vlgmr.msrb.gmra.mxu2 %vm3449_vm4, %v3557_v28 }
 0x534   :  { %3640 = vmatpush.msra.mxu3 %v3561_v9  ;;  %3896 = vmatpush.msra.mxu0 %v3737_v17  ;;  %v3765_v9 = vld [vmem:[%s9359_s7 + $0x268] sm:$0xff] }
 0x535   :  { %3844 = vmatpush.msra.mxu2 %v3752_v29  ;;  %3917 = vmatpush.msra.mxu1 %v3767_v13  ;;  %v3994_v13 = vld [vmem:[%s9360_s8 + $0x58] sm:$0xff] }
 0x536   :  { %3897 = vmatpush.msra.mxu0 %v3735_v60 }
 0x537   :  { %3918 = vmatpush.msra.mxu1 %v3765_v9  ;;  %3944 = vmatpush.msrb.mxu2 %v3785_v61  ;;  %v4014_v9 = vld [vmem:[%s9360_s8 + $0xf8] sm:$0xff]  ;;  %v3984_v61 = vld [vmem:[%s9360_s8 + $0x8] sm:$0xff] }
 0x538   :  { %3898 = vmatpush.msra.mxu0 %v3733_v24 }
 0x539   :  { %3919 = vmatpush.msra.mxu1 %v3763_v45  ;;  %v3990_v45 = vld [vmem:[%s9360_s8 + $0x38] sm:$0xff] }
 0x53a   :  { %3899 = vmatpush.msra.mxu0 %v3731_v51 }
 0x53b   :  { %4500 = vmatmul.msk.f32.vlgmr.msrb.gmra.mxu3 %vm3449_vm4, %v3557_v28  ;;  %3920 = vmatpush.msra.mxu1 %v3761_v48  ;;  %v4011_v48 = vld [vmem:[%s9360_s8 + $0xe0] sm:$0xff] }
 0x53c   :  { %3864 = vmatpush.msrb.mxu3 %v3784_v2  ;;  %3900 = vmatpush.msra.mxu0 %v3729_v58 }
 0x53d   :  { %3921 = vmatpush.msra.mxu1 %v3759_v49  ;;  %v4010_v49 = vld [vmem:[%s9360_s8 + $0xd8] sm:$0xff] }
 0x53e   :  { %3901 = vmatpush.msra.mxu0 %v3727_v34  ;;  %v3995_v34 = vld [vmem:[%s9360_s8 + $0x60] sm:$0xff] }
 0x53f   :  { %3922 = vmatpush.msra.mxu1 %v3757_v50  ;;  %v4009_v50 = vld [vmem:[%s9360_s8 + $0xd0] sm:$0xff] }
 0x540   :  { %3902 = vmatpush.msra.mxu0 %v3725_v38  ;;  %v3992_v38 = vld [vmem:[%s9360_s8 + $0x48] sm:$0xff] }
 0x541   :  { %3923 = vmatpush.msra.mxu1 %v3755_v54  ;;  %v4008_v54 = vld [vmem:[%s9360_s8 + $0xc8] sm:$0xff] }
 0x543   :  { %4502 = vmatmul.msk.f32.vlgmr.msra.gmra.mxu3 %vm3449_vm4, %v3557_v28  ;;  %v3723_v28 = vld [vmem:[%s9359_s7 + $0x118] sm:$0xff]  ;;  %3924 = vmatpush.msra.mxu1 %v3753_v56  ;;  %v4007_v56 = vld [vmem:[%s9360_s8 + $0xc0] sm:$0xff] }
 0x544   :  { %3869 = vmatpush.msra.mxu3 %v3719_v40  ;;  %3903 = vmatpush.msra.mxu0 %v3723_v28  ;;  %v4013_v28 = vld [vmem:[%s9360_s8 + $0xf0] sm:$0xff] }
 0x546   :  { %3870 = vmatpush.msra.mxu3 %v3717_v4  ;;  %3904 = vmatpush.msra.mxu0 %v3721_v47  ;;  %v3989_v47 = vld [vmem:[%s9360_s8 + $0x30] sm:$0xff] }
 0x548   :  { %3871 = vmatpush.msra.mxu3 %v3715_v27 }
 0x54a   :  { %3872 = vmatpush.msra.mxu3 %v3713_v15 }
 0x54c   :  { %3873 = vmatpush.msra.mxu3 %v3711_v33  ;;  %v3997_v33 = vld [vmem:[%s9360_s8 + $0x70] sm:$0xff] }
 0x54e   :  { %3874 = vmatpush.msra.mxu3 %v3709_v37  ;;  %v3993_v37 = vld [vmem:[%s9360_s8 + $0x50] sm:$0xff] }
 0x550   :  { %3875 = vmatpush.msra.mxu3 %v3707_v44  ;;  %v3991_v44 = vld [vmem:[%s9360_s8 + $0x40] sm:$0xff] }
 0x552   :  { %3876 = vmatpush.msra.mxu3 %v3705_v46  ;;  %v4012_v46 = vld [vmem:[%s9360_s8 + $0xe8] sm:$0xff] }
 0x554   :  { %3877 = vmatpush.msra.mxu3 %v3703_v30  ;;  %v3988_v30 = vld [vmem:[%s9360_s8 + $0x28] sm:$0xff] }
 0x556   :  { %3878 = vmatpush.msra.mxu3 %v3701_v57  ;;  %v3987_v57 = vld [vmem:[%s9360_s8 + $0x20] sm:$0xff] }
 0x558   :  { %3879 = vmatpush.msra.mxu3 %v3699_v53  ;;  %v3986_v53 = vld [vmem:[%s9360_s8 + $0x18] sm:$0xff] }
 0x55a   :  { %3880 = vmatpush.msra.mxu3 %v3697_v55  ;;  %v3985_v55 = vld [vmem:[%s9360_s8 + $0x10] sm:$0xff] }
 0x55c   :  { %3881 = vmatpush.msra.mxu3 %v3695_v32  ;;  %v3983_v32 = vld [vmem:[%s9360_s8] sm:$0xff] }
 0x55e   :  { %3882 = vmatpush.msra.mxu3 %v3693_v63  ;;  %v4005_v63 = vld [vmem:[%s9360_s8 + $0xb0] sm:$0xff] }
 0x560   :  { %3883 = vmatpush.msra.mxu3 %v3691_v41  ;;  %v4003_v41 = vld [vmem:[%s9360_s8 + $0xa0] sm:$0xff] }
 0x562   :  { %3884 = vmatpush.msra.mxu3 %v3689_v52 }
 0x5b6   :  { %v3582_v18 = vpop.f32.mrf.mxu3  ;;  %v3622_v43 = vpop.f32.mrf.mxu2 }
 0x5b7   :  { %v3645_v1 = vperm.slane %v3582_v18, 0  ;;  %v3664_v5 = vadd.f32 %v3656_v25, %v3582_v18  ;;  %v3647_v22 = vperm.slane %v3622_v43, 0  ;;  %v3666_v6 = vadd.f32 %v3658_v0, %v3622_v43  ;;  %v4004_v25 = vld [vmem:[%s9360_s8 + $0xa8] sm:$0xff]  ;;  %v4002_v18 = vld [vmem:[%s9360_s8 + $0x98] sm:$0xff] }
 0x5b9   :  { %v3649_v59 = vmul.f32 %v3645_v1, %v8438_v19  ;;  %v3668_v62 = vperm.slane %v3664_v5, 1  ;;  %v3651_v10 = vmul.f32 %v3647_v22, %v8623_v42  ;;  %v3670_v11 = vperm.slane %v3666_v6, 1  ;;  %v4001_v1 = vld [vmem:[%s9360_s8 + $0x90] sm:$0xff]  ;;  %v4000_v5 = vld [vmem:[%s9360_s8 + $0x88] sm:$0xff]  ;;  %v3999_v6 = vld [vmem:[%s9360_s8 + $0x80] sm:$0xff] }
 0x5ba   :  { %v3659_v42 = vperm.slane %v4503_v39, 3  ;;  %v4006_v39 = vld [vmem:[%s9360_s8 + $0xb8] sm:$0xff] }
 0x5bb   :  { %v3672_v14 = vadd.f32 %v3668_v62, %v3649_v59  ;;  %v3674_v7 = vadd.f32 %v3670_v11, %v3651_v10 }
 0x5bd   :  { %v3682_v17 = vmul.f32 0.01, %v3674_v7  ;;  %vm3676_vm8 = vcmp.ge.f32.partialorder %v3672_v14, 0.0  ;;  %v3680_v8 = vmul.f32 0.01, %v3672_v14  ;;  %vm3678_vm9 = vcmp.ge.f32.partialorder %v3674_v7, 0.0 }
 0x5be   :  { %v3602_v2 = vpop.f32.mrf.mxu3 }
 0x5bf   :  { %v3646_v20 = vperm.slane %v3602_v2, 0  ;;  %v3665_v40 = vadd.f32 %v3657_v16, %v3602_v2  ;;  %v3684_v60 = vsel %vm3676_vm8, %v3672_v14, %v3680_v8  ;;  %v3686_v21 = vsel %vm3678_vm9, %v3674_v7, %v3682_v17 }
 0x5c0   :  { %3805 = vmatmul.f32.vlgmr.msrb.gmra.mxu0 %v3684_v60  ;;  %3845 = vmatmul.f32.vlgmr.msra.gmra.mxu2 %v3686_v21 }
 0x5c1   :  { %v3650_v19 = vmul.f32 %v3646_v20, %v8567_v23  ;;  %v3669_v35 = vperm.slane %v3665_v40, 1  ;;  %v3998_v23 = vld [vmem:[%s9360_s8 + $0x78] sm:$0xff] }
 0x5c2   :  { %4015 = vmatpush.msra.mxu2 %v3998_v23 }
 0x5c3   :  { %v3673_v4 = vadd.f32 %v3669_v35, %v3650_v19 }
 0x5c4   :  { %4016 = vmatpush.msra.mxu2 %v3997_v33 }
 0x5c5   :  { %v3681_v24 = vmul.f32 0.01, %v3673_v4  ;;  %vm3677_vm10 = vcmp.ge.f32.partialorder %v3673_v4, 0.0 }
 0x5c6   :  { %v3642_v3 = vpop.f32.mrf.mxu3 }
 0x5c7   :  { %v3648_v26 = vperm.slane %v3642_v3, 0  ;;  %v3667_v27 = vadd.f32 %v3659_v42, %v3642_v3  ;;  %v3685_v51 = vsel %vm3677_vm10, %v3673_v4, %v3681_v24 }
 0x5c8   :  { %3825 = vmatmul.f32.vlgmr.msrb.gmra.mxu1 %v3685_v51  ;;  %3905 = vmatmul.f32.vlgmr.msra.gmra.mxu0 %v3685_v51 }
 0x5c9   :  { %v3652_v12 = vmul.f32 %v3648_v26, %v8634_v36  ;;  %v3671_v29 = vperm.slane %v3667_v27, 1  ;;  %v3996_v36 = vld [vmem:[%s9360_s8 + $0x68] sm:$0xff] }
 0x5ca   :  { %4017 = vmatpush.msra.mxu2 %v3996_v36 }
 0x5cb   :  { %v3675_v15 = vadd.f32 %v3671_v29, %v3652_v12 }
 0x5cc   :  { %4018 = vmatpush.msra.mxu2 %v3995_v34 }
 0x5cd   :  { %vm3679_vm11 = vcmp.ge.f32.partialorder %v3675_v15, 0.0  ;;  %v3683_v58 = vmul.f32 0.01, %v3675_v15 }
 0x5ce   :  { %4019 = vmatpush.msra.mxu2 %v3994_v13 }
 0x5cf   :  { %v3687_v31 = vsel %vm3679_vm11, %v3675_v15, %v3683_v58  ;;  %vm4429_vm11 = vcmask 523264  }
 0x5d0   :  { %4504 = vmatmul.msk.f32.vlgmr.msrb.gmra.mxu3 %vm3449_vm4, %v3687_v31  ;;  %3925 = vmatmul.f32.vlgmr.msra.gmra.mxu1 %v3686_v21 }
 0x5d1   :  { %4505 = vmatmul.msk.f32.vlgmr.msrb.gmra.mxu2 %vm3449_vm4, %v3687_v31  ;;  %4035 = vmatpush.msrb.mxu3 %v4014_v9 }
 0x5d2   :  { %4020 = vmatpush.msra.mxu2 %v3993_v37 }
 0x5d3   :  { %4036 = vmatpush.msrb.mxu3 %v4013_v28 }
 0x5d4   :  { %4021 = vmatpush.msra.mxu2 %v3992_v38 }
 0x5d5   :  { %4037 = vmatpush.msrb.mxu3 %v4012_v46 }
 0x5d6   :  { %4022 = vmatpush.msra.mxu2 %v3991_v44 }
 0x5d7   :  { %4038 = vmatpush.msrb.mxu3 %v4011_v48 }
 0x5d8   :  { %3885 = vmatmul.f32.vlgmr.msra.gmra.mxu3 %v3684_v60  ;;  %4023 = vmatpush.msra.mxu2 %v3990_v45 }
 0x5d9   :  { %4039 = vmatpush.msrb.mxu3 %v4010_v49 }
 0x5da   :  { %4024 = vmatpush.msra.mxu2 %v3989_v47 }
 0x5db   :  { %4040 = vmatpush.msrb.mxu3 %v4009_v50 }
 0x5dc   :  { %4025 = vmatpush.msra.mxu2 %v3988_v30 }
 0x5dd   :  { %4041 = vmatpush.msrb.mxu3 %v4008_v54  ;;  %v4082_v54 = vld [vmem:[%s9361_s9 + $0x10] sm:$0xff] }
 0x5de   :  { %4026 = vmatpush.msra.mxu2 %v3987_v57  ;;  %4101 = vmatpush.msrb.mxu0 %v4082_v54 }
 0x5df   :  { %4042 = vmatpush.msrb.mxu3 %v4007_v56  ;;  %v4080_v56 = vld [vmem:[%s9361_s9] sm:$0xff] }
 0x5e0   :  { %4027 = vmatpush.msra.mxu2 %v3986_v53  ;;  %4102 = vmatpush.msrb.mxu0 %v4080_v56 }
 0x5e1   :  { %4043 = vmatpush.msrb.mxu3 %v4006_v39 }
 0x5e2   :  { %4028 = vmatpush.msra.mxu2 %v3985_v55  ;;  %v4083_v55 = vld [vmem:[%s9361_s9 + $0x18] sm:$0xff] }
 0x5e3   :  { %4044 = vmatpush.msrb.mxu3 %v4005_v63  ;;  %4121 = vmatpush.msrb.mxu1 %v4083_v55  ;;  %v4181_v63 = vld [vmem:[%s9362_s10 + $0xf8] sm:$0xff] }
 0x5e4   :  { %4029 = vmatpush.msra.mxu2 %v3984_v61  ;;  %v4081_v61 = vld [vmem:[%s9361_s9 + $0x8] sm:$0xff] }
 0x5e5   :  { %4045 = vmatpush.msrb.mxu3 %v4004_v25  ;;  %4122 = vmatpush.msrb.mxu1 %v4081_v61  ;;  %v4164_v25 = vld [vmem:[%s9362_s10 + $0x70] sm:$0xff] }
 0x5e6   :  { %4030 = vmatpush.msra.mxu2 %v3983_v32  ;;  %v4165_v32 = vld [vmem:[%s9362_s10 + $0x78] sm:$0xff] }
 0x5e7   :  { %4046 = vmatpush.msrb.mxu3 %v4003_v41  ;;  %4182 = vmatpush.msra.mxu0 %v4165_v32  ;;  %v4180_v41 = vld [vmem:[%s9362_s10 + $0xf0] sm:$0xff] }
 0x5e8   :  { %4202 = vmatpush.msra.mxu1 %v4181_v63 }
 0x5e9   :  { %4047 = vmatpush.msrb.mxu3 %v4002_v18  ;;  %v4179_v18 = vld [vmem:[%s9362_s10 + $0xe8] sm:$0xff]  ;;  %4183 = vmatpush.msra.mxu0 %v4164_v25 }
 0x5ea   :  { %4203 = vmatpush.msra.mxu1 %v4180_v41 }
 0x5eb   :  { %4048 = vmatpush.msrb.mxu3 %v4001_v1  ;;  %v4162_v1 = vld [vmem:[%s9362_s10 + $0x60] sm:$0xff] }
 0x5ec   :  { %4204 = vmatpush.msra.mxu1 %v4179_v18 }
 0x5ed   :  { %4049 = vmatpush.msrb.mxu3 %v4000_v5  ;;  %v4178_v5 = vld [vmem:[%s9362_s10 + $0xe0] sm:$0xff] }
 0x5ee   :  { %4205 = vmatpush.msra.mxu1 %v4178_v5  ;;  %v4249_v5 = vld [vmem:[%s9363_s11 + $0x50] sm:$0xff] }
 0x5ef   :  { %4050 = vmatpush.msrb.mxu3 %v3999_v6  ;;  %v4161_v6 = vld [vmem:[%s9362_s10 + $0x58] sm:$0xff] }
 0x63d   :  { %v3806_v52 = vpop.f32.mrf.mxu0 }
 0x643   :  { %v3846_v22 = vpop.f32.mrf.mxu2 }
 0x645   :  { %v3826_v0 = vpop.f32.mrf.mxu1  ;;  %v3906_v2 = vpop.f32.mrf.mxu0 }
 0x646   :  { %v3827_v43 = vadd.f32 %v3826_v0, %v3806_v52  ;;  %v4163_v52 = vld [vmem:[%s9362_s10 + $0x68] sm:$0xff] }
 0x647   :  { %4184 = vmatpush.msra.mxu0 %v4163_v52 }
 0x648   :  { %v3847_v59 = vadd.f32 %v3846_v22, %v3827_v43 }
 0x649   :  { %4185 = vmatpush.msra.mxu0 %v4162_v1 }
 0x64b   :  { %4186 = vmatpush.msra.mxu0 %v4161_v6  ;;  %v4245_v6 = vld [vmem:[%s9363_s11 + $0x30] sm:$0xff] }
 0x64d   :  { %v3926_v19 = vpop.f32.mrf.mxu1 }
 0x653   :  { %v3866_v62 = vpop.f32.mrf.mxu3 }
 0x654   :  { %v9057_v10 = vadd.f32 %v3866_v62, %v3847_v59  ;;  %v3946_v26 = vpop.f32.mrf.mxu2  ;;  %v4177_v59 = vld [vmem:[%s9362_s10 + $0xd8] sm:$0xff]  ;;  %v4160_v62 = vld [vmem:[%s9362_s10 + $0x50] sm:$0xff] }
 0x655   :  { %4206 = vmatpush.msra.mxu1 %v4177_v59  ;;  %4187 = vmatpush.msra.mxu0 %v4160_v62  ;;  %v4244_v59 = vld [vmem:[%s9363_s11 + $0x28] sm:$0xff]  ;;  %v4243_v62 = vld [vmem:[%s9363_s11 + $0x20] sm:$0xff] }
 0x656   :  { %v3949_v11 = vsel %vm1740_vm1, %v9057_v10, 0.0  ;;  %v3963_v14 = vmul.f32 %v9057_v10, %v9057_v10 }
 0x657   :  { %v3950_v7 = vrot.slane %v3949_v11, 4 }
 0x658   :  { %v3965_v16 = vsel %vm1740_vm1, %v3963_v14, 0.0  ;;  %v4159_v14 = vld [vmem:[%s9362_s10 + $0x48] sm:$0xff] }
 0x659   :  { %v3951_v17 = vadd.f32 %v3950_v7, %v3949_v11  ;;  %v3966_v8 = vrot.slane %v3965_v16, 4  ;;  %v4176_v11 = vld [vmem:[%s9362_s10 + $0xd0] sm:$0xff]  ;;  %v4175_v7 = vld [vmem:[%s9362_s10 + $0xc8] sm:$0xff]  ;;  %4188 = vmatpush.msra.mxu0 %v4159_v14 }
 0x65a   :  { %4207 = vmatpush.msra.mxu1 %v4176_v11  ;;  %v4242_v11 = vld [vmem:[%s9363_s11 + $0x18] sm:$0xff]  ;;  %v4241_v14 = vld [vmem:[%s9363_s11 + $0x10] sm:$0xff] }
 0x65b   :  { %v3952_v20 = vrot.slane %v3951_v17, 2  ;;  %v3967_v40 = vadd.f32 %v3966_v8, %v3965_v16  ;;  %v3886_v60 = vpop.f32.mrf.mxu3  ;;  %v4158_v16 = vld [vmem:[%s9362_s10 + $0x40] sm:$0xff] }
 0x65c   :  { %v3907_v21 = vadd.f32 %v3906_v2, %v3886_v60  ;;  %4208 = vmatpush.msra.mxu1 %v4175_v7  ;;  %4189 = vmatpush.msra.mxu0 %v4158_v16  ;;  %v4240_v7 = vld [vmem:[%s9363_s11 + $0x8] sm:$0xff]  ;;  %v4239_v16 = vld [vmem:[%s9363_s11] sm:$0xff] }
 0x65d   :  { %v3953_v35 = vadd.f32 %v3952_v20, %v3951_v17  ;;  %v3968_v4 = vrot.slane %v3967_v40, 2  ;;  %v4174_v17 = vld [vmem:[%s9362_s10 + $0xc0] sm:$0xff]  ;;  %v4157_v20 = vld [vmem:[%s9362_s10 + $0x38] sm:$0xff] }
 0x65e   :  { %v3927_v42 = vadd.f32 %v3926_v19, %v3907_v21  ;;  %4209 = vmatpush.msra.mxu1 %v4174_v17  ;;  %v4156_v21 = vld [vmem:[%s9362_s10 + $0x30] sm:$0xff]  ;;  %4190 = vmatpush.msra.mxu0 %v4157_v20 }
 0x65f   :  { %v3954_v24 = vrot.slane %v3953_v35, 1  ;;  %v3969_v3 = vadd.f32 %v3968_v4, %v3967_v40  ;;  %v4173_v40 = vld [vmem:[%s9362_s10 + $0xb8] sm:$0xff]  ;;  %v4172_v19 = vld [vmem:[%s9362_s10 + $0xb0] sm:$0xff]  ;;  %v4155_v4 = vld [vmem:[%s9362_s10 + $0x28] sm:$0xff] }
 0x660   :  { %v9064_v27 = vadd.f32 %v3946_v26, %v3927_v42  ;;  %4210 = vmatpush.msra.mxu1 %v4173_v40  ;;  %v4171_v42 = vld [vmem:[%s9362_s10 + $0xa8] sm:$0xff]  ;;  %4191 = vmatpush.msra.mxu0 %v4156_v21 }
 0x661   :  { %v3970_v51 = vrot.slane %v3969_v3, 1  ;;  %v3955_v15 = vadd.f32 %v3954_v24, %v3953_v35 }
 0x662   :  { %v3956_v12 = vsel %vm1740_vm1, %v9064_v27, 0.0  ;;  %v3964_v29 = vmul.f32 %v9064_v27, %v9064_v27  ;;  %4211 = vmatpush.msra.mxu1 %v4172_v19  ;;  %4192 = vmatpush.msra.mxu0 %v4155_v4 }
 0x663   :  { %v3971_v58 = vadd.f32 %v3970_v51, %v3969_v3  ;;  %v3957_v31 = vrot.slane %v3956_v12, 4 }
 0x664   :  { %v3972_v23 = vsel %vm1740_vm1, %v3964_v29, 0.0  ;;  %4212 = vmatpush.msra.mxu1 %v4171_v42 }
 0x665   :  { %v3958_v33 = vadd.f32 %v3957_v31, %v3956_v12  ;;  %v3973_v36 = vrot.slane %v3972_v23, 4  ;;  %v3979_v34 = vsel %vm1847_vm2, %v3955_v15, %v3971_v58  ;;  %v4154_v31 = vld [vmem:[%s9362_s10 + $0x20] sm:$0xff] }
 0x666   :  { %v3981_v13 = vmul.f32 0.5, %v3979_v34  ;;  %4193 = vmatpush.msra.mxu0 %v4154_v31  ;;  %v4152_v34 = vld [vmem:[%s9362_s10 + $0x10] sm:$0xff] }
 0x667   :  { %v3959_v37 = vrot.slane %v3958_v33, 2  ;;  %v3974_v38 = vadd.f32 %v3973_v36, %v3972_v23  ;;  %v4170_v23 = vld [vmem:[%s9362_s10 + $0xa0] sm:$0xff]  ;;  %v4169_v36 = vld [vmem:[%s9362_s10 + $0x98] sm:$0xff] }
 0x668   :  { %4031 = vmatmul.f32.vlgmr.msra.gmra.mxu2 %v3981_v13  ;;  %4213 = vmatpush.msra.mxu1 %v4170_v23  ;;  %v4168_v13 = vld [vmem:[%s9362_s10 + $0x90] sm:$0xff]  ;;  %v4303_v23 = vld [vmem:[%s9364_s12 + $0x18] sm:$0xff] }
 0x669   :  { %v3960_v9 = vadd.f32 %v3959_v37, %v3958_v33  ;;  %v3975_v44 = vrot.slane %v3974_v38, 2  ;;  %v4153_v33 = vld [vmem:[%s9362_s10 + $0x18] sm:$0xff]  ;;  %v4151_v37 = vld [vmem:[%s9362_s10 + $0x8] sm:$0xff]  ;;  %4320 = vmatpush.msra.mxu3 %v4303_v23 }
 0x66a   :  { %4194 = vmatpush.msra.mxu0 %v4153_v33  ;;  %4214 = vmatpush.msra.mxu1 %v4169_v36  ;;  %v4302_v33 = vld [vmem:[%s9364_s12 + $0x10] sm:$0xff]  ;;  %v4301_v36 = vld [vmem:[%s9364_s12 + $0x8] sm:$0xff] }
 0x66b   :  { %v3961_v28 = vrot.slane %v3960_v9, 1  ;;  %v3976_v45 = vadd.f32 %v3975_v44, %v3974_v38  ;;  %v4167_v38 = vld [vmem:[%s9362_s10 + $0x88] sm:$0xff]  ;;  %v4166_v44 = vld [vmem:[%s9362_s10 + $0x80] sm:$0xff]  ;;  %4321 = vmatpush.msra.mxu3 %v4302_v33 }
 0x66c   :  { %4195 = vmatpush.msra.mxu0 %v4152_v34  ;;  %4215 = vmatpush.msra.mxu1 %v4168_v13  ;;  %v4300_v34 = vld [vmem:[%s9364_s12] sm:$0xff] }
 0x66d   :  { %v3977_v46 = vrot.slane %v3976_v45, 1  ;;  %v3962_v47 = vadd.f32 %v3961_v28, %v3960_v9  ;;  %v4150_v9 = vld [vmem:[%s9362_s10] sm:$0xff]  ;;  %v4254_v28 = vld [vmem:[%s9363_s11 + $0x78] sm:$0xff]  ;;  %4322 = vmatpush.msra.mxu3 %v4301_v36 }
 0x66e   :  { %4196 = vmatpush.msra.mxu0 %v4151_v37  ;;  %4216 = vmatpush.msra.mxu1 %v4167_v38  ;;  %v4355_v38 = vld [vmem:[%s9365_s13 + $0x78] sm:$0xff]  ;;  %v4423_v33 = vld [vmem:[%s9366_s14 + $0x20] sm:$0xff] }
 0x66f   :  { %v3978_v48 = vadd.f32 %v3977_v46, %v3976_v45  ;;  %v4253_v45 = vld [vmem:[%s9363_s11 + $0x70] sm:$0xff]  ;;  %4255 = vmatpush.msrb.mxu2 %v4254_v28  ;;  %v4252_v46 = vld [vmem:[%s9363_s11 + $0x68] sm:$0xff]  ;;  %4323 = vmatpush.msra.mxu3 %v4300_v34 }
 0x670   :  { %4197 = vmatpush.msra.mxu0 %v4150_v9  ;;  %4217 = vmatpush.msra.mxu1 %v4166_v44  ;;  %v4354_v9 = vld [vmem:[%s9365_s13 + $0x70] sm:$0xff]  ;;  %v4353_v28 = vld [vmem:[%s9365_s13 + $0x68] sm:$0xff] }
 0x671   :  { %v3980_v30 = vsel %vm1847_vm2, %v3962_v47, %v3978_v48  ;;  %4256 = vmatpush.msrb.mxu2 %v4253_v45  ;;  %v4251_v47 = vld [vmem:[%s9363_s11 + $0x60] sm:$0xff]  ;;  %v4250_v48 = vld [vmem:[%s9363_s11 + $0x58] sm:$0xff] }
 0x672   :  { %v3982_v49 = vmul.f32 0.5, %v3980_v30  ;;  %v4508_v30 = vld [vmem:[%s9361_s9 + $0x20] ss:$8 sm:$0x3] }
 0x673   :  { %4257 = vmatpush.msrb.mxu2 %v4252_v46  ;;  %v4352_v46 = vld [vmem:[%s9365_s13 + $0x60] sm:$0xff] }
 0x674   :  { %4051 = vmatmul.f32.vlgmr.msrb.gmra.mxu3 %v3982_v49  ;;  %v4134_v49 = vperm.slane %v4508_v30, 0 }
 0x675   :  { %4258 = vmatpush.msrb.mxu2 %v4251_v47  ;;  %4356 = vmatpush.msrb.mxu3 %v4355_v38 }
 0x677   :  { %4259 = vmatpush.msrb.mxu2 %v4250_v48  ;;  %4357 = vmatpush.msrb.mxu3 %v4354_v9  ;;  %v4351_v48 = vld [vmem:[%s9365_s13 + $0x58] sm:$0xff]  ;;  %v4421_v9 = vld [vmem:[%s9366_s14 + $0x10] sm:$0xff] }
 0x679   :  { %4260 = vmatpush.msrb.mxu2 %v4249_v5  ;;  %4358 = vmatpush.msrb.mxu3 %v4353_v28  ;;  %v4343_v5 = vld [vmem:[%s9365_s13 + $0x18] sm:$0xff]  ;;  %v4420_v28 = vld [vmem:[%s9366_s14 + $0x8] sm:$0xff] }
 0x67b   :  { %4359 = vmatpush.msrb.mxu3 %v4352_v46  ;;  %v4419_v46 = vld [vmem:[%s9366_s14] sm:$0xff] }
 0x67d   :  { %4360 = vmatpush.msrb.mxu3 %v4351_v48 }
 0x6eb   :  { %v4032_v57 = vpop.f32.mrf.mxu2 }
 0x6f7   :  { %v4052_v50 = vpop.f32.mrf.mxu3 }
 0x6f8   :  { %v9073_v53 = vadd.f32 %v4052_v50, %v4032_v57  ;;  %v4135_v57 = vperm.slane %v4508_v30, 1  ;;  %v4350_v30 = vld [vmem:[%s9365_s13 + $0x50] sm:$0xff] }
 0x6f9   :  { %4361 = vmatpush.msrb.mxu3 %v4350_v30 }
 0x6fa   :  { %v4055_v39 = vmul.f32 %v9073_v53, %v9073_v53  ;;  %v4071_v51 = vsub.f32 0.0, %v9073_v53 }
 0x6fc   :  { %v4057_v0 = vrot.slane %v4055_v39, 7 }
 0x6fe   :  { %v4059_v43 = vsub.f32 %v9073_v53, %v4057_v0 }
 0x700   :  { %v4060_v22 = vadd.f32 1e-05, %v4059_v43 }
 0x702   :  { %4517 = vrsqrt.f32 %v4060_v22  ;;  %vm4067_vm13 = vweird.f32 %v4060_v22 }
 0x708   :  { %v4518_v8 = vpop.eup %4517 }
 0x709   :  { %v4062_v2 = vmul.f32 %v4518_v8, %v4060_v22  ;;  %vm4068_vm12 = vweird.f32 %v4518_v8  ;;  %v4246_v22 = vld [vmem:[%s9363_s11 + $0x38] sm:$0xff] }
 0x70a   :  { %vm4069_vm14 = vmor %vm4067_vm13, %vm4068_vm12 }
 0x70b   :  { %v4063_v60 = vmul.f32 %v4518_v8, %v4062_v2 }
 0x70d   :  { %v4064_v35 = vmul.f32 0.5, %v4063_v60 }
 0x70f   :  { %v4065_v24 = vsub.f32 1.5, %v4064_v35 }
 0x711   :  { %v4066_v3 = vmul.f32 %v4518_v8, %v4065_v24 }
 0x713   :  { %v4070_v26 = vsel %vm4069_vm14, %v4518_v8, %v4066_v3 }
 0x714   :  { %v4073_v12 = vrot.slane %v4070_v26, 1 }
 0x716   :  { %v4075_v29 = vmul.f32 %v4073_v12, %v4071_v51 }
 0x718   :  { %v4077_v15 = vrot.slane %v4075_v29, 7 }
 0x71a   :  { %v4079_v58 = vsel %vm1847_vm2, %v4073_v12, %v4077_v15 }
 0x71b   :  { %4506 = vmatmul.msk.f32.vlgmr.msrb.gmra.mxu0 %vm757_vm0, %v4079_v58  ;;  %4507 = vmatmul.msk.f32.vlgmr.msrb.gmra.mxu1 %vm757_vm0, %v4079_v58 }
 0x798   :  { %v4104_v50 = vpop.f32.mrf.mxu0  ;;  %v4124_v53 = vpop.f32.mrf.mxu1 }
 0x799   :  { %v4127_v54 = vperm.slane %v4104_v50, 0  ;;  %v4138_v55 = vadd.f32 %v4134_v49, %v4104_v50  ;;  %v4128_v56 = vperm.slane %v4124_v53, 0  ;;  %v4139_v61 = vadd.f32 %v4135_v57, %v4124_v53  ;;  %v4349_v49 = vld [vmem:[%s9365_s13 + $0x48] sm:$0xff]  ;;  %v4348_v57 = vld [vmem:[%s9365_s13 + $0x40] sm:$0xff] }
 0x79a   :  { %4362 = vmatpush.msrb.mxu3 %v4349_v49 }
 0x79b   :  { %v4129_v39 = vmul.f32 %v4127_v54, %v9057_v10  ;;  %v4140_v32 = vperm.slane %v4138_v55, 1  ;;  %v4130_v63 = vmul.f32 %v4128_v56, %v9064_v27  ;;  %v4141_v25 = vperm.slane %v4139_v61, 1  ;;  %v4248_v10 = vld [vmem:[%s9363_s11 + $0x48] sm:$0xff]  ;;  %v4247_v27 = vld [vmem:[%s9363_s11 + $0x40] sm:$0xff]  ;;  %v4347_v54 = vld [vmem:[%s9365_s13 + $0x38] sm:$0xff] }
 0x79c   :  { %4261 = vmatpush.msrb.mxu2 %v4248_v10  ;;  %4363 = vmatpush.msrb.mxu3 %v4348_v57  ;;  %v4346_v56 = vld [vmem:[%s9365_s13 + $0x30] sm:$0xff] }
 0x79d   :  { %v4142_v0 = vadd.f32 %v4140_v32, %v4129_v39  ;;  %v4143_v41 = vadd.f32 %v4141_v25, %v4130_v63  ;;  %v4345_v39 = vld [vmem:[%s9365_s13 + $0x28] sm:$0xff]  ;;  %v4342_v10 = vld [vmem:[%s9365_s13 + $0x10] sm:$0xff] }
 0x79e   :  { %4262 = vmatpush.msrb.mxu2 %v4247_v27  ;;  %4364 = vmatpush.msrb.mxu3 %v4347_v54  ;;  %v4341_v27 = vld [vmem:[%s9365_s13 + $0x8] sm:$0xff] }
 0x79f   :  { %v4146_v52 = vmul.f32 0.01, %v4142_v0  ;;  %v4147_v18 = vmul.f32 0.01, %v4143_v41  ;;  %vm4144_vm0 = vcmp.ge.f32.partialorder %v4142_v0, 0.0  ;;  %vm4145_vm15 = vcmp.ge.f32.partialorder %v4143_v41, 0.0 }
 0x7a0   :  { %4263 = vmatpush.msrb.mxu2 %v4246_v22  ;;  %4365 = vmatpush.msrb.mxu3 %v4346_v56  ;;  %v4340_v22 = vld [vmem:[%s9365_s13] sm:$0xff] }
 0x7a1   :  { %v4148_v43 = vsel %vm4144_vm0, %v4142_v0, %v4146_v52  ;;  %v4149_v1 = vsel %vm4145_vm15, %v4143_v41, %v4147_v18  ;;  %v4409_v56 = vld [vmem:[%s9365_s13 + $0x81] sm:$0x1] }
 0x7a2   :  { %4198 = vmatmul.f32.vlgmr.msra.gmra.mxu0 %v4148_v43  ;;  %4218 = vmatmul.f32.vlgmr.msra.gmra.mxu1 %v4149_v1  ;;  %v4344_v1 = vld [vmem:[%s9365_s13 + $0x20] sm:$0xff] }
 0x7a3   :  { %4264 = vmatpush.msrb.mxu2 %v4245_v6  ;;  %4366 = vmatpush.msrb.mxu3 %v4345_v39  ;;  %v4330_v6 = vld [vmem:[%s9364_s12 + $0x20] sm:$0x1] }
 0x7a5   :  { %4265 = vmatpush.msrb.mxu2 %v4244_v59  ;;  %4367 = vmatpush.msrb.mxu3 %v4344_v1  ;;  %v4332_v59 = vrot.slane %v4330_v6, 7 }
 0x7a7   :  { %4266 = vmatpush.msrb.mxu2 %v4243_v62  ;;  %4368 = vmatpush.msrb.mxu3 %v4343_v5 }
 0x7a9   :  { %4267 = vmatpush.msrb.mxu2 %v4242_v11  ;;  %4369 = vmatpush.msrb.mxu3 %v4342_v10 }
 0x7ab   :  { %4268 = vmatpush.msrb.mxu2 %v4241_v14  ;;  %4370 = vmatpush.msrb.mxu3 %v4341_v27 }
 0x7ad   :  { %4269 = vmatpush.msrb.mxu2 %v4240_v7  ;;  %4371 = vmatpush.msrb.mxu3 %v4340_v22 }
 0x7af   :  { %4270 = vmatpush.msrb.mxu2 %v4239_v16 }
 0x81f   :  { %v4199_v17 = vpop.f32.mrf.mxu0  ;;  %v4219_v8 = vpop.f32.mrf.mxu1 }
 0x820   :  { %v9243_v2 = vadd.f32 %v4219_v8, %v4199_v17 }
 0x822   :  { %v4222_v20 = vsel %vm1740_vm1, %v9243_v2, 0.0  ;;  %v4229_v40 = vmul.f32 %v9243_v2, %v9243_v2 }
 0x823   :  { %v4223_v60 = vrot.slane %v4222_v20, 4 }
 0x824   :  { %v4230_v21 = vsel %vm1740_vm1, %v4229_v40, 0.0 }
 0x825   :  { %v4224_v19 = vadd.f32 %v4223_v60, %v4222_v20  ;;  %v4231_v35 = vrot.slane %v4230_v21, 4 }
 0x827   :  { %v4225_v4 = vrot.slane %v4224_v19, 2  ;;  %v4232_v42 = vadd.f32 %v4231_v35, %v4230_v21 }
 0x829   :  { %v4226_v24 = vadd.f32 %v4225_v4, %v4224_v19  ;;  %v4233_v3 = vrot.slane %v4232_v42, 2 }
 0x82b   :  { %v4227_v26 = vrot.slane %v4226_v24, 1  ;;  %v4234_v51 = vadd.f32 %v4233_v3, %v4232_v42 }
 0x82d   :  { %v4235_v12 = vrot.slane %v4234_v51, 1  ;;  %v4228_v29 = vadd.f32 %v4227_v26, %v4226_v24 }
 0x82f   :  { %v4236_v15 = vadd.f32 %v4235_v12, %v4234_v51  ;;  %v4425_v12 = vld [vmem:[%s9366_s14 + $0x30] sm:$0xff] }
 0x831   :  { %v4237_v58 = vsel %vm1847_vm2, %v4228_v29, %v4236_v15 }
 0x832   :  { %v4238_v31 = vmul.f32 0.5, %v4237_v58  ;;  %v4424_v58 = vld [vmem:[%s9366_s14 + $0x28] sm:$0xff] }
 0x834   :  { %4271 = vmatmul.f32.vlgmr.msrb.gmra.mxu2 %v4238_v31 }
 0x8b7   :  { %v4272_v13 = vpop.f32.mrf.mxu2 }
 0x8b8   :  { %v4275_v37 = vmul.f32 %v4272_v13, %v4272_v13  ;;  %v4291_v0 = vsub.f32 0.0, %v4272_v13 }
 0x8ba   :  { %v4277_v44 = vrot.slane %v4275_v37, 7 }
 0x8bc   :  { %v4279_v45 = vsub.f32 %v4272_v13, %v4277_v44  ;;  %v4422_v13 = vld [vmem:[%s9366_s14 + $0x18] sm:$0xff] }
 0x8be   :  { %v4280_v47 = vadd.f32 1e-05, %v4279_v45 }
 0x8c0   :  { %4519 = vrsqrt.f32 %v4280_v47  ;;  %vm4287_vm3 = vweird.f32 %v4280_v47 }
 0x8c6   :  { %v4520_v50 = vpop.eup %4519 }
 0x8c7   :  { %v4282_v53 = vmul.f32 %v4520_v50, %v4280_v47  ;;  %vm4288_vm1 = vweird.f32 %v4520_v50 }
 0x8c8   :  { %vm4289_vm4 = vmor %vm4287_vm3, %vm4288_vm1 }
 0x8c9   :  { %v4283_v55 = vmul.f32 %v4520_v50, %v4282_v53 }
 0x8cb   :  { %v4284_v61 = vmul.f32 0.5, %v4283_v55 }
 0x8cd   :  { %v4285_v32 = vsub.f32 1.5, %v4284_v61 }
 0x8cf   :  { %v4286_v63 = vmul.f32 %v4520_v50, %v4285_v32 }
 0x8d1   :  { %v4290_v25 = vsel %vm4289_vm4, %v4520_v50, %v4286_v63  ;;  %v4396_v50 = vld [vmem:[%s9365_s13 + $0x80] sm:$0x1]  ;;  %s4461_s13 = sshll.u32 %s9367_s15, 4  ;;  %s4462_s13 = int_to_ptr.hbm [resolvable:$true] %s4461_s13 }
 0x8d2   :  { %v4293_v41 = vrot.slane %v4290_v25, 1 }
 0x8d4   :  { %v4295_v52 = vmul.f32 %v4293_v41, %v4291_v0 }
 0x8d6   :  { %v4297_v18 = vrot.slane %v4295_v52, 7 }
 0x8d8   :  { %v4299_v43 = vsel %vm1847_vm2, %v4293_v41, %v4297_v18  ;;  %v4512_v18 = vld [vmem:[%s9366_s14 + $0x40] ss:$0 sm:$0xff] }
 0x8d9   :  { %4509 = vmatmul.msk.f32.vlgmr.msra.gmra.mxu3 %vm4304_vm5, %v4299_v43 }
 0x95c   :  { %v4325_v62 = vpop.f32.mrf.mxu3 }
 0x95d   :  { %v4328_v11 = vperm.slane %v4325_v62, 0  ;;  %v4334_v14 = vadd.f32 %v4332_v59, %v4325_v62 }
 0x95f   :  { %v4329_v7 = vmul.f32 %v4328_v11, %v9243_v2  ;;  %v4335_v16 = vperm.slane %v4334_v14, 1  ;;  %v4426_v2 = vld [vmem:[%s9366_s14 + $0x38] sm:$0xff] }
 0x960   :  { %4441 = vmatpush.msrb.mxu0 %v4426_v2 }
 0x961   :  { %v4336_v17 = vadd.f32 %v4335_v16, %v4329_v7 }
 0x962   :  { %4442 = vmatpush.msrb.mxu0 %v4425_v12 }
 0x963   :  { %v4338_v8 = vmul.f32 0.01, %v4336_v17  ;;  %vm4337_vm2 = vcmp.ge.f32.partialorder %v4336_v17, 0.0 }
 0x964   :  { %4443 = vmatpush.msrb.mxu0 %v4424_v58 }
 0x965   :  { %v4339_v20 = vsel %vm4337_vm2, %v4336_v17, %v4338_v8 }
 0x966   :  { %4372 = vmatmul.f32.vlgmr.msrb.gmra.mxu3 %v4339_v20  ;;  %4444 = vmatpush.msrb.mxu0 %v4423_v33 }
 0x968   :  { %4445 = vmatpush.msrb.mxu0 %v4422_v13 }
 0x96a   :  { %4446 = vmatpush.msrb.mxu0 %v4421_v9 }
 0x96c   :  { %4447 = vmatpush.msrb.mxu0 %v4420_v28 }
 0x96e   :  { %4448 = vmatpush.msrb.mxu0 %v4419_v46 }
 0x9e9   :  { %v4373_v40 = vpop.f32.mrf.mxu3 }
 0x9ea   :  { %v4377_v60 = vsel %vm4376_vm6, %v4373_v40, 0.0  ;;  %v4385_v21 = vmul.f32 %v4373_v40, %v4373_v40 }
 0x9eb   :  { %v4378_v19 = vrot.slane %v4377_v60, 4 }
 0x9ec   :  { %v4386_v35 = vsel %vm4376_vm6, %v4385_v21, 0.0 }
 0x9ed   :  { %v4379_v4 = vadd.f32 %v4378_v19, %v4377_v60  ;;  %v4387_v42 = vrot.slane %v4386_v35, 4 }
 0x9ef   :  { %v4380_v24 = vrot.slane %v4379_v4, 2  ;;  %v4388_v3 = vadd.f32 %v4387_v42, %v4386_v35 }
 0x9f1   :  { %v4381_v26 = vadd.f32 %v4380_v24, %v4379_v4  ;;  %v4389_v51 = vrot.slane %v4388_v3, 2 }
 0x9f3   :  { %v4382_v29 = vrot.slane %v4381_v26, 1  ;;  %v4390_v15 = vadd.f32 %v4389_v51, %v4388_v3 }
 0x9f5   :  { %v4383_v31 = vadd.f32 %v4382_v29, %v4381_v26  ;;  %v4391_v23 = vrot.slane %v4390_v15, 1 }
 0x9f7   :  { %v4384_v36 = vmul.f32 0.5, %v4383_v31  ;;  %v4392_v34 = vadd.f32 %v4391_v23, %v4390_v15 }
 0x9f9   :  { %v4393_v37 = vmul.f32 0.5, %v4392_v34  ;;  %v4394_v38 = vmul.f32 %v4384_v36, %v4384_v36 }
 0x9fb   :  { %v4395_v44 = vsub.f32 %v4393_v37, %v4394_v38 }
 0x9fd   :  { %v4397_v45 = vadd.f32 1e-05, %v4395_v44 }
 0x9ff   :  { %4521 = vrsqrt.f32 %v4397_v45  ;;  %vm4404_vm8 = vweird.f32 %v4397_v45 }
 0xa05   :  { %v4522_v47 = vpop.eup %4521 }
 0xa06   :  { %v4399_v48 = vmul.f32 %v4522_v47, %v4397_v45  ;;  %vm4405_vm7 = vweird.f32 %v4522_v47 }
 0xa07   :  { %vm4406_vm9 = vmor %vm4404_vm8, %vm4405_vm7 }
 0xa08   :  { %v4400_v30 = vmul.f32 %v4522_v47, %v4399_v48 }
 0xa0a   :  { %v4401_v49 = vmul.f32 0.5, %v4400_v30 }
 0xa0c   :  { %v4402_v57 = vsub.f32 1.5, %v4401_v49 }
 0xa0e   :  { %v4403_v53 = vmul.f32 %v4522_v47, %v4402_v57 }
 0xa10   :  { %v4407_v54 = vsel %vm4406_vm9, %v4522_v47, %v4403_v53 }
 0xa11   :  { %v4408_v55 = vmul.f32 %v4407_v54, %v4396_v50 }
 0xa13   :  { %v4410_v61 = vmul.f32 %v4408_v55, %v4384_v36  ;;  %v4412_v39 = vperm.slane %v4408_v55, 0 }
 0xa15   :  { %v4411_v32 = vsub.f32 %v4409_v56, %v4410_v61  ;;  %v4413_v63 = vmul.f32 %v4412_v39, %v4373_v40 }
 0xa17   :  { %v4414_v25 = vperm.slane %v4411_v32, 0 }
 0xa19   :  { %v4415_v0 = vadd.f32 %v4414_v25, %v4413_v63 }
 0xa1b   :  { %vm4416_vm10 = vcmp.ge.f32.partialorder %v4415_v0, 0.0  ;;  %v4417_v41 = vmul.f32 0.01, %v4415_v0 }
 0xa1d   :  { %v4418_v52 = vsel %vm4416_vm10, %v4415_v0, %v4417_v41 }
 0xa1e   :  { %4510 = vmatmul.msk.f32.vlgmr.msrb.gmra.mxu0 %vm4429_vm11, %v4418_v52 }
 0xa9b   :  { %v4450_v43 = vpop.f32.mrf.mxu0 }
 0xa9c   :  { %v4451_v1 = vadd.f32 %v4512_v18, %v4450_v43 }
 0xa9e   :  { %4453 = vst [vmem:[#allocation2] sm:$0x3] %v4451_v1 }
 0xa9f   :  { %4464 = dma.vmem_to_hbm [thread:$0]  %s4460_s25, 32, %s4462_s13, [#allocation3]  }
 0xaa0   :  { %4561 = dma.done.wait [#allocation3], 32  }
 0xaa1   :  { %4562 = vsyncadd [#allocation3], 4294967264 }
 0xaa2   :  { %4469 = vsyncpa [#allocation3], 1 }

</bundles_post_ra>
